<compile_context>
chip_gen: v5e
topology: v5e:2x2
jax: 0.10.0
libtpu: 0.0.40
codegen_flags: <defaults>
</compile_context>

<pallas_src>
import math

import jax
import jax.numpy as jnp
from jax.experimental import pallas as pl
from jax.experimental.pallas import tpu as pltpu  # noqa: F401  (no grid pipelining needed)

# ----------------------------- config (small, consistent with forward) ------------------
B = 2            # batch
S = 8            # max_length (shared by src and trg)
BS = B * S       # batch folded into sublanes
D = 32           # d_model
H = 2            # n_heads
DH = D // H      # head dim
FF = 64          # feed-forward hidden
L = 2            # encoder / decoder layers
SRC_VOCAB = 100
TRG_VOCAB = 100
SRC_PAD_IDX = 0
TRG_PAD_IDX = 0
LN_EPS = 1e-5
NEG_INF = -1e10

LANES = 128
QKV_PAD = 128    # 3*D = 96 padded to a lane-dense 128
OUT_PAD = 128    # TRG_VOCAB = 100 padded to a lane-dense 128

EW_ROWS = 3 * D + FF      # 160  encoder per-layer matmul-weight slab rows
DW_ROWS = 6 * D + FF      # 256  decoder per-layer matmul-weight slab rows
ENC_V_ROWS = 8            # encoder per-layer bias/LN vector slab rows
DEC_V_ROWS = 16           # decoder per-layer bias/LN vector slab rows
OUT_ROWS = D + 1          # 33   output projection slab (last row = bias)


# ----------------------------- the fused Pallas kernel ----------------------------------
def transformer_kernel(
    src_x_ref, trg_x_ref,            # [BS, D] folded activations
    enc_bias_ref, dec_bias_ref,      # [H*BS, H*BS] additive masks (0 or NEG_INF)
    enc_w_ref, enc_v_ref,            # [L, EW_ROWS, 128], [L, 8, 128]
    dec_w_ref, dec_v_ref,            # [L, DW_ROWS, 128], [L, 16, 128]
    out_slab_ref,                    # [OUT_ROWS, 128]
    logits_ref,                      # [BS, OUT_PAD]
):
    def layer_norm(x, g, b):
        mu = jnp.mean(x, axis=-1, keepdims=True)
        var = jnp.mean(jnp.square(x - mu), axis=-1, keepdims=True)
        return (x - mu) * jax.lax.rsqrt(var + LN_EPS) * g + b

    def stack_heads(a):
        # [BS, H*DH] (heads in lanes) -> [H*BS, DH] (head-major rows)
        return jnp.concatenate([a[:, h * DH:(h + 1) * DH] for h in range(H)], axis=0)

    def unstack_heads(o):
        # [H*BS, DH] -> [BS, H*DH]
        return jnp.concatenate([o[h * BS:(h + 1) * BS, :] for h in range(H)], axis=1)

    def attention(q_all, k_all, v_all, bias, wo, bo):
        # All heads and batch elements in one QK^T and one P.V (block-diag additive bias).
        # The 1/sqrt(DH) scale is already folded into the Q projection weights.
        q = stack_heads(q_all)                       # [H*BS, DH]
        k = stack_heads(k_all)
        v = stack_heads(v_all)
        s = jax.lax.dot_general(q, k, (((1,), (1,)), ((), ())),
                                preferred_element_type=jnp.float32) + bias
        m = jnp.max(s, axis=-1, keepdims=True)
        p = jnp.exp(s - m)
        denom = jnp.sum(p, axis=-1, keepdims=True)
        o = jnp.dot(p, v, preferred_element_type=jnp.float32)
        o = o * pl.reciprocal(denom, approx=False)   # EUP reciprocal, exact (parity w/ ref)
        attn = unstack_heads(o)                      # [BS, D]
        return jnp.dot(attn, wo, preferred_element_type=jnp.float32) + bo

    def ffn(x, w1, b1, w2, b2):
        h = jnp.maximum(jnp.dot(x, w1, preferred_element_type=jnp.float32) + b1, 0.0)
        return jnp.dot(h, w2, preferred_element_type=jnp.float32) + b2

    enc_bias = enc_bias_ref[...]
    dec_bias = dec_bias_ref[...]

    # ----------------- encoder -----------------
    x = src_x_ref[...]                               # [BS, D]
    for li in range(L):
        qkv = (jnp.dot(x, enc_w_ref[li, 0:D, :], preferred_element_type=jnp.float32)
               + enc_v_ref[li, 0:1, :])              # [BS, 128] fused Q|K|V
        a = attention(qkv[:, 0:D], qkv[:, D:2 * D], qkv[:, 2 * D:3 * D],
                      enc_bias,
                      enc_w_ref[li, D:2 * D, 0:D],           # wo
                      enc_v_ref[li, 1:2, 0:D])               # bo
        x = layer_norm(x + a, enc_v_ref[li, 2:3, 0:D], enc_v_ref[li, 3:4, 0:D])
        f = ffn(x,
                enc_w_ref[li, 2 * D:3 * D, 0:FF],            # ff_w1
                enc_v_ref[li, 4:5, 0:FF],                    # ff_b1
                enc_w_ref[li, 3 * D:3 * D + FF, 0:D],        # ff_w2
                enc_v_ref[li, 5:6, 0:D])                     # ff_b2
        x = layer_norm(x + f, enc_v_ref[li, 6:7, 0:D], enc_v_ref[li, 7:8, 0:D])
    enc_out = x

    # ----------------- decoder -----------------
    y = trg_x_ref[...]                               # [BS, D]
    for li in range(L):
        # masked self-attention (fused Q|K|V)
        qkv = (jnp.dot(y, dec_w_ref[li, 0:D, :], preferred_element_type=jnp.float32)
               + dec_v_ref[li, 0:1, :])
        a = attention(qkv[:, 0:D], qkv[:, D:2 * D], qkv[:, 2 * D:3 * D],
                      dec_bias,
                      dec_w_ref[li, D:2 * D, 0:D],           # wo
                      dec_v_ref[li, 1:2, 0:D])               # bo
        y = layer_norm(y + a, dec_v_ref[li, 2:3, 0:D], dec_v_ref[li, 3:4, 0:D])

        # cross-attention (Q from decoder state, fused K|V from encoder output)
        q = (jnp.dot(y, dec_w_ref[li, 2 * D:3 * D, 0:D],
                     preferred_element_type=jnp.float32)
             + dec_v_ref[li, 4:5, 0:D])
        kv = (jnp.dot(enc_out, dec_w_ref[li, 3 * D:4 * D, 0:2 * D],
                      preferred_element_type=jnp.float32)
              + dec_v_ref[li, 5:6, 0:2 * D])                 # [BS, 2D]
        c = attention(q, kv[:, 0:D], kv[:, D:2 * D],
                      enc_bias,
                      dec_w_ref[li, 4 * D:5 * D, 0:D],       # cwo
                      dec_v_ref[li, 6:7, 0:D])               # cbo
        y = layer_norm(y + c, dec_v_ref[li, 7:8, 0:D], dec_v_ref[li, 8:9, 0:D])

        # feed-forward
        f = ffn(y,
                dec_w_ref[li, 5 * D:6 * D, 0:FF],            # ff_w1
                dec_v_ref[li, 9:10, 0:FF],                   # ff_b1
                dec_w_ref[li, 6 * D:6 * D + FF, 0:D],        # ff_w2
                dec_v_ref[li, 10:11, 0:D])                   # ff_b2
        y = layer_norm(y + f, dec_v_ref[li, 11:12, 0:D], dec_v_ref[li, 12:13, 0:D])

    # lane-dense (128-wide) output projection; logits stay padded
    logits_ref[...] = (jnp.dot(y, out_slab_ref[0:D, :], preferred_element_type=jnp.float32)
                       + out_slab_ref[D:D + 1, :])


# ----------------------------- JAX glue (embeddings, masks, call) ------------------------
def embed(tok, tok_emb, pos_emb):
    return tok_emb[tok] * math.sqrt(D) + pos_emb[None, :, :]     # [B, S, D]


def make_attn_biases(src, trg):
    """Additive attention biases, block-diagonal over (head, batch).

    Returns two [H*B*S, H*B*S] float32 arrays: 0.0 where attention is allowed,
    NEG_INF where masked (pad keys; plus future positions for the decoder).
    Row/col index = h*B*S + b*S + position, matching the kernel's head stacking.
    """
    enc_m = jnp.broadcast_to((src == SRC_PAD_IDX)[:, None, :], (B, S, S))
    future = jnp.triu(jnp.ones((S, S), dtype=jnp.bool_), k=1)
    dec_m = (trg == TRG_PAD_IDX)[:, None, :] | future[None, :, :]

    def fold(mask):                                            # [B, S, S] bool, True == masked
        allowed = (jnp.eye(B, dtype=jnp.bool_)[:, None, :, None]
                   & (~mask)[:, :, None, :])                   # [B, S, B, S]
        blk = jnp.where(allowed.reshape(BS, BS), 0.0, NEG_INF).astype(jnp.float32)
        head_eye = jnp.eye(H, dtype=jnp.bool_)[:, None, :, None]          # [H, 1, H, 1]
        big = jnp.where(head_eye, blk[None, :, None, :], NEG_INF)         # [H, BS, H, BS]
        return big.reshape(H * BS, H * BS).astype(jnp.float32)

    return fold(enc_m), fold(dec_m)


def transformer_forward(src, trg, p):
    src_x = embed(src, p["src_tok_emb"], p["src_pos_emb"]).reshape(BS, D)
    trg_x = embed(trg, p["trg_tok_emb"], p["trg_pos_emb"]).reshape(BS, D)
    enc_bias, dec_bias = make_attn_biases(src, trg)

    logits_pad = pl.pallas_call(
        transformer_kernel,
        out_shape=jax.ShapeDtypeStruct((BS, OUT_PAD), jnp.float32),
        # No grid / no BlockSpecs: every array is loaded whole into VMEM exactly once
        # (total resident footprint < 1 MiB), so there is no pipeline to configure.
    )(src_x, trg_x, enc_bias, dec_bias,
      p["enc_w"], p["enc_v"], p["dec_w"], p["dec_v"], p["out"])

    # Keep logits 128-lane padded (lane-dense store). Downstream consumers slice / fuse
    # the [..., :TRG_VOCAB] view (done next to the loss, or in __main__ below).
    return logits_pad.reshape(B, S, OUT_PAD)


# ----------------------------- deterministic parameter init ------------------------------
def init_params(key):
    keys = iter(jax.random.split(key, 256))

    def normal(shape, scale=0.02):
        return (scale * jax.random.normal(next(keys), shape)).astype(jnp.float32)

    qscale = 1.0 / math.sqrt(DH)

    def pad_lanes(w):                                   # [r, c] -> [r, 128]
        return jnp.pad(w, ((0, 0), (0, LANES - w.shape[1])))

    def vec_row(v):                                     # [n] -> [1, 128]
        v = jnp.asarray(v, jnp.float32).reshape(1, -1)
        return jnp.pad(v, ((0, 0), (0, LANES - v.shape[1])))

    p = {
        "src_tok_emb": normal((SRC_VOCAB, D)),
        "trg_tok_emb": normal((TRG_VOCAB, D)),
        "src_pos_emb": normal((S, D)),
        "trg_pos_emb": normal((S, D)),
    }
    raw = {"enc": [], "dec": []}

    # ---- encoder slabs ----
    enc_w_layers, enc_v_layers = [], []
    for _ in range(L):
        lyr = dict(wq=normal((D, D)), wk=normal((D, D)), wv=normal((D, D)),
                   wo=normal((D, D)), ff_w1=normal((D, FF)), ff_w2=normal((FF, D)))
        raw["enc"].append(lyr)
        # fused Q|K|V with the attention scale folded into the Q columns at init time
        qkv_w = pad_lanes(jnp.concatenate(
            [lyr["wq"] * qscale, lyr["wk"], lyr["wv"]], axis=1))
        w_slab = jnp.concatenate(
            [qkv_w,                                   # rows   0: 32
             pad_lanes(lyr["wo"]),                    # rows  32: 64
             pad_lanes(lyr["ff_w1"]),                 # rows  64: 96
             pad_lanes(lyr["ff_w2"])], axis=0)        # rows  96:160
        v_slab = jnp.concatenate(
            [vec_row(jnp.zeros(QKV_PAD)),             # 0: fused qkv bias
             vec_row(jnp.zeros(D)),                   # 1: attn out bias
             vec_row(jnp.ones(D)),                    # 2: ln1 gamma
             vec_row(jnp.zeros(D)),                   # 3: ln1 beta
             vec_row(jnp.zeros(FF)),                  # 4: ff bias 1
             vec_row(jnp.zeros(D)),                   # 5: ff bias 2
             vec_row(jnp.ones(D)),                    # 6: ln2 gamma
             vec_row(jnp.zeros(D))], axis=0)          # 7: ln2 beta
        enc_w_layers.append(w_slab)
        enc_v_layers.append(v_slab)
    p["enc_w"] = jnp.stack(enc_w_layers)              # [L, 160, 128]
    p["enc_v"] = jnp.stack(enc_v_layers)              # [L,   8, 128]

    # ---- decoder slabs ----
    dec_w_layers, dec_v_layers = [], []
    for _ in range(L):
        lyr = dict(wq=normal((D, D)), wk=normal((D, D)), wv=normal((D, D)),
                   wo=normal((D, D)),
                   cq=normal((D, D)), ck=normal((D, D)), cv=normal((D, D)),
                   cwo=normal((D, D)),
                   ff_w1=normal((D, FF)), ff_w2=normal((FF, D)))
        raw["dec"].append(lyr)
        qkv_w = pad_lanes(jnp.concatenate(
            [lyr["wq"] * qscale, lyr["wk"], lyr["wv"]], axis=1))
        ckv_w = pad_lanes(jnp.concatenate([lyr["ck"], lyr["cv"]], axis=1))
        w_slab = jnp.concatenate(
            [qkv_w,                                   # rows   0: 32
             pad_lanes(lyr["wo"]),                    # rows  32: 64
             pad_lanes(lyr["cq"] * qscale),           # rows  64: 96 (scale folded)
             ckv_w,                                   # rows  96:128
             pad_lanes(lyr["cwo"]),                   # rows 128:160
             pad_lanes(lyr["ff_w1"]),                 # rows 160:192
             pad_lanes(lyr["ff_w2"])], axis=0)        # rows 192:256
        v_slab = jnp.concatenate(
            [vec_row(jnp.zeros(QKV_PAD)),             # 0: fused qkv bias
             vec_row(jnp.zeros(D)),                   # 1: self-attn out bias
             vec_row(jnp.ones(D)),                    # 2: ln1 gamma
             vec_row(jnp.zeros(D)),                   # 3: ln1 beta
             vec_row(jnp.zeros(D)),                   # 4: cross-q bias
             vec_row(jnp.zeros(2 * D)),               # 5: cross kv bias
             vec_row(jnp.zeros(D)),                   # 6: cross out bias
             vec_row(jnp.ones(D)),                    # 7: ln2 gamma
             vec_row(jnp.zeros(D)),                   # 8: ln2 beta
             vec_row(jnp.zeros(FF)),                  # 9: ff bias 1
             vec_row(jnp.zeros(D)),                   # 10: ff bias 2
             vec_row(jnp.ones(D)),                    # 11: ln3 gamma
             vec_row(jnp.zeros(D)),                   # 12: ln3 beta
             vec_row(jnp.zeros(D)),                   # 13: pad
             vec_row(jnp.zeros(D)),                   # 14: pad
             vec_row(jnp.zeros(D))], axis=0)          # 15: pad
        dec_w_layers.append(w_slab)
        dec_v_layers.append(v_slab)
    p["dec_w"] = jnp.stack(dec_w_layers)              # [L, 256, 128]
    p["dec_v"] = jnp.stack(dec_v_layers)              # [L,  16, 128]

    # output projection slab: rows 0:D = weight (vocab lane-padded), row D = bias
    out_w = normal((D, TRG_VOCAB))
    raw["out_w"] = out_w
    p["out"] = jnp.concatenate(
        [jnp.pad(out_w, ((0, 0), (0, OUT_PAD - TRG_VOCAB))),
         jnp.zeros((1, OUT_PAD), jnp.float32)], axis=0)        # [33, 128]
    return p, raw


# ----------------------------- pure-JAX reference (semantics check) ----------------------
def reference_forward(src, trg, p, raw):
    scale = 1.0 / math.sqrt(DH)
    src_x = embed(src, p["src_tok_emb"], p["src_pos_emb"])     # [B, S, D]
    trg_x = embed(trg, p["trg_tok_emb"], p["trg_pos_emb"])
    enc_mask = jnp.broadcast_to((src == SRC_PAD_IDX)[:, None, :], (B, S, S))
    future = jnp.triu(jnp.ones((S, S), dtype=jnp.bool_), k=1)
    dec_mask = (trg == TRG_PAD_IDX)[:, None, :] | future[None, :, :]

    def ln(x):  # gamma = 1, beta = 0 at init
        mu = jnp.mean(x, -1, keepdims=True)
        var = jnp.mean(jnp.square(x - mu), -1, keepdims=True)
        return (x - mu) / jnp.sqrt(var + LN_EPS)

    def mha(q_in, kv_in, wq, wk, wv, wo, mask):
        def split(t):
            return t.reshape(B, -1, H, DH).transpose(0, 2, 1, 3)
        q, k, v = split(q_in @ wq), split(kv_in @ wk), split(kv_in @ wv)
        s = jnp.einsum("bhqd,bhkd->bhqk", q, k) * scale
        s = jnp.where(mask[:, None, :, :], NEG_INF, s)
        a = jax.nn.softmax(s, axis=-1)
        o = jnp.einsum("bhqk,bhkd->bhqd", a, v).transpose(0, 2, 1, 3).reshape(B, -1, D)
        return o @ wo

    def ffn(x, w1, w2):
        return jnp.maximum(x @ w1, 0.0) @ w2

    x = src_x
    for lyr in raw["enc"]:
        x = ln(x + mha(x, x, lyr["wq"], lyr["wk"], lyr["wv"], lyr["wo"], enc_mask))
        x = ln(x + ffn(x, lyr["ff_w1"], lyr["ff_w2"]))
    enc_out = x

    y = trg_x
    for lyr in raw["dec"]:
        y = ln(y + mha(y, y, lyr["wq"], lyr["wk"], lyr["wv"], lyr["wo"], dec_mask))
        y = ln(y + mha(y, enc_out, lyr["cq"], lyr["ck"], lyr["cv"], lyr["cwo"], enc_mask))
        y = ln(y + ffn(y, lyr["ff_w1"], lyr["ff_w2"]))
    return y @ raw["out_w"]                                     # [B, S, vocab]


# ----------------------------- main ------------------------------------------------------
if __name__ == "__main__":
    key = jax.random.PRNGKey(0)
    k_src, k_trg, k_param = jax.random.split(key, 3)

    # token ids in [1, vocab); pad the tail of some sequences to exercise the masks
    src = jax.random.randint(k_src, (B, S), 1, SRC_VOCAB, dtype=jnp.int32)
    trg = jax.random.randint(k_trg, (B, S), 1, TRG_VOCAB, dtype=jnp.int32)
    src = src.at[0, S - 2:].set(SRC_PAD_IDX)
    trg = trg.at[1, S - 3:].set(TRG_PAD_IDX)

    params, raw = init_params(k_param)

    fwd = jax.jit(transformer_forward)
    out_pad = fwd(src, trg, params)                 # [B, S, OUT_PAD] lane-padded logits
    jax.block_until_ready(out_pad)

    # consumer-side slice (would be fused into the loss in a real pipeline)
    logits = out_pad[..., :TRG_VOCAB]
    assert out_pad.shape == (B, S, OUT_PAD), out_pad.shape
    assert logits.shape == (B, S, TRG_VOCAB), logits.shape
    assert bool(jnp.all(jnp.isfinite(logits)))

    ref = reference_forward(src, trg, params, raw)
    err = float(jnp.max(jnp.abs(logits - ref)))
    assert err < 1e-2, f"max |pallas - reference| = {err}"

    print("KERNEL_OK")
</pallas_src>

<mosaic_0001>
module attributes {stable_mosaic.version = 11 : i64} {
  func.func @transformer_kernel(%arg0: memref<16x32xf32, #tpu.memory_space<vmem>>, %arg1: memref<16x32xf32, #tpu.memory_space<vmem>>, %arg2: memref<32x32xf32, #tpu.memory_space<vmem>>, %arg3: memref<32x32xf32, #tpu.memory_space<vmem>>, %arg4: memref<2x160x128xf32, #tpu.memory_space<vmem>>, %arg5: memref<2x8x128xf32, #tpu.memory_space<vmem>>, %arg6: memref<2x256x128xf32, #tpu.memory_space<vmem>>, %arg7: memref<2x16x128xf32, #tpu.memory_space<vmem>>, %arg8: memref<33x128xf32, #tpu.memory_space<vmem>>, %arg9: memref<16x128xf32, #tpu.memory_space<vmem>>) attributes {dimension_semantics = [], scalar_prefetch = 0 : i64, scratch_operands = 0 : i64, tpu.core_type = #tpu.core_type<tc>} {
    %c0 = arith.constant 0 : index
    %c0_0 = arith.constant 0 : index
    %0 = vector.load %arg2[%c0, %c0_0] : memref<32x32xf32, #tpu.memory_space<vmem>>, vector<32x32xf32>
    %c0_1 = arith.constant 0 : index
    %c0_2 = arith.constant 0 : index
    %1 = vector.load %arg3[%c0_1, %c0_2] : memref<32x32xf32, #tpu.memory_space<vmem>>, vector<32x32xf32>
    %c0_3 = arith.constant 0 : index
    %c0_4 = arith.constant 0 : index
    %2 = vector.load %arg0[%c0_3, %c0_4] : memref<16x32xf32, #tpu.memory_space<vmem>>, vector<16x32xf32>
    %c0_5 = arith.constant 0 : index
    %c0_6 = arith.constant 0 : index
    %c0_7 = arith.constant 0 : index
    %3 = vector.load %arg4[%c0_5, %c0_6, %c0_7] : memref<2x160x128xf32, #tpu.memory_space<vmem>>, vector<1x32x128xf32>
    %4 = vector.shape_cast %3 : vector<1x32x128xf32> to vector<32x128xf32>
    %cst = arith.constant dense<0.000000e+00> : vector<16x128xf32>
    %5 = tpu.matmul %2, %4, %cst {dimension_numbers = #tpu.dot_dimension_numbers<[1], [0], [0], [1], [0, 0, 1, 1], [], []>} : vector<16x32xf32>, vector<32x128xf32>, vector<16x128xf32> -> vector<16x128xf32>
    %c0_8 = arith.constant 0 : index
    %c0_9 = arith.constant 0 : index
    %c0_10 = arith.constant 0 : index
    %6 = vector.load %arg5[%c0_8, %c0_9, %c0_10] : memref<2x8x128xf32, #tpu.memory_space<vmem>>, vector<1x1x128xf32>
    %7 = vector.shape_cast %6 : vector<1x1x128xf32> to vector<1x128xf32>
    %8 = vector.broadcast %7 : vector<1x128xf32> to vector<16x128xf32>
    %9 = arith.addf %5, %8 : vector<16x128xf32>
    %10 = vector.extract_strided_slice %9 {offsets = [0, 0], sizes = [16, 32], strides = [1, 1]} : vector<16x128xf32> to vector<16x32xf32>
    %11 = vector.extract_strided_slice %9 {offsets = [0, 32], sizes = [16, 32], strides = [1, 1]} : vector<16x128xf32> to vector<16x32xf32>
    %12 = vector.extract_strided_slice %9 {offsets = [0, 64], sizes = [16, 32], strides = [1, 1]} : vector<16x128xf32> to vector<16x32xf32>
    %c0_11 = arith.constant 0 : index
    %c32 = arith.constant 32 : index
    %c0_12 = arith.constant 0 : index
    %13 = vector.load %arg4[%c0_11, %c32, %c0_12] : memref<2x160x128xf32, #tpu.memory_space<vmem>>, vector<1x32x32xf32>
    %14 = vector.shape_cast %13 : vector<1x32x32xf32> to vector<32x32xf32>
    %c0_13 = arith.constant 0 : index
    %c1 = arith.constant 1 : index
    %c0_14 = arith.constant 0 : index
    %15 = vector.load %arg5[%c0_13, %c1, %c0_14] : memref<2x8x128xf32, #tpu.memory_space<vmem>>, vector<1x1x32xf32>
    %16 = vector.shape_cast %15 : vector<1x1x32xf32> to vector<1x32xf32>
    %17 = vector.extract_strided_slice %10 {offsets = [0, 0], sizes = [16, 16], strides = [1, 1]} : vector<16x32xf32> to vector<16x16xf32>
    %18 = vector.extract_strided_slice %10 {offsets = [0, 16], sizes = [16, 16], strides = [1, 1]} : vector<16x32xf32> to vector<16x16xf32>
    %19 = tpu.concatenate %17, %18 in 0 : vector<16x16xf32>, vector<16x16xf32> -> vector<32x16xf32>
    %20 = vector.extract_strided_slice %11 {offsets = [0, 0], sizes = [16, 16], strides = [1, 1]} : vector<16x32xf32> to vector<16x16xf32>
    %21 = vector.extract_strided_slice %11 {offsets = [0, 16], sizes = [16, 16], strides = [1, 1]} : vector<16x32xf32> to vector<16x16xf32>
    %22 = tpu.concatenate %20, %21 in 0 : vector<16x16xf32>, vector<16x16xf32> -> vector<32x16xf32>
    %23 = vector.extract_strided_slice %12 {offsets = [0, 0], sizes = [16, 16], strides = [1, 1]} : vector<16x32xf32> to vector<16x16xf32>
    %24 = vector.extract_strided_slice %12 {offsets = [0, 16], sizes = [16, 16], strides = [1, 1]} : vector<16x32xf32> to vector<16x16xf32>
    %25 = tpu.concatenate %23, %24 in 0 : vector<16x16xf32>, vector<16x16xf32> -> vector<32x16xf32>
    %cst_15 = arith.constant dense<0.000000e+00> : vector<32x32xf32>
    %26 = tpu.matmul %19, %22, %cst_15 {dimension_numbers = #tpu.dot_dimension_numbers<[1], [1], [0], [0], [0, 0, 1, 0], [], []>} : vector<32x16xf32>, vector<32x16xf32>, vector<32x32xf32> -> vector<32x32xf32>
    %27 = arith.addf %26, %0 : vector<32x32xf32>
    %cst_16 = arith.constant dense<0xFF800000> : vector<32xf32>
    %28 = vector.multi_reduction <maximumf>, %27, %cst_16 [1] : vector<32x32xf32> to vector<32xf32>
    %29 = vector.shape_cast %28 : vector<32xf32> to vector<32x1xf32>
    %30 = vector.broadcast %29 : vector<32x1xf32> to vector<32x32xf32>
    %31 = arith.subf %27, %30 : vector<32x32xf32>
    %32 = math.exp %31 : vector<32x32xf32>
    %cst_17 = arith.constant dense<0.000000e+00> : vector<32xf32>
    %33 = vector.multi_reduction <add>, %32, %cst_17 [1] : vector<32x32xf32> to vector<32xf32>
    %34 = vector.shape_cast %33 : vector<32xf32> to vector<32x1xf32>
    %cst_18 = arith.constant dense<0.000000e+00> : vector<32x16xf32>
    %35 = tpu.matmul %32, %25, %cst_18 {dimension_numbers = #tpu.dot_dimension_numbers<[1], [0], [0], [1], [0, 0, 1, 1], [], []>} : vector<32x32xf32>, vector<32x16xf32>, vector<32x16xf32> -> vector<32x16xf32>
    %36 = tpu.reciprocal %34 : vector<32x1xf32> -> vector<32x1xf32>
    %37 = vector.broadcast %36 : vector<32x1xf32> to vector<32x16xf32>
    %38 = arith.mulf %35, %37 : vector<32x16xf32>
    %39 = vector.extract_strided_slice %38 {offsets = [0, 0], sizes = [16, 16], strides = [1, 1]} : vector<32x16xf32> to vector<16x16xf32>
    %40 = vector.extract_strided_slice %38 {offsets = [16, 0], sizes = [16, 16], strides = [1, 1]} : vector<32x16xf32> to vector<16x16xf32>
    %41 = tpu.concatenate %39, %40 in 1 : vector<16x16xf32>, vector<16x16xf32> -> vector<16x32xf32>
    %cst_19 = arith.constant dense<0.000000e+00> : vector<16x32xf32>
    %42 = tpu.matmul %41, %14, %cst_19 {dimension_numbers = #tpu.dot_dimension_numbers<[1], [0], [0], [1], [0, 0, 1, 1], [], []>} : vector<16x32xf32>, vector<32x32xf32>, vector<16x32xf32> -> vector<16x32xf32>
    %43 = vector.broadcast %16 : vector<1x32xf32> to vector<16x32xf32>
    %44 = arith.addf %42, %43 : vector<16x32xf32>
    %45 = arith.addf %2, %44 : vector<16x32xf32>
    %c0_20 = arith.constant 0 : index
    %c2 = arith.constant 2 : index
    %c0_21 = arith.constant 0 : index
    %46 = vector.load %arg5[%c0_20, %c2, %c0_21] : memref<2x8x128xf32, #tpu.memory_space<vmem>>, vector<1x1x32xf32>
    %47 = vector.shape_cast %46 : vector<1x1x32xf32> to vector<1x32xf32>
    %c0_22 = arith.constant 0 : index
    %c3 = arith.constant 3 : index
    %c0_23 = arith.constant 0 : index
    %48 = vector.load %arg5[%c0_22, %c3, %c0_23] : memref<2x8x128xf32, #tpu.memory_space<vmem>>, vector<1x1x32xf32>
    %49 = vector.shape_cast %48 : vector<1x1x32xf32> to vector<1x32xf32>
    %cst_24 = arith.constant dense<0.000000e+00> : vector<16xf32>
    %50 = vector.multi_reduction <add>, %45, %cst_24 [1] : vector<16x32xf32> to vector<16xf32>
    %51 = vector.shape_cast %50 : vector<16xf32> to vector<16x1xf32>
    %cst_25 = arith.constant 3.200000e+01 : f32
    %52 = vector.broadcast %cst_25 : f32 to vector<16x1xf32>
    %53 = arith.divf %51, %52 : vector<16x1xf32>
    %54 = vector.broadcast %53 : vector<16x1xf32> to vector<16x32xf32>
    %55 = arith.subf %45, %54 : vector<16x32xf32>
    %56 = arith.mulf %55, %55 : vector<16x32xf32>
    %cst_26 = arith.constant dense<0.000000e+00> : vector<16xf32>
    %57 = vector.multi_reduction <add>, %56, %cst_26 [1] : vector<16x32xf32> to vector<16xf32>
    %58 = vector.shape_cast %57 : vector<16xf32> to vector<16x1xf32>
    %cst_27 = arith.constant 3.200000e+01 : f32
    %59 = vector.broadcast %cst_27 : f32 to vector<16x1xf32>
    %60 = arith.divf %58, %59 : vector<16x1xf32>
    %61 = vector.broadcast %53 : vector<16x1xf32> to vector<16x32xf32>
    %62 = arith.subf %45, %61 : vector<16x32xf32>
    %cst_28 = arith.constant 9.99999974E-6 : f32
    %63 = vector.broadcast %cst_28 : f32 to vector<16x1xf32>
    %64 = arith.addf %60, %63 : vector<16x1xf32>
    %65 = math.rsqrt %64 : vector<16x1xf32>
    %66 = vector.broadcast %65 : vector<16x1xf32> to vector<16x32xf32>
    %67 = arith.mulf %62, %66 : vector<16x32xf32>
    %68 = vector.broadcast %47 : vector<1x32xf32> to vector<16x32xf32>
    %69 = arith.mulf %67, %68 : vector<16x32xf32>
    %70 = vector.broadcast %49 : vector<1x32xf32> to vector<16x32xf32>
    %71 = arith.addf %69, %70 : vector<16x32xf32>
    %c0_29 = arith.constant 0 : index
    %c64 = arith.constant 64 : index
    %c0_30 = arith.constant 0 : index
    %72 = vector.load %arg4[%c0_29, %c64, %c0_30] : memref<2x160x128xf32, #tpu.memory_space<vmem>>, vector<1x32x64xf32>
    %73 = vector.shape_cast %72 : vector<1x32x64xf32> to vector<32x64xf32>
    %c0_31 = arith.constant 0 : index
    %c4 = arith.constant 4 : index
    %c0_32 = arith.constant 0 : index
    %74 = vector.load %arg5[%c0_31, %c4, %c0_32] : memref<2x8x128xf32, #tpu.memory_space<vmem>>, vector<1x1x64xf32>
    %75 = vector.shape_cast %74 : vector<1x1x64xf32> to vector<1x64xf32>
    %c0_33 = arith.constant 0 : index
    %c96 = arith.constant 96 : index
    %c0_34 = arith.constant 0 : index
    %76 = vector.load %arg4[%c0_33, %c96, %c0_34] : memref<2x160x128xf32, #tpu.memory_space<vmem>>, vector<1x64x32xf32>
    %77 = vector.shape_cast %76 : vector<1x64x32xf32> to vector<64x32xf32>
    %c0_35 = arith.constant 0 : index
    %c5 = arith.constant 5 : index
    %c0_36 = arith.constant 0 : index
    %78 = vector.load %arg5[%c0_35, %c5, %c0_36] : memref<2x8x128xf32, #tpu.memory_space<vmem>>, vector<1x1x32xf32>
    %79 = vector.shape_cast %78 : vector<1x1x32xf32> to vector<1x32xf32>
    %cst_37 = arith.constant dense<0.000000e+00> : vector<16x64xf32>
    %80 = tpu.matmul %71, %73, %cst_37 {dimension_numbers = #tpu.dot_dimension_numbers<[1], [0], [0], [1], [0, 0, 1, 1], [], []>} : vector<16x32xf32>, vector<32x64xf32>, vector<16x64xf32> -> vector<16x64xf32>
    %81 = vector.broadcast %75 : vector<1x64xf32> to vector<16x64xf32>
    %82 = arith.addf %80, %81 : vector<16x64xf32>
    %cst_38 = arith.constant 0.000000e+00 : f32
    %83 = vector.broadcast %cst_38 : f32 to vector<16x64xf32>
    %84 = arith.maximumf %82, %83 : vector<16x64xf32>
    %cst_39 = arith.constant dense<0.000000e+00> : vector<16x32xf32>
    %85 = tpu.matmul %84, %77, %cst_39 {dimension_numbers = #tpu.dot_dimension_numbers<[1], [0], [0], [1], [0, 0, 1, 1], [], []>} : vector<16x64xf32>, vector<64x32xf32>, vector<16x32xf32> -> vector<16x32xf32>
    %86 = vector.broadcast %79 : vector<1x32xf32> to vector<16x32xf32>
    %87 = arith.addf %85, %86 : vector<16x32xf32>
    %88 = arith.addf %71, %87 : vector<16x32xf32>
    %c0_40 = arith.constant 0 : index
    %c6 = arith.constant 6 : index
    %c0_41 = arith.constant 0 : index
    %89 = vector.load %arg5[%c0_40, %c6, %c0_41] : memref<2x8x128xf32, #tpu.memory_space<vmem>>, vector<1x1x32xf32>
    %90 = vector.shape_cast %89 : vector<1x1x32xf32> to vector<1x32xf32>
    %c0_42 = arith.constant 0 : index
    %c7 = arith.constant 7 : index
    %c0_43 = arith.constant 0 : index
    %91 = vector.load %arg5[%c0_42, %c7, %c0_43] : memref<2x8x128xf32, #tpu.memory_space<vmem>>, vector<1x1x32xf32>
    %92 = vector.shape_cast %91 : vector<1x1x32xf32> to vector<1x32xf32>
    %cst_44 = arith.constant dense<0.000000e+00> : vector<16xf32>
    %93 = vector.multi_reduction <add>, %88, %cst_44 [1] : vector<16x32xf32> to vector<16xf32>
    %94 = vector.shape_cast %93 : vector<16xf32> to vector<16x1xf32>
    %cst_45 = arith.constant 3.200000e+01 : f32
    %95 = vector.broadcast %cst_45 : f32 to vector<16x1xf32>
    %96 = arith.divf %94, %95 : vector<16x1xf32>
    %97 = vector.broadcast %96 : vector<16x1xf32> to vector<16x32xf32>
    %98 = arith.subf %88, %97 : vector<16x32xf32>
    %99 = arith.mulf %98, %98 : vector<16x32xf32>
    %cst_46 = arith.constant dense<0.000000e+00> : vector<16xf32>
    %100 = vector.multi_reduction <add>, %99, %cst_46 [1] : vector<16x32xf32> to vector<16xf32>
    %101 = vector.shape_cast %100 : vector<16xf32> to vector<16x1xf32>
    %cst_47 = arith.constant 3.200000e+01 : f32
    %102 = vector.broadcast %cst_47 : f32 to vector<16x1xf32>
    %103 = arith.divf %101, %102 : vector<16x1xf32>
    %104 = vector.broadcast %96 : vector<16x1xf32> to vector<16x32xf32>
    %105 = arith.subf %88, %104 : vector<16x32xf32>
    %cst_48 = arith.constant 9.99999974E-6 : f32
    %106 = vector.broadcast %cst_48 : f32 to vector<16x1xf32>
    %107 = arith.addf %103, %106 : vector<16x1xf32>
    %108 = math.rsqrt %107 : vector<16x1xf32>
    %109 = vector.broadcast %108 : vector<16x1xf32> to vector<16x32xf32>
    %110 = arith.mulf %105, %109 : vector<16x32xf32>
    %111 = vector.broadcast %90 : vector<1x32xf32> to vector<16x32xf32>
    %112 = arith.mulf %110, %111 : vector<16x32xf32>
    %113 = vector.broadcast %92 : vector<1x32xf32> to vector<16x32xf32>
    %114 = arith.addf %112, %113 : vector<16x32xf32>
    %c1_49 = arith.constant 1 : index
    %c0_50 = arith.constant 0 : index
    %c0_51 = arith.constant 0 : index
    %115 = vector.load %arg4[%c1_49, %c0_50, %c0_51] : memref<2x160x128xf32, #tpu.memory_space<vmem>>, vector<1x32x128xf32>
    %116 = vector.shape_cast %115 : vector<1x32x128xf32> to vector<32x128xf32>
    %cst_52 = arith.constant dense<0.000000e+00> : vector<16x128xf32>
    %117 = tpu.matmul %114, %116, %cst_52 {dimension_numbers = #tpu.dot_dimension_numbers<[1], [0], [0], [1], [0, 0, 1, 1], [], []>} : vector<16x32xf32>, vector<32x128xf32>, vector<16x128xf32> -> vector<16x128xf32>
    %c1_53 = arith.constant 1 : index
    %c0_54 = arith.constant 0 : index
    %c0_55 = arith.constant 0 : index
    %118 = vector.load %arg5[%c1_53, %c0_54, %c0_55] : memref<2x8x128xf32, #tpu.memory_space<vmem>>, vector<1x1x128xf32>
    %119 = vector.shape_cast %118 : vector<1x1x128xf32> to vector<1x128xf32>
    %120 = vector.broadcast %119 : vector<1x128xf32> to vector<16x128xf32>
    %121 = arith.addf %117, %120 : vector<16x128xf32>
    %122 = vector.extract_strided_slice %121 {offsets = [0, 0], sizes = [16, 32], strides = [1, 1]} : vector<16x128xf32> to vector<16x32xf32>
    %123 = vector.extract_strided_slice %121 {offsets = [0, 32], sizes = [16, 32], strides = [1, 1]} : vector<16x128xf32> to vector<16x32xf32>
    %124 = vector.extract_strided_slice %121 {offsets = [0, 64], sizes = [16, 32], strides = [1, 1]} : vector<16x128xf32> to vector<16x32xf32>
    %c1_56 = arith.constant 1 : index
    %c32_57 = arith.constant 32 : index
    %c0_58 = arith.constant 0 : index
    %125 = vector.load %arg4[%c1_56, %c32_57, %c0_58] : memref<2x160x128xf32, #tpu.memory_space<vmem>>, vector<1x32x32xf32>
    %126 = vector.shape_cast %125 : vector<1x32x32xf32> to vector<32x32xf32>
    %c1_59 = arith.constant 1 : index
    %c1_60 = arith.constant 1 : index
    %c0_61 = arith.constant 0 : index
    %127 = vector.load %arg5[%c1_59, %c1_60, %c0_61] : memref<2x8x128xf32, #tpu.memory_space<vmem>>, vector<1x1x32xf32>
    %128 = vector.shape_cast %127 : vector<1x1x32xf32> to vector<1x32xf32>
    %129 = vector.extract_strided_slice %122 {offsets = [0, 0], sizes = [16, 16], strides = [1, 1]} : vector<16x32xf32> to vector<16x16xf32>
    %130 = vector.extract_strided_slice %122 {offsets = [0, 16], sizes = [16, 16], strides = [1, 1]} : vector<16x32xf32> to vector<16x16xf32>
    %131 = tpu.concatenate %129, %130 in 0 : vector<16x16xf32>, vector<16x16xf32> -> vector<32x16xf32>
    %132 = vector.extract_strided_slice %123 {offsets = [0, 0], sizes = [16, 16], strides = [1, 1]} : vector<16x32xf32> to vector<16x16xf32>
    %133 = vector.extract_strided_slice %123 {offsets = [0, 16], sizes = [16, 16], strides = [1, 1]} : vector<16x32xf32> to vector<16x16xf32>
    %134 = tpu.concatenate %132, %133 in 0 : vector<16x16xf32>, vector<16x16xf32> -> vector<32x16xf32>
    %135 = vector.extract_strided_slice %124 {offsets = [0, 0], sizes = [16, 16], strides = [1, 1]} : vector<16x32xf32> to vector<16x16xf32>
    %136 = vector.extract_strided_slice %124 {offsets = [0, 16], sizes = [16, 16], strides = [1, 1]} : vector<16x32xf32> to vector<16x16xf32>
    %137 = tpu.concatenate %135, %136 in 0 : vector<16x16xf32>, vector<16x16xf32> -> vector<32x16xf32>
    %cst_62 = arith.constant dense<0.000000e+00> : vector<32x32xf32>
    %138 = tpu.matmul %131, %134, %cst_62 {dimension_numbers = #tpu.dot_dimension_numbers<[1], [1], [0], [0], [0, 0, 1, 0], [], []>} : vector<32x16xf32>, vector<32x16xf32>, vector<32x32xf32> -> vector<32x32xf32>
    %139 = arith.addf %138, %0 : vector<32x32xf32>
    %cst_63 = arith.constant dense<0xFF800000> : vector<32xf32>
    %140 = vector.multi_reduction <maximumf>, %139, %cst_63 [1] : vector<32x32xf32> to vector<32xf32>
    %141 = vector.shape_cast %140 : vector<32xf32> to vector<32x1xf32>
    %142 = vector.broadcast %141 : vector<32x1xf32> to vector<32x32xf32>
    %143 = arith.subf %139, %142 : vector<32x32xf32>
    %144 = math.exp %143 : vector<32x32xf32>
    %cst_64 = arith.constant dense<0.000000e+00> : vector<32xf32>
    %145 = vector.multi_reduction <add>, %144, %cst_64 [1] : vector<32x32xf32> to vector<32xf32>
    %146 = vector.shape_cast %145 : vector<32xf32> to vector<32x1xf32>
    %cst_65 = arith.constant dense<0.000000e+00> : vector<32x16xf32>
    %147 = tpu.matmul %144, %137, %cst_65 {dimension_numbers = #tpu.dot_dimension_numbers<[1], [0], [0], [1], [0, 0, 1, 1], [], []>} : vector<32x32xf32>, vector<32x16xf32>, vector<32x16xf32> -> vector<32x16xf32>
    %148 = tpu.reciprocal %146 : vector<32x1xf32> -> vector<32x1xf32>
    %149 = vector.broadcast %148 : vector<32x1xf32> to vector<32x16xf32>
    %150 = arith.mulf %147, %149 : vector<32x16xf32>
    %151 = vector.extract_strided_slice %150 {offsets = [0, 0], sizes = [16, 16], strides = [1, 1]} : vector<32x16xf32> to vector<16x16xf32>
    %152 = vector.extract_strided_slice %150 {offsets = [16, 0], sizes = [16, 16], strides = [1, 1]} : vector<32x16xf32> to vector<16x16xf32>
    %153 = tpu.concatenate %151, %152 in 1 : vector<16x16xf32>, vector<16x16xf32> -> vector<16x32xf32>
    %cst_66 = arith.constant dense<0.000000e+00> : vector<16x32xf32>
    %154 = tpu.matmul %153, %126, %cst_66 {dimension_numbers = #tpu.dot_dimension_numbers<[1], [0], [0], [1], [0, 0, 1, 1], [], []>} : vector<16x32xf32>, vector<32x32xf32>, vector<16x32xf32> -> vector<16x32xf32>
    %155 = vector.broadcast %128 : vector<1x32xf32> to vector<16x32xf32>
    %156 = arith.addf %154, %155 : vector<16x32xf32>
    %157 = arith.addf %114, %156 : vector<16x32xf32>
    %c1_67 = arith.constant 1 : index
    %c2_68 = arith.constant 2 : index
    %c0_69 = arith.constant 0 : index
    %158 = vector.load %arg5[%c1_67, %c2_68, %c0_69] : memref<2x8x128xf32, #tpu.memory_space<vmem>>, vector<1x1x32xf32>
    %159 = vector.shape_cast %158 : vector<1x1x32xf32> to vector<1x32xf32>
    %c1_70 = arith.constant 1 : index
    %c3_71 = arith.constant 3 : index
    %c0_72 = arith.constant 0 : index
    %160 = vector.load %arg5[%c1_70, %c3_71, %c0_72] : memref<2x8x128xf32, #tpu.memory_space<vmem>>, vector<1x1x32xf32>
    %161 = vector.shape_cast %160 : vector<1x1x32xf32> to vector<1x32xf32>
    %cst_73 = arith.constant dense<0.000000e+00> : vector<16xf32>
    %162 = vector.multi_reduction <add>, %157, %cst_73 [1] : vector<16x32xf32> to vector<16xf32>
    %163 = vector.shape_cast %162 : vector<16xf32> to vector<16x1xf32>
    %cst_74 = arith.constant 3.200000e+01 : f32
    %164 = vector.broadcast %cst_74 : f32 to vector<16x1xf32>
    %165 = arith.divf %163, %164 : vector<16x1xf32>
    %166 = vector.broadcast %165 : vector<16x1xf32> to vector<16x32xf32>
    %167 = arith.subf %157, %166 : vector<16x32xf32>
    %168 = arith.mulf %167, %167 : vector<16x32xf32>
    %cst_75 = arith.constant dense<0.000000e+00> : vector<16xf32>
    %169 = vector.multi_reduction <add>, %168, %cst_75 [1] : vector<16x32xf32> to vector<16xf32>
    %170 = vector.shape_cast %169 : vector<16xf32> to vector<16x1xf32>
    %cst_76 = arith.constant 3.200000e+01 : f32
    %171 = vector.broadcast %cst_76 : f32 to vector<16x1xf32>
    %172 = arith.divf %170, %171 : vector<16x1xf32>
    %173 = vector.broadcast %165 : vector<16x1xf32> to vector<16x32xf32>
    %174 = arith.subf %157, %173 : vector<16x32xf32>
    %cst_77 = arith.constant 9.99999974E-6 : f32
    %175 = vector.broadcast %cst_77 : f32 to vector<16x1xf32>
    %176 = arith.addf %172, %175 : vector<16x1xf32>
    %177 = math.rsqrt %176 : vector<16x1xf32>
    %178 = vector.broadcast %177 : vector<16x1xf32> to vector<16x32xf32>
    %179 = arith.mulf %174, %178 : vector<16x32xf32>
    %180 = vector.broadcast %159 : vector<1x32xf32> to vector<16x32xf32>
    %181 = arith.mulf %179, %180 : vector<16x32xf32>
    %182 = vector.broadcast %161 : vector<1x32xf32> to vector<16x32xf32>
    %183 = arith.addf %181, %182 : vector<16x32xf32>
    %c1_78 = arith.constant 1 : index
    %c64_79 = arith.constant 64 : index
    %c0_80 = arith.constant 0 : index
    %184 = vector.load %arg4[%c1_78, %c64_79, %c0_80] : memref<2x160x128xf32, #tpu.memory_space<vmem>>, vector<1x32x64xf32>
    %185 = vector.shape_cast %184 : vector<1x32x64xf32> to vector<32x64xf32>
    %c1_81 = arith.constant 1 : index
    %c4_82 = arith.constant 4 : index
    %c0_83 = arith.constant 0 : index
    %186 = vector.load %arg5[%c1_81, %c4_82, %c0_83] : memref<2x8x128xf32, #tpu.memory_space<vmem>>, vector<1x1x64xf32>
    %187 = vector.shape_cast %186 : vector<1x1x64xf32> to vector<1x64xf32>
    %c1_84 = arith.constant 1 : index
    %c96_85 = arith.constant 96 : index
    %c0_86 = arith.constant 0 : index
    %188 = vector.load %arg4[%c1_84, %c96_85, %c0_86] : memref<2x160x128xf32, #tpu.memory_space<vmem>>, vector<1x64x32xf32>
    %189 = vector.shape_cast %188 : vector<1x64x32xf32> to vector<64x32xf32>
    %c1_87 = arith.constant 1 : index
    %c5_88 = arith.constant 5 : index
    %c0_89 = arith.constant 0 : index
    %190 = vector.load %arg5[%c1_87, %c5_88, %c0_89] : memref<2x8x128xf32, #tpu.memory_space<vmem>>, vector<1x1x32xf32>
    %191 = vector.shape_cast %190 : vector<1x1x32xf32> to vector<1x32xf32>
    %cst_90 = arith.constant dense<0.000000e+00> : vector<16x64xf32>
    %192 = tpu.matmul %183, %185, %cst_90 {dimension_numbers = #tpu.dot_dimension_numbers<[1], [0], [0], [1], [0, 0, 1, 1], [], []>} : vector<16x32xf32>, vector<32x64xf32>, vector<16x64xf32> -> vector<16x64xf32>
    %193 = vector.broadcast %187 : vector<1x64xf32> to vector<16x64xf32>
    %194 = arith.addf %192, %193 : vector<16x64xf32>
    %cst_91 = arith.constant 0.000000e+00 : f32
    %195 = vector.broadcast %cst_91 : f32 to vector<16x64xf32>
    %196 = arith.maximumf %194, %195 : vector<16x64xf32>
    %cst_92 = arith.constant dense<0.000000e+00> : vector<16x32xf32>
    %197 = tpu.matmul %196, %189, %cst_92 {dimension_numbers = #tpu.dot_dimension_numbers<[1], [0], [0], [1], [0, 0, 1, 1], [], []>} : vector<16x64xf32>, vector<64x32xf32>, vector<16x32xf32> -> vector<16x32xf32>
    %198 = vector.broadcast %191 : vector<1x32xf32> to vector<16x32xf32>
    %199 = arith.addf %197, %198 : vector<16x32xf32>
    %200 = arith.addf %183, %199 : vector<16x32xf32>
    %c1_93 = arith.constant 1 : index
    %c6_94 = arith.constant 6 : index
    %c0_95 = arith.constant 0 : index
    %201 = vector.load %arg5[%c1_93, %c6_94, %c0_95] : memref<2x8x128xf32, #tpu.memory_space<vmem>>, vector<1x1x32xf32>
    %202 = vector.shape_cast %201 : vector<1x1x32xf32> to vector<1x32xf32>
    %c1_96 = arith.constant 1 : index
    %c7_97 = arith.constant 7 : index
    %c0_98 = arith.constant 0 : index
    %203 = vector.load %arg5[%c1_96, %c7_97, %c0_98] : memref<2x8x128xf32, #tpu.memory_space<vmem>>, vector<1x1x32xf32>
    %204 = vector.shape_cast %203 : vector<1x1x32xf32> to vector<1x32xf32>
    %cst_99 = arith.constant dense<0.000000e+00> : vector<16xf32>
    %205 = vector.multi_reduction <add>, %200, %cst_99 [1] : vector<16x32xf32> to vector<16xf32>
    %206 = vector.shape_cast %205 : vector<16xf32> to vector<16x1xf32>
    %cst_100 = arith.constant 3.200000e+01 : f32
    %207 = vector.broadcast %cst_100 : f32 to vector<16x1xf32>
    %208 = arith.divf %206, %207 : vector<16x1xf32>
    %209 = vector.broadcast %208 : vector<16x1xf32> to vector<16x32xf32>
    %210 = arith.subf %200, %209 : vector<16x32xf32>
    %211 = arith.mulf %210, %210 : vector<16x32xf32>
    %cst_101 = arith.constant dense<0.000000e+00> : vector<16xf32>
    %212 = vector.multi_reduction <add>, %211, %cst_101 [1] : vector<16x32xf32> to vector<16xf32>
    %213 = vector.shape_cast %212 : vector<16xf32> to vector<16x1xf32>
    %cst_102 = arith.constant 3.200000e+01 : f32
    %214 = vector.broadcast %cst_102 : f32 to vector<16x1xf32>
    %215 = arith.divf %213, %214 : vector<16x1xf32>
    %216 = vector.broadcast %208 : vector<16x1xf32> to vector<16x32xf32>
    %217 = arith.subf %200, %216 : vector<16x32xf32>
    %cst_103 = arith.constant 9.99999974E-6 : f32
    %218 = vector.broadcast %cst_103 : f32 to vector<16x1xf32>
    %219 = arith.addf %215, %218 : vector<16x1xf32>
    %220 = math.rsqrt %219 : vector<16x1xf32>
    %221 = vector.broadcast %220 : vector<16x1xf32> to vector<16x32xf32>
    %222 = arith.mulf %217, %221 : vector<16x32xf32>
    %223 = vector.broadcast %202 : vector<1x32xf32> to vector<16x32xf32>
    %224 = arith.mulf %222, %223 : vector<16x32xf32>
    %225 = vector.broadcast %204 : vector<1x32xf32> to vector<16x32xf32>
    %226 = arith.addf %224, %225 : vector<16x32xf32>
    %c0_104 = arith.constant 0 : index
    %c0_105 = arith.constant 0 : index
    %227 = vector.load %arg1[%c0_104, %c0_105] : memref<16x32xf32, #tpu.memory_space<vmem>>, vector<16x32xf32>
    %c0_106 = arith.constant 0 : index
    %c0_107 = arith.constant 0 : index
    %c0_108 = arith.constant 0 : index
    %228 = vector.load %arg6[%c0_106, %c0_107, %c0_108] : memref<2x256x128xf32, #tpu.memory_space<vmem>>, vector<1x32x128xf32>
    %229 = vector.shape_cast %228 : vector<1x32x128xf32> to vector<32x128xf32>
    %cst_109 = arith.constant dense<0.000000e+00> : vector<16x128xf32>
    %230 = tpu.matmul %227, %229, %cst_109 {dimension_numbers = #tpu.dot_dimension_numbers<[1], [0], [0], [1], [0, 0, 1, 1], [], []>} : vector<16x32xf32>, vector<32x128xf32>, vector<16x128xf32> -> vector<16x128xf32>
    %c0_110 = arith.constant 0 : index
    %c0_111 = arith.constant 0 : index
    %c0_112 = arith.constant 0 : index
    %231 = vector.load %arg7[%c0_110, %c0_111, %c0_112] : memref<2x16x128xf32, #tpu.memory_space<vmem>>, vector<1x1x128xf32>
    %232 = vector.shape_cast %231 : vector<1x1x128xf32> to vector<1x128xf32>
    %233 = vector.broadcast %232 : vector<1x128xf32> to vector<16x128xf32>
    %234 = arith.addf %230, %233 : vector<16x128xf32>
    %235 = vector.extract_strided_slice %234 {offsets = [0, 0], sizes = [16, 32], strides = [1, 1]} : vector<16x128xf32> to vector<16x32xf32>
    %236 = vector.extract_strided_slice %234 {offsets = [0, 32], sizes = [16, 32], strides = [1, 1]} : vector<16x128xf32> to vector<16x32xf32>
    %237 = vector.extract_strided_slice %234 {offsets = [0, 64], sizes = [16, 32], strides = [1, 1]} : vector<16x128xf32> to vector<16x32xf32>
    %c0_113 = arith.constant 0 : index
    %c32_114 = arith.constant 32 : index
    %c0_115 = arith.constant 0 : index
    %238 = vector.load %arg6[%c0_113, %c32_114, %c0_115] : memref<2x256x128xf32, #tpu.memory_space<vmem>>, vector<1x32x32xf32>
    %239 = vector.shape_cast %238 : vector<1x32x32xf32> to vector<32x32xf32>
    %c0_116 = arith.constant 0 : index
    %c1_117 = arith.constant 1 : index
    %c0_118 = arith.constant 0 : index
    %240 = vector.load %arg7[%c0_116, %c1_117, %c0_118] : memref<2x16x128xf32, #tpu.memory_space<vmem>>, vector<1x1x32xf32>
    %241 = vector.shape_cast %240 : vector<1x1x32xf32> to vector<1x32xf32>
    %242 = vector.extract_strided_slice %235 {offsets = [0, 0], sizes = [16, 16], strides = [1, 1]} : vector<16x32xf32> to vector<16x16xf32>
    %243 = vector.extract_strided_slice %235 {offsets = [0, 16], sizes = [16, 16], strides = [1, 1]} : vector<16x32xf32> to vector<16x16xf32>
    %244 = tpu.concatenate %242, %243 in 0 : vector<16x16xf32>, vector<16x16xf32> -> vector<32x16xf32>
    %245 = vector.extract_strided_slice %236 {offsets = [0, 0], sizes = [16, 16], strides = [1, 1]} : vector<16x32xf32> to vector<16x16xf32>
    %246 = vector.extract_strided_slice %236 {offsets = [0, 16], sizes = [16, 16], strides = [1, 1]} : vector<16x32xf32> to vector<16x16xf32>
    %247 = tpu.concatenate %245, %246 in 0 : vector<16x16xf32>, vector<16x16xf32> -> vector<32x16xf32>
    %248 = vector.extract_strided_slice %237 {offsets = [0, 0], sizes = [16, 16], strides = [1, 1]} : vector<16x32xf32> to vector<16x16xf32>
    %249 = vector.extract_strided_slice %237 {offsets = [0, 16], sizes = [16, 16], strides = [1, 1]} : vector<16x32xf32> to vector<16x16xf32>
    %250 = tpu.concatenate %248, %249 in 0 : vector<16x16xf32>, vector<16x16xf32> -> vector<32x16xf32>
    %cst_119 = arith.constant dense<0.000000e+00> : vector<32x32xf32>
    %251 = tpu.matmul %244, %247, %cst_119 {dimension_numbers = #tpu.dot_dimension_numbers<[1], [1], [0], [0], [0, 0, 1, 0], [], []>} : vector<32x16xf32>, vector<32x16xf32>, vector<32x32xf32> -> vector<32x32xf32>
    %252 = arith.addf %251, %1 : vector<32x32xf32>
    %cst_120 = arith.constant dense<0xFF800000> : vector<32xf32>
    %253 = vector.multi_reduction <maximumf>, %252, %cst_120 [1] : vector<32x32xf32> to vector<32xf32>
    %254 = vector.shape_cast %253 : vector<32xf32> to vector<32x1xf32>
    %255 = vector.broadcast %254 : vector<32x1xf32> to vector<32x32xf32>
    %256 = arith.subf %252, %255 : vector<32x32xf32>
    %257 = math.exp %256 : vector<32x32xf32>
    %cst_121 = arith.constant dense<0.000000e+00> : vector<32xf32>
    %258 = vector.multi_reduction <add>, %257, %cst_121 [1] : vector<32x32xf32> to vector<32xf32>
    %259 = vector.shape_cast %258 : vector<32xf32> to vector<32x1xf32>
    %cst_122 = arith.constant dense<0.000000e+00> : vector<32x16xf32>
    %260 = tpu.matmul %257, %250, %cst_122 {dimension_numbers = #tpu.dot_dimension_numbers<[1], [0], [0], [1], [0, 0, 1, 1], [], []>} : vector<32x32xf32>, vector<32x16xf32>, vector<32x16xf32> -> vector<32x16xf32>
    %261 = tpu.reciprocal %259 : vector<32x1xf32> -> vector<32x1xf32>
    %262 = vector.broadcast %261 : vector<32x1xf32> to vector<32x16xf32>
    %263 = arith.mulf %260, %262 : vector<32x16xf32>
    %264 = vector.extract_strided_slice %263 {offsets = [0, 0], sizes = [16, 16], strides = [1, 1]} : vector<32x16xf32> to vector<16x16xf32>
    %265 = vector.extract_strided_slice %263 {offsets = [16, 0], sizes = [16, 16], strides = [1, 1]} : vector<32x16xf32> to vector<16x16xf32>
    %266 = tpu.concatenate %264, %265 in 1 : vector<16x16xf32>, vector<16x16xf32> -> vector<16x32xf32>
    %cst_123 = arith.constant dense<0.000000e+00> : vector<16x32xf32>
    %267 = tpu.matmul %266, %239, %cst_123 {dimension_numbers = #tpu.dot_dimension_numbers<[1], [0], [0], [1], [0, 0, 1, 1], [], []>} : vector<16x32xf32>, vector<32x32xf32>, vector<16x32xf32> -> vector<16x32xf32>
    %268 = vector.broadcast %241 : vector<1x32xf32> to vector<16x32xf32>
    %269 = arith.addf %267, %268 : vector<16x32xf32>
    %270 = arith.addf %227, %269 : vector<16x32xf32>
    %c0_124 = arith.constant 0 : index
    %c2_125 = arith.constant 2 : index
    %c0_126 = arith.constant 0 : index
    %271 = vector.load %arg7[%c0_124, %c2_125, %c0_126] : memref<2x16x128xf32, #tpu.memory_space<vmem>>, vector<1x1x32xf32>
    %272 = vector.shape_cast %271 : vector<1x1x32xf32> to vector<1x32xf32>
    %c0_127 = arith.constant 0 : index
    %c3_128 = arith.constant 3 : index
    %c0_129 = arith.constant 0 : index
    %273 = vector.load %arg7[%c0_127, %c3_128, %c0_129] : memref<2x16x128xf32, #tpu.memory_space<vmem>>, vector<1x1x32xf32>
    %274 = vector.shape_cast %273 : vector<1x1x32xf32> to vector<1x32xf32>
    %cst_130 = arith.constant dense<0.000000e+00> : vector<16xf32>
    %275 = vector.multi_reduction <add>, %270, %cst_130 [1] : vector<16x32xf32> to vector<16xf32>
    %276 = vector.shape_cast %275 : vector<16xf32> to vector<16x1xf32>
    %cst_131 = arith.constant 3.200000e+01 : f32
    %277 = vector.broadcast %cst_131 : f32 to vector<16x1xf32>
    %278 = arith.divf %276, %277 : vector<16x1xf32>
    %279 = vector.broadcast %278 : vector<16x1xf32> to vector<16x32xf32>
    %280 = arith.subf %270, %279 : vector<16x32xf32>
    %281 = arith.mulf %280, %280 : vector<16x32xf32>
    %cst_132 = arith.constant dense<0.000000e+00> : vector<16xf32>
    %282 = vector.multi_reduction <add>, %281, %cst_132 [1] : vector<16x32xf32> to vector<16xf32>
    %283 = vector.shape_cast %282 : vector<16xf32> to vector<16x1xf32>
    %cst_133 = arith.constant 3.200000e+01 : f32
    %284 = vector.broadcast %cst_133 : f32 to vector<16x1xf32>
    %285 = arith.divf %283, %284 : vector<16x1xf32>
    %286 = vector.broadcast %278 : vector<16x1xf32> to vector<16x32xf32>
    %287 = arith.subf %270, %286 : vector<16x32xf32>
    %cst_134 = arith.constant 9.99999974E-6 : f32
    %288 = vector.broadcast %cst_134 : f32 to vector<16x1xf32>
    %289 = arith.addf %285, %288 : vector<16x1xf32>
    %290 = math.rsqrt %289 : vector<16x1xf32>
    %291 = vector.broadcast %290 : vector<16x1xf32> to vector<16x32xf32>
    %292 = arith.mulf %287, %291 : vector<16x32xf32>
    %293 = vector.broadcast %272 : vector<1x32xf32> to vector<16x32xf32>
    %294 = arith.mulf %292, %293 : vector<16x32xf32>
    %295 = vector.broadcast %274 : vector<1x32xf32> to vector<16x32xf32>
    %296 = arith.addf %294, %295 : vector<16x32xf32>
    %c0_135 = arith.constant 0 : index
    %c64_136 = arith.constant 64 : index
    %c0_137 = arith.constant 0 : index
    %297 = vector.load %arg6[%c0_135, %c64_136, %c0_137] : memref<2x256x128xf32, #tpu.memory_space<vmem>>, vector<1x32x32xf32>
    %298 = vector.shape_cast %297 : vector<1x32x32xf32> to vector<32x32xf32>
    %cst_138 = arith.constant dense<0.000000e+00> : vector<16x32xf32>
    %299 = tpu.matmul %296, %298, %cst_138 {dimension_numbers = #tpu.dot_dimension_numbers<[1], [0], [0], [1], [0, 0, 1, 1], [], []>} : vector<16x32xf32>, vector<32x32xf32>, vector<16x32xf32> -> vector<16x32xf32>
    %c0_139 = arith.constant 0 : index
    %c4_140 = arith.constant 4 : index
    %c0_141 = arith.constant 0 : index
    %300 = vector.load %arg7[%c0_139, %c4_140, %c0_141] : memref<2x16x128xf32, #tpu.memory_space<vmem>>, vector<1x1x32xf32>
    %301 = vector.shape_cast %300 : vector<1x1x32xf32> to vector<1x32xf32>
    %302 = vector.broadcast %301 : vector<1x32xf32> to vector<16x32xf32>
    %303 = arith.addf %299, %302 : vector<16x32xf32>
    %c0_142 = arith.constant 0 : index
    %c96_143 = arith.constant 96 : index
    %c0_144 = arith.constant 0 : index
    %304 = vector.load %arg6[%c0_142, %c96_143, %c0_144] : memref<2x256x128xf32, #tpu.memory_space<vmem>>, vector<1x32x64xf32>
    %305 = vector.shape_cast %304 : vector<1x32x64xf32> to vector<32x64xf32>
    %cst_145 = arith.constant dense<0.000000e+00> : vector<16x64xf32>
    %306 = tpu.matmul %226, %305, %cst_145 {dimension_numbers = #tpu.dot_dimension_numbers<[1], [0], [0], [1], [0, 0, 1, 1], [], []>} : vector<16x32xf32>, vector<32x64xf32>, vector<16x64xf32> -> vector<16x64xf32>
    %c0_146 = arith.constant 0 : index
    %c5_147 = arith.constant 5 : index
    %c0_148 = arith.constant 0 : index
    %307 = vector.load %arg7[%c0_146, %c5_147, %c0_148] : memref<2x16x128xf32, #tpu.memory_space<vmem>>, vector<1x1x64xf32>
    %308 = vector.shape_cast %307 : vector<1x1x64xf32> to vector<1x64xf32>
    %309 = vector.broadcast %308 : vector<1x64xf32> to vector<16x64xf32>
    %310 = arith.addf %306, %309 : vector<16x64xf32>
    %311 = vector.extract_strided_slice %310 {offsets = [0, 0], sizes = [16, 32], strides = [1, 1]} : vector<16x64xf32> to vector<16x32xf32>
    %312 = vector.extract_strided_slice %310 {offsets = [0, 32], sizes = [16, 32], strides = [1, 1]} : vector<16x64xf32> to vector<16x32xf32>
    %c0_149 = arith.constant 0 : index
    %c128 = arith.constant 128 : index
    %c0_150 = arith.constant 0 : index
    %313 = vector.load %arg6[%c0_149, %c128, %c0_150] : memref<2x256x128xf32, #tpu.memory_space<vmem>>, vector<1x32x32xf32>
    %314 = vector.shape_cast %313 : vector<1x32x32xf32> to vector<32x32xf32>
    %c0_151 = arith.constant 0 : index
    %c6_152 = arith.constant 6 : index
    %c0_153 = arith.constant 0 : index
    %315 = vector.load %arg7[%c0_151, %c6_152, %c0_153] : memref<2x16x128xf32, #tpu.memory_space<vmem>>, vector<1x1x32xf32>
    %316 = vector.shape_cast %315 : vector<1x1x32xf32> to vector<1x32xf32>
    %317 = vector.extract_strided_slice %303 {offsets = [0, 0], sizes = [16, 16], strides = [1, 1]} : vector<16x32xf32> to vector<16x16xf32>
    %318 = vector.extract_strided_slice %303 {offsets = [0, 16], sizes = [16, 16], strides = [1, 1]} : vector<16x32xf32> to vector<16x16xf32>
    %319 = tpu.concatenate %317, %318 in 0 : vector<16x16xf32>, vector<16x16xf32> -> vector<32x16xf32>
    %320 = vector.extract_strided_slice %311 {offsets = [0, 0], sizes = [16, 16], strides = [1, 1]} : vector<16x32xf32> to vector<16x16xf32>
    %321 = vector.extract_strided_slice %311 {offsets = [0, 16], sizes = [16, 16], strides = [1, 1]} : vector<16x32xf32> to vector<16x16xf32>
    %322 = tpu.concatenate %320, %321 in 0 : vector<16x16xf32>, vector<16x16xf32> -> vector<32x16xf32>
    %323 = vector.extract_strided_slice %312 {offsets = [0, 0], sizes = [16, 16], strides = [1, 1]} : vector<16x32xf32> to vector<16x16xf32>
    %324 = vector.extract_strided_slice %312 {offsets = [0, 16], sizes = [16, 16], strides = [1, 1]} : vector<16x32xf32> to vector<16x16xf32>
    %325 = tpu.concatenate %323, %324 in 0 : vector<16x16xf32>, vector<16x16xf32> -> vector<32x16xf32>
    %cst_154 = arith.constant dense<0.000000e+00> : vector<32x32xf32>
    %326 = tpu.matmul %319, %322, %cst_154 {dimension_numbers = #tpu.dot_dimension_numbers<[1], [1], [0], [0], [0, 0, 1, 0], [], []>} : vector<32x16xf32>, vector<32x16xf32>, vector<32x32xf32> -> vector<32x32xf32>
    %327 = arith.addf %326, %0 : vector<32x32xf32>
    %cst_155 = arith.constant dense<0xFF800000> : vector<32xf32>
    %328 = vector.multi_reduction <maximumf>, %327, %cst_155 [1] : vector<32x32xf32> to vector<32xf32>
    %329 = vector.shape_cast %328 : vector<32xf32> to vector<32x1xf32>
    %330 = vector.broadcast %329 : vector<32x1xf32> to vector<32x32xf32>
    %331 = arith.subf %327, %330 : vector<32x32xf32>
    %332 = math.exp %331 : vector<32x32xf32>
    %cst_156 = arith.constant dense<0.000000e+00> : vector<32xf32>
    %333 = vector.multi_reduction <add>, %332, %cst_156 [1] : vector<32x32xf32> to vector<32xf32>
    %334 = vector.shape_cast %333 : vector<32xf32> to vector<32x1xf32>
    %cst_157 = arith.constant dense<0.000000e+00> : vector<32x16xf32>
    %335 = tpu.matmul %332, %325, %cst_157 {dimension_numbers = #tpu.dot_dimension_numbers<[1], [0], [0], [1], [0, 0, 1, 1], [], []>} : vector<32x32xf32>, vector<32x16xf32>, vector<32x16xf32> -> vector<32x16xf32>
    %336 = tpu.reciprocal %334 : vector<32x1xf32> -> vector<32x1xf32>
    %337 = vector.broadcast %336 : vector<32x1xf32> to vector<32x16xf32>
    %338 = arith.mulf %335, %337 : vector<32x16xf32>
    %339 = vector.extract_strided_slice %338 {offsets = [0, 0], sizes = [16, 16], strides = [1, 1]} : vector<32x16xf32> to vector<16x16xf32>
    %340 = vector.extract_strided_slice %338 {offsets = [16, 0], sizes = [16, 16], strides = [1, 1]} : vector<32x16xf32> to vector<16x16xf32>
    %341 = tpu.concatenate %339, %340 in 1 : vector<16x16xf32>, vector<16x16xf32> -> vector<16x32xf32>
    %cst_158 = arith.constant dense<0.000000e+00> : vector<16x32xf32>
    %342 = tpu.matmul %341, %314, %cst_158 {dimension_numbers = #tpu.dot_dimension_numbers<[1], [0], [0], [1], [0, 0, 1, 1], [], []>} : vector<16x32xf32>, vector<32x32xf32>, vector<16x32xf32> -> vector<16x32xf32>
    %343 = vector.broadcast %316 : vector<1x32xf32> to vector<16x32xf32>
    %344 = arith.addf %342, %343 : vector<16x32xf32>
    %345 = arith.addf %296, %344 : vector<16x32xf32>
    %c0_159 = arith.constant 0 : index
    %c7_160 = arith.constant 7 : index
    %c0_161 = arith.constant 0 : index
    %346 = vector.load %arg7[%c0_159, %c7_160, %c0_161] : memref<2x16x128xf32, #tpu.memory_space<vmem>>, vector<1x1x32xf32>
    %347 = vector.shape_cast %346 : vector<1x1x32xf32> to vector<1x32xf32>
    %c0_162 = arith.constant 0 : index
    %c8 = arith.constant 8 : index
    %c0_163 = arith.constant 0 : index
    %348 = vector.load %arg7[%c0_162, %c8, %c0_163] : memref<2x16x128xf32, #tpu.memory_space<vmem>>, vector<1x1x32xf32>
    %349 = vector.shape_cast %348 : vector<1x1x32xf32> to vector<1x32xf32>
    %cst_164 = arith.constant dense<0.000000e+00> : vector<16xf32>
    %350 = vector.multi_reduction <add>, %345, %cst_164 [1] : vector<16x32xf32> to vector<16xf32>
    %351 = vector.shape_cast %350 : vector<16xf32> to vector<16x1xf32>
    %cst_165 = arith.constant 3.200000e+01 : f32
    %352 = vector.broadcast %cst_165 : f32 to vector<16x1xf32>
    %353 = arith.divf %351, %352 : vector<16x1xf32>
    %354 = vector.broadcast %353 : vector<16x1xf32> to vector<16x32xf32>
    %355 = arith.subf %345, %354 : vector<16x32xf32>
    %356 = arith.mulf %355, %355 : vector<16x32xf32>
    %cst_166 = arith.constant dense<0.000000e+00> : vector<16xf32>
    %357 = vector.multi_reduction <add>, %356, %cst_166 [1] : vector<16x32xf32> to vector<16xf32>
    %358 = vector.shape_cast %357 : vector<16xf32> to vector<16x1xf32>
    %cst_167 = arith.constant 3.200000e+01 : f32
    %359 = vector.broadcast %cst_167 : f32 to vector<16x1xf32>
    %360 = arith.divf %358, %359 : vector<16x1xf32>
    %361 = vector.broadcast %353 : vector<16x1xf32> to vector<16x32xf32>
    %362 = arith.subf %345, %361 : vector<16x32xf32>
    %cst_168 = arith.constant 9.99999974E-6 : f32
    %363 = vector.broadcast %cst_168 : f32 to vector<16x1xf32>
    %364 = arith.addf %360, %363 : vector<16x1xf32>
    %365 = math.rsqrt %364 : vector<16x1xf32>
    %366 = vector.broadcast %365 : vector<16x1xf32> to vector<16x32xf32>
    %367 = arith.mulf %362, %366 : vector<16x32xf32>
    %368 = vector.broadcast %347 : vector<1x32xf32> to vector<16x32xf32>
    %369 = arith.mulf %367, %368 : vector<16x32xf32>
    %370 = vector.broadcast %349 : vector<1x32xf32> to vector<16x32xf32>
    %371 = arith.addf %369, %370 : vector<16x32xf32>
    %c0_169 = arith.constant 0 : index
    %c160 = arith.constant 160 : index
    %c0_170 = arith.constant 0 : index
    %372 = vector.load %arg6[%c0_169, %c160, %c0_170] : memref<2x256x128xf32, #tpu.memory_space<vmem>>, vector<1x32x64xf32>
    %373 = vector.shape_cast %372 : vector<1x32x64xf32> to vector<32x64xf32>
    %c0_171 = arith.constant 0 : index
    %c9 = arith.constant 9 : index
    %c0_172 = arith.constant 0 : index
    %374 = vector.load %arg7[%c0_171, %c9, %c0_172] : memref<2x16x128xf32, #tpu.memory_space<vmem>>, vector<1x1x64xf32>
    %375 = vector.shape_cast %374 : vector<1x1x64xf32> to vector<1x64xf32>
    %c0_173 = arith.constant 0 : index
    %c192 = arith.constant 192 : index
    %c0_174 = arith.constant 0 : index
    %376 = vector.load %arg6[%c0_173, %c192, %c0_174] : memref<2x256x128xf32, #tpu.memory_space<vmem>>, vector<1x64x32xf32>
    %377 = vector.shape_cast %376 : vector<1x64x32xf32> to vector<64x32xf32>
    %c0_175 = arith.constant 0 : index
    %c10 = arith.constant 10 : index
    %c0_176 = arith.constant 0 : index
    %378 = vector.load %arg7[%c0_175, %c10, %c0_176] : memref<2x16x128xf32, #tpu.memory_space<vmem>>, vector<1x1x32xf32>
    %379 = vector.shape_cast %378 : vector<1x1x32xf32> to vector<1x32xf32>
    %cst_177 = arith.constant dense<0.000000e+00> : vector<16x64xf32>
    %380 = tpu.matmul %371, %373, %cst_177 {dimension_numbers = #tpu.dot_dimension_numbers<[1], [0], [0], [1], [0, 0, 1, 1], [], []>} : vector<16x32xf32>, vector<32x64xf32>, vector<16x64xf32> -> vector<16x64xf32>
    %381 = vector.broadcast %375 : vector<1x64xf32> to vector<16x64xf32>
    %382 = arith.addf %380, %381 : vector<16x64xf32>
    %cst_178 = arith.constant 0.000000e+00 : f32
    %383 = vector.broadcast %cst_178 : f32 to vector<16x64xf32>
    %384 = arith.maximumf %382, %383 : vector<16x64xf32>
    %cst_179 = arith.constant dense<0.000000e+00> : vector<16x32xf32>
    %385 = tpu.matmul %384, %377, %cst_179 {dimension_numbers = #tpu.dot_dimension_numbers<[1], [0], [0], [1], [0, 0, 1, 1], [], []>} : vector<16x64xf32>, vector<64x32xf32>, vector<16x32xf32> -> vector<16x32xf32>
    %386 = vector.broadcast %379 : vector<1x32xf32> to vector<16x32xf32>
    %387 = arith.addf %385, %386 : vector<16x32xf32>
    %388 = arith.addf %371, %387 : vector<16x32xf32>
    %c0_180 = arith.constant 0 : index
    %c11 = arith.constant 11 : index
    %c0_181 = arith.constant 0 : index
    %389 = vector.load %arg7[%c0_180, %c11, %c0_181] : memref<2x16x128xf32, #tpu.memory_space<vmem>>, vector<1x1x32xf32>
    %390 = vector.shape_cast %389 : vector<1x1x32xf32> to vector<1x32xf32>
    %c0_182 = arith.constant 0 : index
    %c12 = arith.constant 12 : index
    %c0_183 = arith.constant 0 : index
    %391 = vector.load %arg7[%c0_182, %c12, %c0_183] : memref<2x16x128xf32, #tpu.memory_space<vmem>>, vector<1x1x32xf32>
    %392 = vector.shape_cast %391 : vector<1x1x32xf32> to vector<1x32xf32>
    %cst_184 = arith.constant dense<0.000000e+00> : vector<16xf32>
    %393 = vector.multi_reduction <add>, %388, %cst_184 [1] : vector<16x32xf32> to vector<16xf32>
    %394 = vector.shape_cast %393 : vector<16xf32> to vector<16x1xf32>
    %cst_185 = arith.constant 3.200000e+01 : f32
    %395 = vector.broadcast %cst_185 : f32 to vector<16x1xf32>
    %396 = arith.divf %394, %395 : vector<16x1xf32>
    %397 = vector.broadcast %396 : vector<16x1xf32> to vector<16x32xf32>
    %398 = arith.subf %388, %397 : vector<16x32xf32>
    %399 = arith.mulf %398, %398 : vector<16x32xf32>
    %cst_186 = arith.constant dense<0.000000e+00> : vector<16xf32>
    %400 = vector.multi_reduction <add>, %399, %cst_186 [1] : vector<16x32xf32> to vector<16xf32>
    %401 = vector.shape_cast %400 : vector<16xf32> to vector<16x1xf32>
    %cst_187 = arith.constant 3.200000e+01 : f32
    %402 = vector.broadcast %cst_187 : f32 to vector<16x1xf32>
    %403 = arith.divf %401, %402 : vector<16x1xf32>
    %404 = vector.broadcast %396 : vector<16x1xf32> to vector<16x32xf32>
    %405 = arith.subf %388, %404 : vector<16x32xf32>
    %cst_188 = arith.constant 9.99999974E-6 : f32
    %406 = vector.broadcast %cst_188 : f32 to vector<16x1xf32>
    %407 = arith.addf %403, %406 : vector<16x1xf32>
    %408 = math.rsqrt %407 : vector<16x1xf32>
    %409 = vector.broadcast %408 : vector<16x1xf32> to vector<16x32xf32>
    %410 = arith.mulf %405, %409 : vector<16x32xf32>
    %411 = vector.broadcast %390 : vector<1x32xf32> to vector<16x32xf32>
    %412 = arith.mulf %410, %411 : vector<16x32xf32>
    %413 = vector.broadcast %392 : vector<1x32xf32> to vector<16x32xf32>
    %414 = arith.addf %412, %413 : vector<16x32xf32>
    %c1_189 = arith.constant 1 : index
    %c0_190 = arith.constant 0 : index
    %c0_191 = arith.constant 0 : index
    %415 = vector.load %arg6[%c1_189, %c0_190, %c0_191] : memref<2x256x128xf32, #tpu.memory_space<vmem>>, vector<1x32x128xf32>
    %416 = vector.shape_cast %415 : vector<1x32x128xf32> to vector<32x128xf32>
    %cst_192 = arith.constant dense<0.000000e+00> : vector<16x128xf32>
    %417 = tpu.matmul %414, %416, %cst_192 {dimension_numbers = #tpu.dot_dimension_numbers<[1], [0], [0], [1], [0, 0, 1, 1], [], []>} : vector<16x32xf32>, vector<32x128xf32>, vector<16x128xf32> -> vector<16x128xf32>
    %c1_193 = arith.constant 1 : index
    %c0_194 = arith.constant 0 : index
    %c0_195 = arith.constant 0 : index
    %418 = vector.load %arg7[%c1_193, %c0_194, %c0_195] : memref<2x16x128xf32, #tpu.memory_space<vmem>>, vector<1x1x128xf32>
    %419 = vector.shape_cast %418 : vector<1x1x128xf32> to vector<1x128xf32>
    %420 = vector.broadcast %419 : vector<1x128xf32> to vector<16x128xf32>
    %421 = arith.addf %417, %420 : vector<16x128xf32>
    %422 = vector.extract_strided_slice %421 {offsets = [0, 0], sizes = [16, 32], strides = [1, 1]} : vector<16x128xf32> to vector<16x32xf32>
    %423 = vector.extract_strided_slice %421 {offsets = [0, 32], sizes = [16, 32], strides = [1, 1]} : vector<16x128xf32> to vector<16x32xf32>
    %424 = vector.extract_strided_slice %421 {offsets = [0, 64], sizes = [16, 32], strides = [1, 1]} : vector<16x128xf32> to vector<16x32xf32>
    %c1_196 = arith.constant 1 : index
    %c32_197 = arith.constant 32 : index
    %c0_198 = arith.constant 0 : index
    %425 = vector.load %arg6[%c1_196, %c32_197, %c0_198] : memref<2x256x128xf32, #tpu.memory_space<vmem>>, vector<1x32x32xf32>
    %426 = vector.shape_cast %425 : vector<1x32x32xf32> to vector<32x32xf32>
    %c1_199 = arith.constant 1 : index
    %c1_200 = arith.constant 1 : index
    %c0_201 = arith.constant 0 : index
    %427 = vector.load %arg7[%c1_199, %c1_200, %c0_201] : memref<2x16x128xf32, #tpu.memory_space<vmem>>, vector<1x1x32xf32>
    %428 = vector.shape_cast %427 : vector<1x1x32xf32> to vector<1x32xf32>
    %429 = vector.extract_strided_slice %422 {offsets = [0, 0], sizes = [16, 16], strides = [1, 1]} : vector<16x32xf32> to vector<16x16xf32>
    %430 = vector.extract_strided_slice %422 {offsets = [0, 16], sizes = [16, 16], strides = [1, 1]} : vector<16x32xf32> to vector<16x16xf32>
    %431 = tpu.concatenate %429, %430 in 0 : vector<16x16xf32>, vector<16x16xf32> -> vector<32x16xf32>
    %432 = vector.extract_strided_slice %423 {offsets = [0, 0], sizes = [16, 16], strides = [1, 1]} : vector<16x32xf32> to vector<16x16xf32>
    %433 = vector.extract_strided_slice %423 {offsets = [0, 16], sizes = [16, 16], strides = [1, 1]} : vector<16x32xf32> to vector<16x16xf32>
    %434 = tpu.concatenate %432, %433 in 0 : vector<16x16xf32>, vector<16x16xf32> -> vector<32x16xf32>
    %435 = vector.extract_strided_slice %424 {offsets = [0, 0], sizes = [16, 16], strides = [1, 1]} : vector<16x32xf32> to vector<16x16xf32>
    %436 = vector.extract_strided_slice %424 {offsets = [0, 16], sizes = [16, 16], strides = [1, 1]} : vector<16x32xf32> to vector<16x16xf32>
    %437 = tpu.concatenate %435, %436 in 0 : vector<16x16xf32>, vector<16x16xf32> -> vector<32x16xf32>
    %cst_202 = arith.constant dense<0.000000e+00> : vector<32x32xf32>
    %438 = tpu.matmul %431, %434, %cst_202 {dimension_numbers = #tpu.dot_dimension_numbers<[1], [1], [0], [0], [0, 0, 1, 0], [], []>} : vector<32x16xf32>, vector<32x16xf32>, vector<32x32xf32> -> vector<32x32xf32>
    %439 = arith.addf %438, %1 : vector<32x32xf32>
    %cst_203 = arith.constant dense<0xFF800000> : vector<32xf32>
    %440 = vector.multi_reduction <maximumf>, %439, %cst_203 [1] : vector<32x32xf32> to vector<32xf32>
    %441 = vector.shape_cast %440 : vector<32xf32> to vector<32x1xf32>
    %442 = vector.broadcast %441 : vector<32x1xf32> to vector<32x32xf32>
    %443 = arith.subf %439, %442 : vector<32x32xf32>
    %444 = math.exp %443 : vector<32x32xf32>
    %cst_204 = arith.constant dense<0.000000e+00> : vector<32xf32>
    %445 = vector.multi_reduction <add>, %444, %cst_204 [1] : vector<32x32xf32> to vector<32xf32>
    %446 = vector.shape_cast %445 : vector<32xf32> to vector<32x1xf32>
    %cst_205 = arith.constant dense<0.000000e+00> : vector<32x16xf32>
    %447 = tpu.matmul %444, %437, %cst_205 {dimension_numbers = #tpu.dot_dimension_numbers<[1], [0], [0], [1], [0, 0, 1, 1], [], []>} : vector<32x32xf32>, vector<32x16xf32>, vector<32x16xf32> -> vector<32x16xf32>
    %448 = tpu.reciprocal %446 : vector<32x1xf32> -> vector<32x1xf32>
    %449 = vector.broadcast %448 : vector<32x1xf32> to vector<32x16xf32>
    %450 = arith.mulf %447, %449 : vector<32x16xf32>
    %451 = vector.extract_strided_slice %450 {offsets = [0, 0], sizes = [16, 16], strides = [1, 1]} : vector<32x16xf32> to vector<16x16xf32>
    %452 = vector.extract_strided_slice %450 {offsets = [16, 0], sizes = [16, 16], strides = [1, 1]} : vector<32x16xf32> to vector<16x16xf32>
    %453 = tpu.concatenate %451, %452 in 1 : vector<16x16xf32>, vector<16x16xf32> -> vector<16x32xf32>
    %cst_206 = arith.constant dense<0.000000e+00> : vector<16x32xf32>
    %454 = tpu.matmul %453, %426, %cst_206 {dimension_numbers = #tpu.dot_dimension_numbers<[1], [0], [0], [1], [0, 0, 1, 1], [], []>} : vector<16x32xf32>, vector<32x32xf32>, vector<16x32xf32> -> vector<16x32xf32>
    %455 = vector.broadcast %428 : vector<1x32xf32> to vector<16x32xf32>
    %456 = arith.addf %454, %455 : vector<16x32xf32>
    %457 = arith.addf %414, %456 : vector<16x32xf32>
    %c1_207 = arith.constant 1 : index
    %c2_208 = arith.constant 2 : index
    %c0_209 = arith.constant 0 : index
    %458 = vector.load %arg7[%c1_207, %c2_208, %c0_209] : memref<2x16x128xf32, #tpu.memory_space<vmem>>, vector<1x1x32xf32>
    %459 = vector.shape_cast %458 : vector<1x1x32xf32> to vector<1x32xf32>
    %c1_210 = arith.constant 1 : index
    %c3_211 = arith.constant 3 : index
    %c0_212 = arith.constant 0 : index
    %460 = vector.load %arg7[%c1_210, %c3_211, %c0_212] : memref<2x16x128xf32, #tpu.memory_space<vmem>>, vector<1x1x32xf32>
    %461 = vector.shape_cast %460 : vector<1x1x32xf32> to vector<1x32xf32>
    %cst_213 = arith.constant dense<0.000000e+00> : vector<16xf32>
    %462 = vector.multi_reduction <add>, %457, %cst_213 [1] : vector<16x32xf32> to vector<16xf32>
    %463 = vector.shape_cast %462 : vector<16xf32> to vector<16x1xf32>
    %cst_214 = arith.constant 3.200000e+01 : f32
    %464 = vector.broadcast %cst_214 : f32 to vector<16x1xf32>
    %465 = arith.divf %463, %464 : vector<16x1xf32>
    %466 = vector.broadcast %465 : vector<16x1xf32> to vector<16x32xf32>
    %467 = arith.subf %457, %466 : vector<16x32xf32>
    %468 = arith.mulf %467, %467 : vector<16x32xf32>
    %cst_215 = arith.constant dense<0.000000e+00> : vector<16xf32>
    %469 = vector.multi_reduction <add>, %468, %cst_215 [1] : vector<16x32xf32> to vector<16xf32>
    %470 = vector.shape_cast %469 : vector<16xf32> to vector<16x1xf32>
    %cst_216 = arith.constant 3.200000e+01 : f32
    %471 = vector.broadcast %cst_216 : f32 to vector<16x1xf32>
    %472 = arith.divf %470, %471 : vector<16x1xf32>
    %473 = vector.broadcast %465 : vector<16x1xf32> to vector<16x32xf32>
    %474 = arith.subf %457, %473 : vector<16x32xf32>
    %cst_217 = arith.constant 9.99999974E-6 : f32
    %475 = vector.broadcast %cst_217 : f32 to vector<16x1xf32>
    %476 = arith.addf %472, %475 : vector<16x1xf32>
    %477 = math.rsqrt %476 : vector<16x1xf32>
    %478 = vector.broadcast %477 : vector<16x1xf32> to vector<16x32xf32>
    %479 = arith.mulf %474, %478 : vector<16x32xf32>
    %480 = vector.broadcast %459 : vector<1x32xf32> to vector<16x32xf32>
    %481 = arith.mulf %479, %480 : vector<16x32xf32>
    %482 = vector.broadcast %461 : vector<1x32xf32> to vector<16x32xf32>
    %483 = arith.addf %481, %482 : vector<16x32xf32>
    %c1_218 = arith.constant 1 : index
    %c64_219 = arith.constant 64 : index
    %c0_220 = arith.constant 0 : index
    %484 = vector.load %arg6[%c1_218, %c64_219, %c0_220] : memref<2x256x128xf32, #tpu.memory_space<vmem>>, vector<1x32x32xf32>
    %485 = vector.shape_cast %484 : vector<1x32x32xf32> to vector<32x32xf32>
    %cst_221 = arith.constant dense<0.000000e+00> : vector<16x32xf32>
    %486 = tpu.matmul %483, %485, %cst_221 {dimension_numbers = #tpu.dot_dimension_numbers<[1], [0], [0], [1], [0, 0, 1, 1], [], []>} : vector<16x32xf32>, vector<32x32xf32>, vector<16x32xf32> -> vector<16x32xf32>
    %c1_222 = arith.constant 1 : index
    %c4_223 = arith.constant 4 : index
    %c0_224 = arith.constant 0 : index
    %487 = vector.load %arg7[%c1_222, %c4_223, %c0_224] : memref<2x16x128xf32, #tpu.memory_space<vmem>>, vector<1x1x32xf32>
    %488 = vector.shape_cast %487 : vector<1x1x32xf32> to vector<1x32xf32>
    %489 = vector.broadcast %488 : vector<1x32xf32> to vector<16x32xf32>
    %490 = arith.addf %486, %489 : vector<16x32xf32>
    %c1_225 = arith.constant 1 : index
    %c96_226 = arith.constant 96 : index
    %c0_227 = arith.constant 0 : index
    %491 = vector.load %arg6[%c1_225, %c96_226, %c0_227] : memref<2x256x128xf32, #tpu.memory_space<vmem>>, vector<1x32x64xf32>
    %492 = vector.shape_cast %491 : vector<1x32x64xf32> to vector<32x64xf32>
    %cst_228 = arith.constant dense<0.000000e+00> : vector<16x64xf32>
    %493 = tpu.matmul %226, %492, %cst_228 {dimension_numbers = #tpu.dot_dimension_numbers<[1], [0], [0], [1], [0, 0, 1, 1], [], []>} : vector<16x32xf32>, vector<32x64xf32>, vector<16x64xf32> -> vector<16x64xf32>
    %c1_229 = arith.constant 1 : index
    %c5_230 = arith.constant 5 : index
    %c0_231 = arith.constant 0 : index
    %494 = vector.load %arg7[%c1_229, %c5_230, %c0_231] : memref<2x16x128xf32, #tpu.memory_space<vmem>>, vector<1x1x64xf32>
    %495 = vector.shape_cast %494 : vector<1x1x64xf32> to vector<1x64xf32>
    %496 = vector.broadcast %495 : vector<1x64xf32> to vector<16x64xf32>
    %497 = arith.addf %493, %496 : vector<16x64xf32>
    %498 = vector.extract_strided_slice %497 {offsets = [0, 0], sizes = [16, 32], strides = [1, 1]} : vector<16x64xf32> to vector<16x32xf32>
    %499 = vector.extract_strided_slice %497 {offsets = [0, 32], sizes = [16, 32], strides = [1, 1]} : vector<16x64xf32> to vector<16x32xf32>
    %c1_232 = arith.constant 1 : index
    %c128_233 = arith.constant 128 : index
    %c0_234 = arith.constant 0 : index
    %500 = vector.load %arg6[%c1_232, %c128_233, %c0_234] : memref<2x256x128xf32, #tpu.memory_space<vmem>>, vector<1x32x32xf32>
    %501 = vector.shape_cast %500 : vector<1x32x32xf32> to vector<32x32xf32>
    %c1_235 = arith.constant 1 : index
    %c6_236 = arith.constant 6 : index
    %c0_237 = arith.constant 0 : index
    %502 = vector.load %arg7[%c1_235, %c6_236, %c0_237] : memref<2x16x128xf32, #tpu.memory_space<vmem>>, vector<1x1x32xf32>
    %503 = vector.shape_cast %502 : vector<1x1x32xf32> to vector<1x32xf32>
    %504 = vector.extract_strided_slice %490 {offsets = [0, 0], sizes = [16, 16], strides = [1, 1]} : vector<16x32xf32> to vector<16x16xf32>
    %505 = vector.extract_strided_slice %490 {offsets = [0, 16], sizes = [16, 16], strides = [1, 1]} : vector<16x32xf32> to vector<16x16xf32>
    %506 = tpu.concatenate %504, %505 in 0 : vector<16x16xf32>, vector<16x16xf32> -> vector<32x16xf32>
    %507 = vector.extract_strided_slice %498 {offsets = [0, 0], sizes = [16, 16], strides = [1, 1]} : vector<16x32xf32> to vector<16x16xf32>
    %508 = vector.extract_strided_slice %498 {offsets = [0, 16], sizes = [16, 16], strides = [1, 1]} : vector<16x32xf32> to vector<16x16xf32>
    %509 = tpu.concatenate %507, %508 in 0 : vector<16x16xf32>, vector<16x16xf32> -> vector<32x16xf32>
    %510 = vector.extract_strided_slice %499 {offsets = [0, 0], sizes = [16, 16], strides = [1, 1]} : vector<16x32xf32> to vector<16x16xf32>
    %511 = vector.extract_strided_slice %499 {offsets = [0, 16], sizes = [16, 16], strides = [1, 1]} : vector<16x32xf32> to vector<16x16xf32>
    %512 = tpu.concatenate %510, %511 in 0 : vector<16x16xf32>, vector<16x16xf32> -> vector<32x16xf32>
    %cst_238 = arith.constant dense<0.000000e+00> : vector<32x32xf32>
    %513 = tpu.matmul %506, %509, %cst_238 {dimension_numbers = #tpu.dot_dimension_numbers<[1], [1], [0], [0], [0, 0, 1, 0], [], []>} : vector<32x16xf32>, vector<32x16xf32>, vector<32x32xf32> -> vector<32x32xf32>
    %514 = arith.addf %513, %0 : vector<32x32xf32>
    %cst_239 = arith.constant dense<0xFF800000> : vector<32xf32>
    %515 = vector.multi_reduction <maximumf>, %514, %cst_239 [1] : vector<32x32xf32> to vector<32xf32>
    %516 = vector.shape_cast %515 : vector<32xf32> to vector<32x1xf32>
    %517 = vector.broadcast %516 : vector<32x1xf32> to vector<32x32xf32>
    %518 = arith.subf %514, %517 : vector<32x32xf32>
    %519 = math.exp %518 : vector<32x32xf32>
    %cst_240 = arith.constant dense<0.000000e+00> : vector<32xf32>
    %520 = vector.multi_reduction <add>, %519, %cst_240 [1] : vector<32x32xf32> to vector<32xf32>
    %521 = vector.shape_cast %520 : vector<32xf32> to vector<32x1xf32>
    %cst_241 = arith.constant dense<0.000000e+00> : vector<32x16xf32>
    %522 = tpu.matmul %519, %512, %cst_241 {dimension_numbers = #tpu.dot_dimension_numbers<[1], [0], [0], [1], [0, 0, 1, 1], [], []>} : vector<32x32xf32>, vector<32x16xf32>, vector<32x16xf32> -> vector<32x16xf32>
    %523 = tpu.reciprocal %521 : vector<32x1xf32> -> vector<32x1xf32>
    %524 = vector.broadcast %523 : vector<32x1xf32> to vector<32x16xf32>
    %525 = arith.mulf %522, %524 : vector<32x16xf32>
    %526 = vector.extract_strided_slice %525 {offsets = [0, 0], sizes = [16, 16], strides = [1, 1]} : vector<32x16xf32> to vector<16x16xf32>
    %527 = vector.extract_strided_slice %525 {offsets = [16, 0], sizes = [16, 16], strides = [1, 1]} : vector<32x16xf32> to vector<16x16xf32>
    %528 = tpu.concatenate %526, %527 in 1 : vector<16x16xf32>, vector<16x16xf32> -> vector<16x32xf32>
    %cst_242 = arith.constant dense<0.000000e+00> : vector<16x32xf32>
    %529 = tpu.matmul %528, %501, %cst_242 {dimension_numbers = #tpu.dot_dimension_numbers<[1], [0], [0], [1], [0, 0, 1, 1], [], []>} : vector<16x32xf32>, vector<32x32xf32>, vector<16x32xf32> -> vector<16x32xf32>
    %530 = vector.broadcast %503 : vector<1x32xf32> to vector<16x32xf32>
    %531 = arith.addf %529, %530 : vector<16x32xf32>
    %532 = arith.addf %483, %531 : vector<16x32xf32>
    %c1_243 = arith.constant 1 : index
    %c7_244 = arith.constant 7 : index
    %c0_245 = arith.constant 0 : index
    %533 = vector.load %arg7[%c1_243, %c7_244, %c0_245] : memref<2x16x128xf32, #tpu.memory_space<vmem>>, vector<1x1x32xf32>
    %534 = vector.shape_cast %533 : vector<1x1x32xf32> to vector<1x32xf32>
    %c1_246 = arith.constant 1 : index
    %c8_247 = arith.constant 8 : index
    %c0_248 = arith.constant 0 : index
    %535 = vector.load %arg7[%c1_246, %c8_247, %c0_248] : memref<2x16x128xf32, #tpu.memory_space<vmem>>, vector<1x1x32xf32>
    %536 = vector.shape_cast %535 : vector<1x1x32xf32> to vector<1x32xf32>
    %cst_249 = arith.constant dense<0.000000e+00> : vector<16xf32>
    %537 = vector.multi_reduction <add>, %532, %cst_249 [1] : vector<16x32xf32> to vector<16xf32>
    %538 = vector.shape_cast %537 : vector<16xf32> to vector<16x1xf32>
    %cst_250 = arith.constant 3.200000e+01 : f32
    %539 = vector.broadcast %cst_250 : f32 to vector<16x1xf32>
    %540 = arith.divf %538, %539 : vector<16x1xf32>
    %541 = vector.broadcast %540 : vector<16x1xf32> to vector<16x32xf32>
    %542 = arith.subf %532, %541 : vector<16x32xf32>
    %543 = arith.mulf %542, %542 : vector<16x32xf32>
    %cst_251 = arith.constant dense<0.000000e+00> : vector<16xf32>
    %544 = vector.multi_reduction <add>, %543, %cst_251 [1] : vector<16x32xf32> to vector<16xf32>
    %545 = vector.shape_cast %544 : vector<16xf32> to vector<16x1xf32>
    %cst_252 = arith.constant 3.200000e+01 : f32
    %546 = vector.broadcast %cst_252 : f32 to vector<16x1xf32>
    %547 = arith.divf %545, %546 : vector<16x1xf32>
    %548 = vector.broadcast %540 : vector<16x1xf32> to vector<16x32xf32>
    %549 = arith.subf %532, %548 : vector<16x32xf32>
    %cst_253 = arith.constant 9.99999974E-6 : f32
    %550 = vector.broadcast %cst_253 : f32 to vector<16x1xf32>
    %551 = arith.addf %547, %550 : vector<16x1xf32>
    %552 = math.rsqrt %551 : vector<16x1xf32>
    %553 = vector.broadcast %552 : vector<16x1xf32> to vector<16x32xf32>
    %554 = arith.mulf %549, %553 : vector<16x32xf32>
    %555 = vector.broadcast %534 : vector<1x32xf32> to vector<16x32xf32>
    %556 = arith.mulf %554, %555 : vector<16x32xf32>
    %557 = vector.broadcast %536 : vector<1x32xf32> to vector<16x32xf32>
    %558 = arith.addf %556, %557 : vector<16x32xf32>
    %c1_254 = arith.constant 1 : index
    %c160_255 = arith.constant 160 : index
    %c0_256 = arith.constant 0 : index
    %559 = vector.load %arg6[%c1_254, %c160_255, %c0_256] : memref<2x256x128xf32, #tpu.memory_space<vmem>>, vector<1x32x64xf32>
    %560 = vector.shape_cast %559 : vector<1x32x64xf32> to vector<32x64xf32>
    %c1_257 = arith.constant 1 : index
    %c9_258 = arith.constant 9 : index
    %c0_259 = arith.constant 0 : index
    %561 = vector.load %arg7[%c1_257, %c9_258, %c0_259] : memref<2x16x128xf32, #tpu.memory_space<vmem>>, vector<1x1x64xf32>
    %562 = vector.shape_cast %561 : vector<1x1x64xf32> to vector<1x64xf32>
    %c1_260 = arith.constant 1 : index
    %c192_261 = arith.constant 192 : index
    %c0_262 = arith.constant 0 : index
    %563 = vector.load %arg6[%c1_260, %c192_261, %c0_262] : memref<2x256x128xf32, #tpu.memory_space<vmem>>, vector<1x64x32xf32>
    %564 = vector.shape_cast %563 : vector<1x64x32xf32> to vector<64x32xf32>
    %c1_263 = arith.constant 1 : index
    %c10_264 = arith.constant 10 : index
    %c0_265 = arith.constant 0 : index
    %565 = vector.load %arg7[%c1_263, %c10_264, %c0_265] : memref<2x16x128xf32, #tpu.memory_space<vmem>>, vector<1x1x32xf32>
    %566 = vector.shape_cast %565 : vector<1x1x32xf32> to vector<1x32xf32>
    %cst_266 = arith.constant dense<0.000000e+00> : vector<16x64xf32>
    %567 = tpu.matmul %558, %560, %cst_266 {dimension_numbers = #tpu.dot_dimension_numbers<[1], [0], [0], [1], [0, 0, 1, 1], [], []>} : vector<16x32xf32>, vector<32x64xf32>, vector<16x64xf32> -> vector<16x64xf32>
    %568 = vector.broadcast %562 : vector<1x64xf32> to vector<16x64xf32>
    %569 = arith.addf %567, %568 : vector<16x64xf32>
    %cst_267 = arith.constant 0.000000e+00 : f32
    %570 = vector.broadcast %cst_267 : f32 to vector<16x64xf32>
    %571 = arith.maximumf %569, %570 : vector<16x64xf32>
    %cst_268 = arith.constant dense<0.000000e+00> : vector<16x32xf32>
    %572 = tpu.matmul %571, %564, %cst_268 {dimension_numbers = #tpu.dot_dimension_numbers<[1], [0], [0], [1], [0, 0, 1, 1], [], []>} : vector<16x64xf32>, vector<64x32xf32>, vector<16x32xf32> -> vector<16x32xf32>
    %573 = vector.broadcast %566 : vector<1x32xf32> to vector<16x32xf32>
    %574 = arith.addf %572, %573 : vector<16x32xf32>
    %575 = arith.addf %558, %574 : vector<16x32xf32>
    %c1_269 = arith.constant 1 : index
    %c11_270 = arith.constant 11 : index
    %c0_271 = arith.constant 0 : index
    %576 = vector.load %arg7[%c1_269, %c11_270, %c0_271] : memref<2x16x128xf32, #tpu.memory_space<vmem>>, vector<1x1x32xf32>
    %577 = vector.shape_cast %576 : vector<1x1x32xf32> to vector<1x32xf32>
    %c1_272 = arith.constant 1 : index
    %c12_273 = arith.constant 12 : index
    %c0_274 = arith.constant 0 : index
    %578 = vector.load %arg7[%c1_272, %c12_273, %c0_274] : memref<2x16x128xf32, #tpu.memory_space<vmem>>, vector<1x1x32xf32>
    %579 = vector.shape_cast %578 : vector<1x1x32xf32> to vector<1x32xf32>
    %cst_275 = arith.constant dense<0.000000e+00> : vector<16xf32>
    %580 = vector.multi_reduction <add>, %575, %cst_275 [1] : vector<16x32xf32> to vector<16xf32>
    %581 = vector.shape_cast %580 : vector<16xf32> to vector<16x1xf32>
    %cst_276 = arith.constant 3.200000e+01 : f32
    %582 = vector.broadcast %cst_276 : f32 to vector<16x1xf32>
    %583 = arith.divf %581, %582 : vector<16x1xf32>
    %584 = vector.broadcast %583 : vector<16x1xf32> to vector<16x32xf32>
    %585 = arith.subf %575, %584 : vector<16x32xf32>
    %586 = arith.mulf %585, %585 : vector<16x32xf32>
    %cst_277 = arith.constant dense<0.000000e+00> : vector<16xf32>
    %587 = vector.multi_reduction <add>, %586, %cst_277 [1] : vector<16x32xf32> to vector<16xf32>
    %588 = vector.shape_cast %587 : vector<16xf32> to vector<16x1xf32>
    %cst_278 = arith.constant 3.200000e+01 : f32
    %589 = vector.broadcast %cst_278 : f32 to vector<16x1xf32>
    %590 = arith.divf %588, %589 : vector<16x1xf32>
    %591 = vector.broadcast %583 : vector<16x1xf32> to vector<16x32xf32>
    %592 = arith.subf %575, %591 : vector<16x32xf32>
    %cst_279 = arith.constant 9.99999974E-6 : f32
    %593 = vector.broadcast %cst_279 : f32 to vector<16x1xf32>
    %594 = arith.addf %590, %593 : vector<16x1xf32>
    %595 = math.rsqrt %594 : vector<16x1xf32>
    %596 = vector.broadcast %595 : vector<16x1xf32> to vector<16x32xf32>
    %597 = arith.mulf %592, %596 : vector<16x32xf32>
    %598 = vector.broadcast %577 : vector<1x32xf32> to vector<16x32xf32>
    %599 = arith.mulf %597, %598 : vector<16x32xf32>
    %600 = vector.broadcast %579 : vector<1x32xf32> to vector<16x32xf32>
    %601 = arith.addf %599, %600 : vector<16x32xf32>
    %c0_280 = arith.constant 0 : index
    %c0_281 = arith.constant 0 : index
    %602 = vector.load %arg8[%c0_280, %c0_281] : memref<33x128xf32, #tpu.memory_space<vmem>>, vector<32x128xf32>
    %cst_282 = arith.constant dense<0.000000e+00> : vector<16x128xf32>
    %603 = tpu.matmul %601, %602, %cst_282 {dimension_numbers = #tpu.dot_dimension_numbers<[1], [0], [0], [1], [0, 0, 1, 1], [], []>} : vector<16x32xf32>, vector<32x128xf32>, vector<16x128xf32> -> vector<16x128xf32>
    %c32_283 = arith.constant 32 : index
    %c0_284 = arith.constant 0 : index
    %604 = vector.load %arg8[%c32_283, %c0_284] : memref<33x128xf32, #tpu.memory_space<vmem>>, vector<1x128xf32>
    %605 = vector.broadcast %604 : vector<1x128xf32> to vector<16x128xf32>
    %606 = arith.addf %603, %605 : vector<16x128xf32>
    %c0_285 = arith.constant 0 : index
    %c0_286 = arith.constant 0 : index
    %607 = vector.load %arg9[%c0_285, %c0_286] : memref<16x128xf32, #tpu.memory_space<vmem>>, vector<16x128xf32>
    tpu.vector_store %arg9[%c0_285, %c0_286], %606 {strides = array<i32>} : memref<16x128xf32, #tpu.memory_space<vmem>>, vector<16x128xf32>,
    return
  }
}

</mosaic_0001>

<bundles_post_ra>
// kernel: transformer_forward.1
= control target key start
LH: loop header
LB: loop body
LE: loop exit
PB: predicated region body
PF: predicated region fallthrough
CT: control target
= control target key end

     0   :  { %14 = vsyncpa [#allocation3], 0  ;;  %s4188_s0 = inlined_call_operand.vmem [shape: f32[16,32], index: 0, kind: input, shape index: {}]   ;;  %s4189_s1 = inlined_call_operand.vmem [shape: f32[16,32], index: 1, kind: input, shape index: {}]   ;;  %s4190_s2 = inlined_call_operand.vmem [shape: f32[32,32], index: 2, kind: input, shape index: {}]   ;;  %s4191_s3 = inlined_call_operand.vmem [shape: f32[32,32], index: 3, kind: input, shape index: {}]   ;;  %s4192_s4 = inlined_call_operand.hbm [shape: f32[2,160,128], index: 4, kind: input, shape index: {}]   ;;  %s4193_s5 = inlined_call_operand.vmem [shape: f32[2,8,128], index: 5, kind: input, shape index: {}]   ;;  %s4194_s6 = inlined_call_operand.vmem [shape: f32[2,256,128], index: 6, kind: input, shape index: {}]   ;;  %s4195_s7 = inlined_call_operand.vmem [shape: f32[2,16,128], index: 7, kind: input, shape index: {}]   ;;  %s4196_s8 = inlined_call_operand.vmem [shape: f32[33,128], index: 8, kind: input, shape index: {}]   ;;  %s4197_s9 = inlined_call_operand.hbm [shape: f32[16,128], index: 9, kind: output, shape index: {}]  }
   0x1   :  { %15 = vsyncpa [#allocation4], 0  ;;  %s28_s11 = sshll.u32 %s4192_s4, 4  ;;  %s3248_s12 = smov [#allocation2]   ;;  %s29_s11 = int_to_ptr.hbm [resolvable:$true] %s28_s11 }
   0x2   :  { %s30_s13 = sshll.u32 %s3248_s12, 4  ;;  %s3249_s14 = smov 128   ;;  %s31_s13 = int_to_ptr.vmem [resolvable:$true] %s30_s13 }
   0x3   :  { %s3250_s15 = smov 8  }
   0x4   :  { %36 = dma.hbm_to_vmem [thread:$0]  %s29_s11, 5120, %s31_s13, [#allocation3], %s3249_s14, %s3249_s14, %s3250_s15  }
   0x5   :  { %3244 = dma.done.wait [#allocation3], 5120  }
   0x6   :  { %3245 = vsyncadd [#allocation3], 4294962176  ;;  %v62_v0 = vld [vmem:[#allocation2 + $0x18] sm:$0xff]  ;;  %v61_v1 = vld [vmem:[#allocation2 + $0x10] sm:$0xff]  ;;  %vm65_vm0 = vcmask 261120   ;;  %s3251_s21 = smov 96  }
   0x7   :  { %84 = vmatpush.msra.mxu0 %v62_v0  ;;  %v60_v2 = vld [vmem:[#allocation2 + $0x8] sm:$0xff]  ;;  %v59_v3 = vld [vmem:[#allocation2] sm:$0xff]  ;;  %s3252_s22 = smov 112   ;;  %vm114_vm1 = vcmask 130048   ;;  %v3363_v33 = vld [vmem:[%s4190_s2 + $0x10] sm:$0xff]  ;;  %s3254_s10 = smov 16  }
   0x8   :  { %v3316_v4 = vld [vmem:[%s4188_s0] sm:$0xff]  ;;  %v3323_v5 = vld [vmem:[%s4188_s0 + $0x8] sm:$0xff]  ;;  %s3253_s0 = smov 64   ;;  %v3370_v37 = vld [vmem:[%s4190_s2 + $0x18] sm:$0xff] }
   0x9   :  { %85 = vmatpush.msra.mxu0 %v61_v1  ;;  %v3003_v7 = vld [vmem:[%s4193_s5] ss:$0 sm:$0xff]  ;;  %v3356_v29 = vld [vmem:[%s4190_s2 + $0x8] sm:$0xff]  ;;  %v98_v61 = vld [vmem:[#allocation2 + $0x38] sm:$0xff] }
   0xa   :  { %v3349_v25 = vld [vmem:[%s4190_s2] sm:$0xff]  ;;  %v97_v62 = vld [vmem:[#allocation2 + $0x30] sm:$0xff]  ;;  %338 = vmatpush.msra.mxu3 %v98_v61  ;;  %v96_v1 = vld [vmem:[#allocation2 + $0x28] sm:$0xff] }
   0xb   :  { %86 = vmatpush.msra.mxu0 %v60_v2 }
   0xc   :  { %339 = vmatpush.msra.mxu3 %v97_v62 }
   0xd   :  { %87 = vmatpush.msra.mxu0 %v59_v3 }
   0xe   :  { %2763 = vmatmul.msk.f32.vlgmr.msra.gmra.mxu0 %vm65_vm0, %v3316_v4  ;;  %340 = vmatpush.msra.mxu3 %v96_v1 }
  0x16   :  { %2764 = vmatmul.msk.f32.gmra.mxu0 %vm65_vm0, %v3323_v5 }
  0x8b   :  { %v89_v6 = vpop.f32.mrf.mxu0 }
  0x8c   :  { %v90_v10 = vadd.f32 %v3003_v7, %v89_v6 }
  0x93   :  { %v92_v8 = vpop.f32.mrf.mxu0 }
  0x94   :  { %v93_v9 = vadd.f32 %v3003_v7, %v92_v8 }
  0x96   :  { %108 = vrot.lane.b32.xlu2 %v93_v9, %s3251_s21  ;;  %104 = vrot.lane.b32.xlu0 %v93_v9, %s3252_s22  ;;  %v2948_v14 = vpack.i.bf16 %v90_v10, %v93_v9 }
  0x9e   :  { %106 = vrot.lane.b32.xlu2 %v90_v10, %s3251_s21  ;;  %102 = vrot.lane.b32.xlu0 %v90_v10, %s3252_s22 }
  0xf0   :  { %v109_v16 = vpop.permute.xlu2 %108 }
  0xf8   :  { %v107_v18 = vpop.permute.xlu2 %106 }
 0x108   :  { %v105_v11 = vpop.permute.xlu0 %104 }
 0x109   :  { %112 = vrot.lane.b32.xlu1 %v105_v11, %s3251_s21 }
 0x110   :  { %v103_v12 = vpop.permute.xlu0 %102 }
 0x111   :  { %110 = vrot.lane.b32.xlu1 %v103_v12, %s3251_s21  ;;  %v2943_v13 = vpack.i.bf16 %v103_v12, %v105_v11 }
 0x119   :  { %2944 = vrot.lane.b32.xlu1 %v2943_v13, %s3253_s0 }
 0x121   :  { %2949 = vrot.lane.b32.xlu1 %v2948_v14, %s3253_s0 }
 0x17b   :  { %v113_v15 = vpop.permute.xlu1 %112 }
 0x17c   :  { %2765 = vmatpush.xpose.msk.msra.mxu1 %vm114_vm1, %v113_v15 }
 0x183   :  { %v111_v17 = vpop.permute.xlu1 %110 }
 0x184   :  { %2766 = vmatpush.xpose.msk.msra.mxu1 %vm114_vm1, %v111_v17 }
 0x188   :  { %2767 = vmatpush.xpose.msk.msra.mxu1 %vm114_vm1, %v109_v16 }
 0x18b   :  { %v2945_v19 = vpop.permute.xlu1 %2944 }
 0x18c   :  { %2768 = vmatpush.xpose.msk.msra.mxu1 %vm114_vm1, %v107_v18  ;;  %v2946_v20 = vunpack.i.l.bf16 %v2945_v19  ;;  %v2947_v21 = vunpack.i.h.bf16 %v2945_v19 }
 0x18e   :  { %232 = vmatpush.msra.mxu2 %v2946_v20 }
 0x18f   :  { %2769 = vmatmul.msk.f32.vlgmr.msra.gmra.mxu1 %vm114_vm1, %v90_v10 }
 0x190   :  { %233 = vmatpush.msra.mxu2 %v2947_v21 }
 0x193   :  { %v2950_v22 = vpop.permute.xlu1 %2949 }
 0x194   :  { %v2951_v23 = vunpack.i.l.bf16 %v2950_v22  ;;  %v2952_v24 = vunpack.i.h.bf16 %v2950_v22 }
 0x196   :  { %234 = vmatpush.msra.mxu2 %v2951_v23 }
 0x197   :  { %2770 = vmatmul.msk.f32.gmra.mxu1 %vm114_vm1, %v93_v9 }
 0x198   :  { %235 = vmatpush.msra.mxu2 %v2952_v24 }
 0x19f   :  { %2771 = vmatmul.msk.f32.gmra.mxu1 %vm114_vm1, %v103_v12 }
 0x1a7   :  { %2772 = vmatmul.msk.f32.gmra.mxu1 %vm114_vm1, %v105_v11 }
 0x20c   :  { %v148_v26 = vpop.f32.mrf.mxu1 }
 0x20d   :  { %v149_v27 = vadd.f32 %v148_v26, %v3349_v25 }
 0x20f   :  { %v160_v28 = vsel %vm65_vm0, %v149_v27, -inf }
 0x210   :  { %161 = vmax.xlane.f32.xlu0 %v160_v28 }
 0x214   :  { %v151_v30 = vpop.f32.mrf.mxu1 }
 0x215   :  { %v152_v31 = vadd.f32 %v151_v30, %v3356_v29 }
 0x217   :  { %v163_v32 = vsel %vm65_vm0, %v152_v31, -inf }
 0x218   :  { %164 = vmax.xlane.f32.xlu2 %v163_v32 }
 0x21c   :  { %v154_v34 = vpop.f32.mrf.mxu1 }
 0x21d   :  { %v155_v35 = vadd.f32 %v154_v34, %v3363_v33  ;;  %v95_v34 = vld [vmem:[#allocation2 + $0x20] sm:$0xff] }
 0x21e   :  { %341 = vmatpush.msra.mxu3 %v95_v34 }
 0x21f   :  { %v166_v36 = vsel %vm65_vm0, %v155_v35, -inf }
 0x220   :  { %167 = vmax.xlane.f32.xlu1 %v166_v36 }
 0x224   :  { %v157_v38 = vpop.f32.mrf.mxu1 }
 0x225   :  { %v158_v39 = vadd.f32 %v157_v38, %v3370_v37 }
 0x227   :  { %v169_v40 = vsel %vm65_vm0, %v158_v39, -inf }
 0x228   :  { %170 = vmax.xlane.f32.xlu2 %v169_v40 }
 0x283   :  { %v162_v41 = vpop.xlane.xlu0 %161 }
 0x284   :  { %v172_v42 = vsub.f32 %v149_v27, %v162_v41 }
 0x286   :  { %v176_v43 = vmul.f32 1.442695, %v172_v42 }
 0x288   :  { %3046 = vpow2.f32 %v176_v43 }
 0x28b   :  { %v165_v44 = vpop.xlane.xlu2 %164 }
 0x28c   :  { %v173_v45 = vsub.f32 %v152_v31, %v165_v44 }
 0x28e   :  { %v3047_v46 = vpop.eup %3046  ;;  %v178_v47 = vmul.f32 1.442695, %v173_v45 }
 0x28f   :  { %2773 = vmatmul.msk.f32.vlgmr.msra.gmra.mxu2 %vm65_vm0, %v3047_v46  ;;  %v184_v59 = vsel %vm65_vm0, %v3047_v46, 0.0 }
 0x290   :  { %3048 = vpow2.f32 %v178_v47 }
 0x293   :  { %v168_v48 = vpop.xlane.xlu1 %167 }
 0x294   :  { %v174_v49 = vsub.f32 %v155_v35, %v168_v48 }
 0x296   :  { %v3049_v50 = vpop.eup %3048  ;;  %v180_v51 = vmul.f32 1.442695, %v174_v49 }
 0x297   :  { %2774 = vmatmul.msk.f32.gmra.mxu2 %vm65_vm0, %v3049_v50  ;;  %v187_v60 = vsel %vm65_vm0, %v3049_v50, 0.0 }
 0x298   :  { %3050 = vpow2.f32 %v180_v51 }
 0x29b   :  { %v171_v52 = vpop.xlane.xlu2 %170 }
 0x29c   :  { %v175_v53 = vsub.f32 %v158_v39, %v171_v52 }
 0x29e   :  { %v3051_v54 = vpop.eup %3050  ;;  %v182_v55 = vmul.f32 1.442695, %v175_v53 }
 0x29f   :  { %2775 = vmatmul.msk.f32.gmra.mxu2 %vm65_vm0, %v3051_v54  ;;  %v190_v56 = vsel %vm65_vm0, %v3051_v54, 0.0 }
 0x2a0   :  { %3052 = vpow2.f32 %v182_v55  ;;  %191 = vadd.xlane.f32.xlu0 %v190_v56 }
 0x2a6   :  { %v3053_v57 = vpop.eup %3052 }
 0x2a7   :  { %2776 = vmatmul.msk.f32.gmra.mxu2 %vm65_vm0, %v3053_v57  ;;  %v193_v58 = vsel %vm65_vm0, %v3053_v57, 0.0 }
 0x2a8   :  { %194 = vadd.xlane.f32.xlu2 %v193_v58  ;;  %185 = vadd.xlane.f32.xlu0 %v184_v59 }
 0x2b0   :  { %188 = vadd.xlane.f32.xlu2 %v187_v60 }
 0x312   :  { %v3382_v63 = vpop.f32.mrf.mxu2 }
 0x313   :  { %v192_v0 = vpop.xlane.xlu0 %191 }
 0x314   :  { %3054 = vrcp.f32 %v192_v0  ;;  %v288_v9 = vand.u32 2147483648, %v192_v0  ;;  %v286_v11 = vand.u32 2147483647, %v192_v0  ;;  %vm282_vm3 = vweird.f32 %v192_v0 }
 0x316   :  { %v289_v15 = vor.u32 1.1754944e-38, %v288_v9  ;;  %vm287_vm5 = vcmp.eq.f32.partialorder %v286_v11, 8.507059e+37 }
 0x31a   :  { %v3055_v2 = vpop.eup %3054  ;;  %v3384_v3 = vpop.f32.mrf.mxu2 }
 0x31b   :  { %v278_v6 = vmul.f32 %v3055_v2, %v192_v0  ;;  %v195_v7 = vpop.xlane.xlu2 %194  ;;  %vm283_vm2 = vweird.f32 %v3055_v2  ;;  %v186_v32 = vpop.xlane.xlu0 %185 }
 0x31c   :  { %3056 = vrcp.f32 %v195_v7  ;;  %vm284_vm4 = vmor %vm282_vm3, %vm283_vm2  ;;  %v302_v21 = vand.u32 2147483648, %v195_v7  ;;  %v300_v23 = vand.u32 2147483647, %v195_v7  ;;  %vm296_vm7 = vweird.f32 %v195_v7 }
 0x31d   :  { %v279_v8 = vsub.f32 1.0, %v278_v6  ;;  %3058 = vrcp.f32 %v186_v32  ;;  %v260_v45 = vand.u32 2147483648, %v186_v32  ;;  %vm254_vm11 = vweird.f32 %v186_v32 }
 0x31e   :  { %v303_v26 = vor.u32 1.1754944e-38, %v302_v21  ;;  %vm301_vm9 = vcmp.eq.f32.partialorder %v300_v23, 8.507059e+37  ;;  %v258_v46 = vand.u32 2147483647, %v186_v32 }
 0x31f   :  { %v280_v10 = vmul.f32 %v3055_v2, %v279_v8  ;;  %v261_v49 = vor.u32 1.1754944e-38, %v260_v45 }
 0x320   :  { %vm259_vm13 = vcmp.eq.f32.partialorder %v258_v46, 8.507059e+37 }
 0x321   :  { %v281_v12 = vadd.f32 %v3055_v2, %v280_v10  ;;  %v3255_v10 = vmov 32.0  }
 0x322   :  { %v3057_v13 = vpop.eup %3056  ;;  %v243_v14 = vpop.f32.mrf.mxu2 }
 0x323   :  { %v292_v16 = vmul.f32 %v3057_v13, %v195_v7  ;;  %v285_v17 = vsel %vm284_vm4, %v3055_v2, %v281_v12  ;;  %vm297_vm6 = vweird.f32 %v3057_v13  ;;  %v189_v35 = vpop.xlane.xlu2 %188  ;;  %v3059_v36 = vpop.eup %3058 }
 0x324   :  { %v290_v18 = vsel %vm287_vm5, %v289_v15, %v285_v17  ;;  %vm298_vm8 = vmor %vm296_vm7, %vm297_vm6  ;;  %3060 = vrcp.f32 %v189_v35  ;;  %v250_v38 = vmul.f32 %v3059_v36, %v186_v32  ;;  %vm255_vm10 = vweird.f32 %v3059_v36 }
 0x325   :  { %v293_v19 = vsub.f32 1.0, %v292_v16  ;;  %v307_v20 = vmul.f32 %v290_v18, %v243_v14  ;;  %vm256_vm12 = vmor %vm254_vm11, %vm255_vm10  ;;  %v274_v52 = vand.u32 2147483648, %v189_v35  ;;  %vm268_vm15 = vweird.f32 %v189_v35 }
 0x326   :  { %v251_v39 = vsub.f32 1.0, %v250_v38  ;;  %v272_v53 = vand.u32 2147483647, %v189_v35  ;;  %3062 = vrcp.f32 %v3255_v10  ;;  %v420_v38 = vld [vmem:[#allocation2 + $0x88] sm:$0xff]  ;;  %vm457_vm11 = vcmask 523264  }
 0x327   :  { %311 = vrot.lane.b32.xlu0 %v307_v20, %s3254_s10  ;;  %v294_v22 = vmul.f32 %v3057_v13, %v293_v19  ;;  %v275_v58 = vor.u32 1.1754944e-38, %v274_v52  ;;  %v3005_v52 = vld [vmem:[%s4193_s5 + $0x2] ss:$0 sm:$0xff] }
 0x328   :  { %v252_v41 = vmul.f32 %v3059_v36, %v251_v39  ;;  %vm273_vm3 = vcmp.eq.f32.partialorder %v272_v53, 8.507059e+37 }
 0x329   :  { %v295_v24 = vadd.f32 %v3057_v13, %v294_v22 }
 0x32a   :  { %v246_v28 = vpop.f32.mrf.mxu2  ;;  %v3061_v40 = vpop.eup %3060  ;;  %v253_v43 = vadd.f32 %v3059_v36, %v252_v41  ;;  %v419_v41 = vld [vmem:[#allocation2 + $0x80] sm:$0xff] }
 0x32b   :  { %v299_v27 = vsel %vm298_vm8, %v3057_v13, %v295_v24  ;;  %v264_v42 = vmul.f32 %v3061_v40, %v189_v35  ;;  %vm269_vm14 = vweird.f32 %v3061_v40  ;;  %v422_v35 = vld [vmem:[#allocation2 + $0x98] sm:$0xff] }
 0x32c   :  { %v304_v30 = vsel %vm301_vm9, %v303_v26, %v299_v27  ;;  %v257_v48 = vsel %vm256_vm12, %v3059_v36, %v253_v43  ;;  %vm270_vm2 = vmor %vm268_vm15, %vm269_vm14  ;;  %v3063_v11 = vpop.eup %3062  ;;  %v413_v26 = vld [vmem:[#allocation2 + $0x58] sm:$0xff]  ;;  %v412_v27 = vld [vmem:[#allocation2 + $0x50] sm:$0xff]  ;;  %472 = vmatpush.msrb.mxu3 %v422_v35 }
 0x32d   :  { %v308_v31 = vmul.f32 %v304_v30, %v246_v28  ;;  %v265_v44 = vsub.f32 1.0, %v264_v42  ;;  %v262_v50 = vsel %vm259_vm13, %v261_v49, %v257_v48  ;;  %v360_v12 = vmul.f32 32.0, %v3063_v11  ;;  %443 = vmatpush.msrb.mxu0 %v413_v26  ;;  %v411_v28 = vld [vmem:[#allocation2 + $0x48] sm:$0xff]  ;;  %v410_v30 = vld [vmem:[#allocation2 + $0x40] sm:$0xff]  ;;  %v421_v36 = vld [vmem:[#allocation2 + $0x90] sm:$0xff] }
 0x32e   :  { %v305_v54 = vmul.f32 %v262_v50, %v3382_v63  ;;  %v3004_v63 = vld [vmem:[%s4193_s5 + $0x1] ss:$0 sm:$0xff]  ;;  %vm364_vm4 = vweird.f32 %v3063_v11  ;;  %473 = vmatpush.msrb.mxu3 %v421_v36  ;;  %v545_v35 = vld [vmem:[#allocation2 + $0xb8] sm:$0xff]  ;;  %v544_v36 = vld [vmem:[#allocation2 + $0xb0] sm:$0xff] }
 0x32f   :  { %313 = vrot.lane.b32.xlu1 %v308_v31, %s3254_s10  ;;  %v266_v47 = vmul.f32 %v3061_v40, %v265_v44  ;;  %v361_v13 = vsub.f32 1.0, %v360_v12  ;;  %444 = vmatpush.msrb.mxu0 %v412_v27  ;;  %v418_v44 = vld [vmem:[#allocation2 + $0x78] sm:$0xff] }
 0x330   :  { %474 = vmatpush.msrb.mxu3 %v420_v38  ;;  %v543_v38 = vld [vmem:[#allocation2 + $0xa8] sm:$0xff] }
 0x331   :  { %v267_v51 = vadd.f32 %v3061_v40, %v266_v47  ;;  %v362_v14 = vmul.f32 %v3063_v11, %v361_v13  ;;  %445 = vmatpush.msrb.mxu0 %v411_v28 }
 0x332   :  { %475 = vmatpush.msrb.mxu3 %v419_v41 }
 0x333   :  { %v271_v57 = vsel %vm270_vm2, %v3061_v40, %v267_v51  ;;  %v363_v15 = vadd.f32 %v3063_v11, %v362_v14  ;;  %446 = vmatpush.msrb.mxu0 %v410_v30  ;;  %v3008_v14 = vld [vmem:[%s4193_s5 + $0x5] ss:$0 sm:$0xff] }
 0x334   :  { %v276_v59 = vsel %vm273_vm3, %v275_v58, %v271_v57  ;;  %476 = vmatpush.msrb.mxu3 %v418_v44 }
 0x335   :  { %v306_v60 = vmul.f32 %v276_v59, %v3384_v3  ;;  %v3401_v16 = vsel %vm364_vm4, %v3063_v11, %v363_v15  ;;  %567 = vmatpush.msra.mxu0 %v545_v35 }
 0x337   :  { %568 = vmatpush.msra.mxu0 %v544_v36 }
 0x339   :  { %569 = vmatpush.msra.mxu0 %v543_v38 }
 0x399   :  { %v312_v55 = vpop.permute.xlu0 %311 }
 0x39a   :  { %v317_v56 = vsel %vm114_vm1, %v305_v54, %v312_v55 }
 0x39b   :  { %2777 = vmatmul.msk.f32.vlgmr.msra.gmra.mxu3 %vm65_vm0, %v317_v56  ;;  %v3006_v56 = vld [vmem:[%s4193_s5 + $0x3] ss:$0 sm:$0xff] }
 0x3a1   :  { %v314_v61 = vpop.permute.xlu1 %313 }
 0x3a2   :  { %v318_v62 = vsel %vm114_vm1, %v306_v60, %v314_v61 }
 0x3a3   :  { %2778 = vmatmul.msk.f32.gmra.mxu3 %vm65_vm0, %v318_v62 }
 0x41e   :  { %v343_v0 = vpop.f32.mrf.mxu3 }
 0x41f   :  { %v344_v1 = vadd.f32 %v3004_v63, %v343_v0 }
 0x421   :  { %v349_v2 = vadd.f32 %v344_v1, %v3316_v4 }
 0x423   :  { %v353_v6 = vsel %vm65_vm0, %v349_v2, 0.0 }
 0x424   :  { %354 = vadd.xlane.f32.xlu2 %v353_v6  ;;  %v416_v6 = vld [vmem:[#allocation2 + $0x68] sm:$0xff] }
 0x426   :  { %v346_v7 = vpop.f32.mrf.mxu3 }
 0x427   :  { %v347_v8 = vadd.f32 %v3004_v63, %v346_v7  ;;  %v415_v7 = vld [vmem:[#allocation2 + $0x60] sm:$0xff] }
 0x429   :  { %v350_v3 = vadd.f32 %v347_v8, %v3323_v5  ;;  %v3007_v8 = vld [vmem:[%s4193_s5 + $0x4] ss:$0 sm:$0xff] }
 0x42b   :  { %v356_v9 = vsel %vm65_vm0, %v350_v3, 0.0 }
 0x42c   :  { %357 = vadd.xlane.f32.xlu2 %v356_v9 }
 0x497   :  { %v355_v4 = vpop.xlane.xlu2 %354 }
 0x498   :  { %v366_v17 = vmul.f32 %v3401_v16, %v355_v4 }
 0x49a   :  { %v368_v18 = vsub.f32 %v349_v2, %v366_v17  ;;  %v417_v2 = vld [vmem:[#allocation2 + $0x70] sm:$0xff] }
 0x49b   :  { %477 = vmatpush.msrb.mxu3 %v417_v2 }
 0x49c   :  { %v370_v19 = vmul.f32 %v368_v18, %v368_v18 }
 0x49d   :  { %478 = vmatpush.msrb.mxu3 %v416_v6 }
 0x49e   :  { %v372_v5 = vsel %vm65_vm0, %v370_v19, 0.0 }
 0x49f   :  { %373 = vadd.xlane.f32.xlu0 %v372_v5  ;;  %v358_v20 = vpop.xlane.xlu2 %357  ;;  %479 = vmatpush.msrb.mxu3 %v415_v7  ;;  %v3011_v7 = vld [vmem:[%s4193_s5 + $0x8] ss:$0 sm:$0xff] }
 0x4a0   :  { %v367_v21 = vmul.f32 %v3401_v16, %v358_v20 }
 0x4a2   :  { %v369_v22 = vsub.f32 %v350_v3, %v367_v21 }
 0x4a4   :  { %v371_v23 = vmul.f32 %v369_v22, %v369_v22 }
 0x4a6   :  { %v375_v24 = vsel %vm65_vm0, %v371_v23, 0.0 }
 0x4a7   :  { %376 = vadd.xlane.f32.xlu2 %v375_v24 }
 0x512   :  { %v374_v31 = vpop.xlane.xlu0 %373 }
 0x513   :  { %v378_v32 = vmul.f32 %v374_v31, %v3401_v16 }
 0x515   :  { %v380_v34 = vadd.f32 1e-05, %v378_v32 }
 0x517   :  { %3064 = vrsqrt.f32 %v380_v34  ;;  %vm388_vm6 = vweird.f32 %v380_v34 }
 0x51a   :  { %v377_v39 = vpop.xlane.xlu2 %376 }
 0x51b   :  { %v379_v40 = vmul.f32 %v377_v39, %v3401_v16  ;;  %v542_v39 = vld [vmem:[#allocation2 + $0xa0] sm:$0xff] }
 0x51c   :  { %570 = vmatpush.msra.mxu0 %v542_v39 }
 0x51d   :  { %v3065_v42 = vpop.eup %3064  ;;  %v381_v43 = vadd.f32 1e-05, %v379_v40 }
 0x51e   :  { %v383_v45 = vmul.f32 %v3065_v42, %v380_v34  ;;  %vm389_vm5 = vweird.f32 %v3065_v42 }
 0x51f   :  { %3066 = vrsqrt.f32 %v381_v43  ;;  %vm390_vm7 = vmor %vm388_vm6, %vm389_vm5  ;;  %vm398_vm9 = vweird.f32 %v381_v43 }
 0x520   :  { %v384_v46 = vmul.f32 %v3065_v42, %v383_v45 }
 0x522   :  { %v385_v47 = vmul.f32 0.5, %v384_v46 }
 0x524   :  { %v386_v48 = vsub.f32 1.5, %v385_v47 }
 0x525   :  { %v3067_v49 = vpop.eup %3066 }
 0x526   :  { %v387_v50 = vmul.f32 %v3065_v42, %v386_v48  ;;  %v393_v51 = vmul.f32 %v3067_v49, %v381_v43  ;;  %vm399_vm8 = vweird.f32 %v3067_v49 }
 0x527   :  { %vm400_vm10 = vmor %vm398_vm9, %vm399_vm8 }
 0x528   :  { %v391_v53 = vsel %vm390_vm7, %v3065_v42, %v387_v50  ;;  %v394_v54 = vmul.f32 %v3067_v49, %v393_v51 }
 0x529   :  { %v402_v55 = vmul.f32 %v391_v53, %v368_v18 }
 0x52a   :  { %v395_v57 = vmul.f32 0.5, %v394_v54  ;;  %v3009_v54 = vld [vmem:[%s4193_s5 + $0x6] ss:$0 sm:$0xff] }
 0x52b   :  { %v405_v58 = vmul.f32 %v3005_v52, %v402_v55 }
 0x52c   :  { %v396_v59 = vsub.f32 1.5, %v395_v57 }
 0x52d   :  { %v408_v60 = vadd.f32 %v3006_v56, %v405_v58  ;;  %v3010_v58 = vld [vmem:[%s4193_s5 + $0x7] ss:$0 sm:$0xff] }
 0x52e   :  { %v397_v61 = vmul.f32 %v3067_v49, %v396_v59 }
 0x52f   :  { %2779 = vmatmul.msk.f32.vlgmr.msrb.gmra.mxu0 %vm65_vm0, %v408_v60 }
 0x530   :  { %v401_v62 = vsel %vm400_vm10, %v3067_v49, %v397_v61 }
 0x531   :  { %v403_v63 = vmul.f32 %v401_v62, %v369_v22 }
 0x533   :  { %v406_v0 = vmul.f32 %v3005_v52, %v403_v63 }
 0x535   :  { %v409_v1 = vadd.f32 %v3006_v56, %v406_v0 }
 0x537   :  { %2780 = vmatmul.msk.f32.gmra.mxu0 %vm65_vm0, %v409_v1 }
 0x5ac   :  { %v448_v3 = vpop.f32.mrf.mxu0 }
 0x5ad   :  { %v449_v9 = vadd.f32 %v3007_v8, %v448_v3 }
 0x5af   :  { %v454_v10 = vmax.f32 %v449_v9, 0.0 }
 0x5b1   :  { %2781 = vmatmul.msk.f32.vlgmr.msrb.gmra.mxu3 %vm457_vm11, %v454_v10 }
 0x5b4   :  { %v451_v11 = vpop.f32.mrf.mxu0 }
 0x5b5   :  { %v452_v12 = vadd.f32 %v3007_v8, %v451_v11 }
 0x5b7   :  { %v455_v13 = vmax.f32 %v452_v12, 0.0 }
 0x5b9   :  { %2782 = vmatmul.msk.f32.gmra.mxu3 %vm457_vm11, %v455_v13 }
 0x634   :  { %v481_v15 = vpop.f32.mrf.mxu3 }
 0x635   :  { %v482_v4 = vadd.f32 %v3008_v14, %v481_v15 }
 0x637   :  { %v487_v17 = vadd.f32 %v482_v4, %v408_v60 }
 0x639   :  { %v491_v18 = vsel %vm65_vm0, %v487_v17, 0.0 }
 0x63a   :  { %492 = vadd.xlane.f32.xlu1 %v491_v18 }
 0x63c   :  { %v484_v19 = vpop.f32.mrf.mxu3 }
 0x63d   :  { %v485_v5 = vadd.f32 %v3008_v14, %v484_v19 }
 0x63f   :  { %v488_v20 = vadd.f32 %v485_v5, %v409_v1 }
 0x641   :  { %v494_v21 = vsel %vm65_vm0, %v488_v20, 0.0 }
 0x642   :  { %495 = vadd.xlane.f32.xlu2 %v494_v21 }
 0x6ad   :  { %v493_v22 = vpop.xlane.xlu1 %492 }
 0x6ae   :  { %v497_v23 = vmul.f32 %v493_v22, %v3401_v16 }
 0x6b0   :  { %v499_v24 = vsub.f32 %v487_v17, %v497_v23 }
 0x6b2   :  { %v501_v26 = vmul.f32 %v499_v24, %v499_v24 }
 0x6b4   :  { %v503_v27 = vsel %vm65_vm0, %v501_v26, 0.0 }
 0x6b5   :  { %504 = vadd.xlane.f32.xlu2 %v503_v27  ;;  %v496_v28 = vpop.xlane.xlu2 %495 }
 0x6b6   :  { %v498_v30 = vmul.f32 %v496_v28, %v3401_v16 }
 0x6b8   :  { %v500_v31 = vsub.f32 %v488_v20, %v498_v30 }
 0x6ba   :  { %v502_v32 = vmul.f32 %v500_v31, %v500_v31 }
 0x6bc   :  { %v506_v34 = vsel %vm65_vm0, %v502_v32, 0.0 }
 0x6bd   :  { %507 = vadd.xlane.f32.xlu2 %v506_v34 }
 0x728   :  { %v505_v40 = vpop.xlane.xlu2 %504 }
 0x729   :  { %v509_v41 = vmul.f32 %v505_v40, %v3401_v16 }
 0x72b   :  { %v511_v42 = vadd.f32 1e-05, %v509_v41 }
 0x72d   :  { %3068 = vrsqrt.f32 %v511_v42  ;;  %vm519_vm13 = vweird.f32 %v511_v42 }
 0x730   :  { %v508_v43 = vpop.xlane.xlu2 %507 }
 0x731   :  { %v510_v44 = vmul.f32 %v508_v43, %v3401_v16 }
 0x733   :  { %v3069_v45 = vpop.eup %3068  ;;  %v512_v46 = vadd.f32 1e-05, %v510_v44 }
 0x734   :  { %v514_v47 = vmul.f32 %v3069_v45, %v511_v42  ;;  %vm520_vm12 = vweird.f32 %v3069_v45 }
 0x735   :  { %3070 = vrsqrt.f32 %v512_v46  ;;  %vm521_vm14 = vmor %vm519_vm13, %vm520_vm12  ;;  %vm529_vm2 = vweird.f32 %v512_v46 }
 0x736   :  { %v515_v48 = vmul.f32 %v3069_v45, %v514_v47 }
 0x738   :  { %v516_v49 = vmul.f32 0.5, %v515_v48 }
 0x73a   :  { %v517_v50 = vsub.f32 1.5, %v516_v49 }
 0x73b   :  { %v3071_v51 = vpop.eup %3070 }
 0x73c   :  { %v518_v52 = vmul.f32 %v3069_v45, %v517_v50  ;;  %v524_v53 = vmul.f32 %v3071_v51, %v512_v46  ;;  %vm530_vm15 = vweird.f32 %v3071_v51 }
 0x73d   :  { %vm531_vm3 = vmor %vm529_vm2, %vm530_vm15 }
 0x73e   :  { %v522_v55 = vsel %vm521_vm14, %v3069_v45, %v518_v52  ;;  %v525_v56 = vmul.f32 %v3071_v51, %v524_v53 }
 0x73f   :  { %v533_v57 = vmul.f32 %v522_v55, %v499_v24 }
 0x740   :  { %v526_v59 = vmul.f32 0.5, %v525_v56 }
 0x741   :  { %v536_v60 = vmul.f32 %v3009_v54, %v533_v57 }
 0x742   :  { %v527_v61 = vsub.f32 1.5, %v526_v59 }
 0x743   :  { %v3439_v62 = vadd.f32 %v3010_v58, %v536_v60 }
 0x744   :  { %v528_v63 = vmul.f32 %v3071_v51, %v527_v61 }
 0x745   :  { %2784 = vmatmul.msk.f32.vlgmr.msra.gmra.mxu0 %vm65_vm0, %v3439_v62 }
 0x746   :  { %v532_v0 = vsel %vm531_vm3, %v3071_v51, %v528_v63 }
 0x747   :  { %v534_v1 = vmul.f32 %v532_v0, %v500_v31 }
 0x749   :  { %v537_v2 = vmul.f32 %v3009_v54, %v534_v1 }
 0x74b   :  { %v3443_v6 = vadd.f32 %v3010_v58, %v537_v2 }
 0x74d   :  { %2785 = vmatmul.msk.f32.gmra.mxu0 %vm65_vm0, %v3443_v6 }
 0x7c2   :  { %v572_v8 = vpop.f32.mrf.mxu0 }
 0x7c3   :  { %v573_v3 = vadd.f32 %v3011_v7, %v572_v8 }
 0x7c5   :  { %585 = vrot.lane.b32.xlu0 %v573_v3, %s3252_s22 }
 0x7ca   :  { %v575_v9 = vpop.f32.mrf.mxu0 }
 0x7cb   :  { %v576_v10 = vadd.f32 %v3011_v7, %v575_v9 }
 0x7cd   :  { %591 = vrot.lane.b32.xlu0 %v576_v10, %s3251_s21  ;;  %587 = vrot.lane.b32.xlu2 %v576_v10, %s3252_s22  ;;  %v2958_v14 = vpack.i.bf16 %v573_v3, %v576_v10 }
 0x827   :  { %v588_v11 = vpop.permute.xlu2 %587 }
 0x828   :  { %595 = vrot.lane.b32.xlu1 %v588_v11, %s3251_s21 }
 0x837   :  { %v586_v12 = vpop.permute.xlu0 %585 }
 0x838   :  { %v2953_v13 = vpack.i.bf16 %v586_v12, %v588_v11  ;;  %593 = vrot.lane.b32.xlu2 %v586_v12, %s3251_s21 }
 0x83a   :  { %2954 = vrot.lane.b32.xlu1 %v2953_v13, %s3253_s0 }
 0x83f   :  { %v592_v17 = vpop.permute.xlu0 %591 }
 0x840   :  { %589 = vrot.lane.b32.xlu2 %v573_v3, %s3251_s21 }
 0x842   :  { %2959 = vrot.lane.b32.xlu1 %v2958_v14, %s3253_s0 }
 0x892   :  { %v594_v4 = vpop.permute.xlu2 %593 }
 0x89a   :  { %v596_v15 = vpop.permute.xlu1 %595  ;;  %v590_v18 = vpop.permute.xlu2 %589 }
 0x89b   :  { %2787 = vmatpush.xpose.msk.msrb.mxu2 %vm114_vm1, %v596_v15 }
 0x89f   :  { %2788 = vmatpush.xpose.msk.msrb.mxu2 %vm114_vm1, %v594_v4 }
 0x8a3   :  { %2789 = vmatpush.xpose.msk.msrb.mxu2 %vm114_vm1, %v592_v17 }
 0x8a7   :  { %2790 = vmatpush.xpose.msk.msrb.mxu2 %vm114_vm1, %v590_v18 }
 0x8aa   :  { %2791 = vmatmul.msk.f32.vlgmr.msrb.gmra.mxu2 %vm114_vm1, %v573_v3 }
 0x8ac   :  { %v2955_v19 = vpop.permute.xlu1 %2954 }
 0x8ad   :  { %v2956_v5 = vunpack.i.l.bf16 %v2955_v19  ;;  %v2957_v20 = vunpack.i.h.bf16 %v2955_v19 }
 0x8af   :  { %714 = vmatpush.msra.mxu3 %v2956_v5 }
 0x8b1   :  { %715 = vmatpush.msra.mxu3 %v2957_v20 }
 0x8b2   :  { %2792 = vmatmul.msk.f32.gmra.mxu2 %vm114_vm1, %v576_v10 }
 0x8b4   :  { %v2960_v21 = vpop.permute.xlu1 %2959 }
 0x8b5   :  { %v2961_v22 = vunpack.i.l.bf16 %v2960_v21  ;;  %v2962_v23 = vunpack.i.h.bf16 %v2960_v21 }
 0x8b7   :  { %716 = vmatpush.msra.mxu3 %v2961_v22 }
 0x8b9   :  { %717 = vmatpush.msra.mxu3 %v2962_v23  ;;  %v581_v23 = vld [vmem:[#allocation2 + $0xd8] sm:$0xff] }
 0x8ba   :  { %2793 = vmatmul.msk.f32.gmra.mxu2 %vm114_vm1, %v586_v12  ;;  %820 = vmatpush.msrb.mxu1 %v581_v23  ;;  %v1017_v23 = vld [vmem:[%s4194_s6] sm:$0xff] }
 0x8c2   :  { %2794 = vmatmul.msk.f32.gmra.mxu2 %vm114_vm1, %v588_v11 }
 0x92d   :  { %v630_v24 = vpop.f32.mrf.mxu2 }
 0x92e   :  { %v631_v26 = vadd.f32 %v630_v24, %v3349_v25  ;;  %v580_v24 = vld [vmem:[#allocation2 + $0xd0] sm:$0xff] }
 0x92f   :  { %821 = vmatpush.msrb.mxu1 %v580_v24 }
 0x930   :  { %v642_v27 = vsel %vm65_vm0, %v631_v26, -inf }
 0x931   :  { %643 = vmax.xlane.f32.xlu0 %v642_v27 }
 0x935   :  { %v633_v28 = vpop.f32.mrf.mxu2 }
 0x936   :  { %v634_v30 = vadd.f32 %v633_v28, %v3356_v29  ;;  %v578_v28 = vld [vmem:[#allocation2 + $0xc0] sm:$0xff] }
 0x938   :  { %v645_v31 = vsel %vm65_vm0, %v634_v30, -inf }
 0x939   :  { %646 = vmax.xlane.f32.xlu2 %v645_v31 }
 0x93d   :  { %v636_v32 = vpop.f32.mrf.mxu2 }
 0x93e   :  { %v637_v34 = vadd.f32 %v636_v32, %v3363_v33 }
 0x940   :  { %v648_v35 = vsel %vm65_vm0, %v637_v34, -inf }
 0x941   :  { %649 = vmax.xlane.f32.xlu1 %v648_v35 }
 0x945   :  { %v639_v36 = vpop.f32.mrf.mxu2 }
 0x946   :  { %v640_v38 = vadd.f32 %v639_v36, %v3370_v37 }
 0x948   :  { %v651_v25 = vsel %vm65_vm0, %v640_v38, -inf }
 0x949   :  { %652 = vmax.xlane.f32.xlu0 %v651_v25 }
 0x9a4   :  { %v644_v39 = vpop.xlane.xlu0 %643 }
 0x9a5   :  { %v654_v40 = vsub.f32 %v631_v26, %v644_v39  ;;  %v579_v26 = vld [vmem:[#allocation2 + $0xc8] sm:$0xff] }
 0x9a6   :  { %822 = vmatpush.msrb.mxu1 %v579_v26 }
 0x9a7   :  { %v658_v41 = vmul.f32 1.442695, %v654_v40 }
 0x9a8   :  { %823 = vmatpush.msrb.mxu1 %v578_v28 }
 0x9a9   :  { %3072 = vpow2.f32 %v658_v41 }
 0x9ac   :  { %v647_v29 = vpop.xlane.xlu2 %646 }
 0x9ad   :  { %v655_v42 = vsub.f32 %v634_v30, %v647_v29 }
 0x9af   :  { %v3073_v43 = vpop.eup %3072  ;;  %v660_v44 = vmul.f32 1.442695, %v655_v42 }
 0x9b0   :  { %2795 = vmatmul.msk.f32.vlgmr.msra.gmra.mxu3 %vm65_vm0, %v3073_v43  ;;  %v666_v54 = vsel %vm65_vm0, %v3073_v43, 0.0 }
 0x9b1   :  { %3074 = vpow2.f32 %v660_v44 }
 0x9b4   :  { %v650_v33 = vpop.xlane.xlu1 %649 }
 0x9b5   :  { %v656_v45 = vsub.f32 %v637_v34, %v650_v33 }
 0x9b7   :  { %v3075_v46 = vpop.eup %3074  ;;  %v662_v47 = vmul.f32 1.442695, %v656_v45 }
 0x9b8   :  { %2796 = vmatmul.msk.f32.gmra.mxu3 %vm65_vm0, %v3075_v46  ;;  %v669_v55 = vsel %vm65_vm0, %v3075_v46, 0.0 }
 0x9b9   :  { %3076 = vpow2.f32 %v662_v47 }
 0x9bc   :  { %v653_v37 = vpop.xlane.xlu0 %652 }
 0x9bd   :  { %v657_v48 = vsub.f32 %v640_v38, %v653_v37 }
 0x9bf   :  { %v3077_v49 = vpop.eup %3076  ;;  %v664_v50 = vmul.f32 1.442695, %v657_v48 }
 0x9c0   :  { %2797 = vmatmul.msk.f32.gmra.mxu3 %vm65_vm0, %v3077_v49  ;;  %v672_v51 = vsel %vm65_vm0, %v3077_v49, 0.0 }
 0x9c1   :  { %3078 = vpow2.f32 %v664_v50  ;;  %673 = vadd.xlane.f32.xlu2 %v672_v51 }
 0x9c7   :  { %v3079_v52 = vpop.eup %3078 }
 0x9c8   :  { %2798 = vmatmul.msk.f32.gmra.mxu3 %vm65_vm0, %v3079_v52  ;;  %v675_v53 = vsel %vm65_vm0, %v3079_v52, 0.0 }
 0x9c9   :  { %676 = vadd.xlane.f32.xlu0 %v675_v53  ;;  %667 = vadd.xlane.f32.xlu2 %v666_v54 }
 0x9d1   :  { %670 = vadd.xlane.f32.xlu0 %v669_v55  ;;  %v3012_v55 = vld [vmem:[%s4193_s5 + $0x9] ss:$0 sm:$0xff] }
 0xa33   :  { %v3482_v56 = vpop.f32.mrf.mxu3 }
 0xa34   :  { %v674_v57 = vpop.xlane.xlu2 %673 }
 0xa35   :  { %3080 = vrcp.f32 %v674_v57  ;;  %v770_v0 = vand.u32 2147483648, %v674_v57  ;;  %v768_v2 = vand.u32 2147483647, %v674_v57  ;;  %vm764_vm5 = vweird.f32 %v674_v57 }
 0xa37   :  { %v771_v9 = vor.u32 1.1754944e-38, %v770_v0  ;;  %vm769_vm7 = vcmp.eq.f32.partialorder %v768_v2, 8.507059e+37 }
 0xa3b   :  { %v3081_v58 = vpop.eup %3080  ;;  %v3484_v59 = vpop.f32.mrf.mxu3 }
 0xa3c   :  { %v760_v60 = vmul.f32 %v3081_v58, %v674_v57  ;;  %v677_v61 = vpop.xlane.xlu0 %676  ;;  %vm765_vm4 = vweird.f32 %v3081_v58  ;;  %v668_v27 = vpop.xlane.xlu2 %667 }
 0xa3d   :  { %3082 = vrcp.f32 %v677_v61  ;;  %vm766_vm6 = vmor %vm764_vm5, %vm765_vm4  ;;  %v784_v15 = vand.u32 2147483648, %v677_v61  ;;  %v782_v17 = vand.u32 2147483647, %v677_v61  ;;  %vm778_vm9 = vweird.f32 %v677_v61 }
 0xa3e   :  { %v761_v63 = vsub.f32 1.0, %v760_v60  ;;  %3084 = vrcp.f32 %v668_v27  ;;  %v742_v40 = vand.u32 2147483648, %v668_v27  ;;  %vm736_vm14 = vweird.f32 %v668_v27 }
 0xa3f   :  { %v785_v19 = vor.u32 1.1754944e-38, %v784_v15  ;;  %vm783_vm12 = vcmp.eq.f32.partialorder %v782_v17, 8.507059e+37  ;;  %v740_v41 = vand.u32 2147483647, %v668_v27  ;;  %v885_v15 = vld [vmem:[#allocation2 + $0xe0] sm:$0xff] }
 0xa40   :  { %v762_v1 = vmul.f32 %v3081_v58, %v761_v63  ;;  %v743_v43 = vor.u32 1.1754944e-38, %v742_v40 }
 0xa41   :  { %vm741_vm2 = vcmp.eq.f32.partialorder %v740_v41, 8.507059e+37 }
 0xa42   :  { %v763_v7 = vadd.f32 %v3081_v58, %v762_v1 }
 0xa43   :  { %v3083_v8 = vpop.eup %3082  ;;  %v725_v3 = vpop.f32.mrf.mxu3 }
 0xa44   :  { %v774_v10 = vmul.f32 %v3083_v8, %v677_v61  ;;  %v767_v11 = vsel %vm766_vm6, %v3081_v58, %v763_v7  ;;  %vm779_vm8 = vweird.f32 %v3083_v8  ;;  %v671_v30 = vpop.xlane.xlu0 %670  ;;  %v3085_v31 = vpop.eup %3084 }
 0xa45   :  { %v772_v12 = vsel %vm769_vm7, %v771_v9, %v767_v11  ;;  %vm780_vm10 = vmor %vm778_vm9, %vm779_vm8  ;;  %3086 = vrcp.f32 %v671_v30  ;;  %v732_v32 = vmul.f32 %v3085_v31, %v668_v27  ;;  %vm737_vm13 = vweird.f32 %v3085_v31 }
 0xa46   :  { %v775_v13 = vsub.f32 1.0, %v774_v10  ;;  %v789_v14 = vmul.f32 %v772_v12, %v725_v3  ;;  %vm738_vm15 = vmor %vm736_vm14, %vm737_vm13  ;;  %v756_v45 = vand.u32 2147483648, %v671_v30  ;;  %vm750_vm4 = vweird.f32 %v671_v30  ;;  %v888_v12 = vld [vmem:[#allocation2 + $0xf8] sm:$0xff] }
 0xa47   :  { %v733_v34 = vsub.f32 1.0, %v732_v32  ;;  %v754_v46 = vand.u32 2147483647, %v671_v30  ;;  %918 = vmatpush.msrb.mxu0 %v888_v12 }
 0xa48   :  { %793 = vrot.lane.b32.xlu1 %v789_v14, %s3254_s10  ;;  %v776_v4 = vmul.f32 %v3083_v8, %v775_v13  ;;  %v757_v50 = vor.u32 1.1754944e-38, %v756_v45  ;;  %v887_v13 = vld [vmem:[#allocation2 + $0xf0] sm:$0xff]  ;;  %v886_v14 = vld [vmem:[#allocation2 + $0xe8] sm:$0xff] }
 0xa49   :  { %v734_v36 = vmul.f32 %v3085_v31, %v733_v34  ;;  %vm755_vm6 = vcmp.eq.f32.partialorder %v754_v46, 8.507059e+37  ;;  %919 = vmatpush.msrb.mxu0 %v887_v13  ;;  %v3013_v34 = vld [vmem:[%s4193_s5 + $0xa] ss:$0 sm:$0xff] }
 0xa4a   :  { %v777_v18 = vadd.f32 %v3083_v8, %v776_v4 }
 0xa4b   :  { %v728_v20 = vpop.f32.mrf.mxu3  ;;  %v3087_v35 = vpop.eup %3086  ;;  %v735_v25 = vadd.f32 %v3085_v31, %v734_v36  ;;  %920 = vmatpush.msrb.mxu0 %v886_v14 }
 0xa4c   :  { %v781_v5 = vsel %vm780_vm10, %v3083_v8, %v777_v18  ;;  %v746_v38 = vmul.f32 %v3087_v35, %v671_v30  ;;  %vm751_vm3 = vweird.f32 %v3087_v35 }
 0xa4d   :  { %v786_v21 = vsel %vm783_vm12, %v785_v19, %v781_v5  ;;  %v739_v42 = vsel %vm738_vm15, %v3085_v31, %v735_v25  ;;  %vm752_vm5 = vmor %vm750_vm4, %vm751_vm3  ;;  %921 = vmatpush.msrb.mxu0 %v885_v15  ;;  %v1020_v19 = vld [vmem:[%s4194_s6 + $0x18] sm:$0xff]  ;;  %v1019_v5 = vld [vmem:[%s4194_s6 + $0x10] sm:$0xff] }
 0xa4e   :  { %v790_v22 = vmul.f32 %v786_v21, %v728_v20  ;;  %v747_v39 = vsub.f32 1.0, %v746_v38  ;;  %v744_v44 = vsel %vm741_vm2, %v743_v43, %v739_v42  ;;  %v1018_v20 = vld [vmem:[%s4194_s6 + $0x8] sm:$0xff]  ;;  %v897_v38 = vld [vmem:[#allocation2 + $0x138] sm:$0xff]  ;;  %v896_v25 = vld [vmem:[#allocation2 + $0x130] sm:$0xff] }
 0xa4f   :  { %v787_v47 = vmul.f32 %v744_v44, %v3482_v56  ;;  %1041 = vmatpush.msra.mxu0 %v1020_v19  ;;  %946 = vmatpush.msra.mxu1 %v897_v38  ;;  %v895_v42 = vld [vmem:[#allocation2 + $0x128] sm:$0xff] }
 0xa50   :  { %795 = vrot.lane.b32.xlu2 %v790_v22, %s3254_s10  ;;  %v748_v29 = vmul.f32 %v3087_v35, %v747_v39 }
 0xa51   :  { %1042 = vmatpush.msra.mxu0 %v1019_v5  ;;  %947 = vmatpush.msra.mxu1 %v896_v25  ;;  %v56_v25 = vld [vmem:[%s4191_s3 + $0x18] sm:$0xff] }
 0xa52   :  { %v749_v33 = vadd.f32 %v3087_v35, %v748_v29  ;;  %v3014_v29 = vld [vmem:[%s4193_s5 + $0xb] ss:$0 sm:$0xff] }
 0xa53   :  { %1043 = vmatpush.msra.mxu0 %v1018_v20  ;;  %948 = vmatpush.msra.mxu1 %v895_v42  ;;  %v53_v20 = vld [vmem:[%s4191_s3] sm:$0xff] }
 0xa54   :  { %v753_v49 = vsel %vm752_vm5, %v3087_v35, %v749_v33  ;;  %v894_v33 = vld [vmem:[#allocation2 + $0x120] sm:$0xff] }
 0xa55   :  { %v758_v51 = vsel %vm755_vm6, %v757_v50, %v753_v49  ;;  %1044 = vmatpush.msra.mxu0 %v1017_v23  ;;  %949 = vmatpush.msra.mxu1 %v894_v33 }
 0xa56   :  { %v788_v53 = vmul.f32 %v758_v51, %v3484_v59 }
 0xaaa   :  { %v796_v52 = vpop.permute.xlu2 %795 }
 0xaab   :  { %v800_v54 = vsel %vm114_vm1, %v788_v53, %v796_v52  ;;  %v3541_v52 = vld [vmem:[%s4189_s1] sm:$0xff]  ;;  %v3548_v53 = vld [vmem:[%s4189_s1 + $0x8] sm:$0xff] }
 0xaba   :  { %v794_v37 = vpop.permute.xlu1 %793 }
 0xabb   :  { %v799_v48 = vsel %vm114_vm1, %v787_v47, %v794_v37  ;;  %v893_v47 = vld [vmem:[#allocation2 + $0x118] sm:$0xff] }
 0xabc   :  { %2799 = vmatmul.msk.f32.vlgmr.msrb.gmra.mxu1 %vm65_vm0, %v799_v48 }
 0xabd   :  { %950 = vmatpush.msra.mxu1 %v893_v47 }
 0xac4   :  { %2800 = vmatmul.msk.f32.gmra.mxu1 %vm65_vm0, %v800_v54  ;;  %v892_v54 = vld [vmem:[#allocation2 + $0x110] sm:$0xff] }
 0xac5   :  { %951 = vmatpush.msra.mxu1 %v892_v54 }
 0xb39   :  { %v825_v56 = vpop.f32.mrf.mxu1 }
 0xb3a   :  { %v826_v57 = vadd.f32 %v3012_v55, %v825_v56  ;;  %v890_v56 = vld [vmem:[#allocation2 + $0x100] sm:$0xff] }
 0xb3c   :  { %v831_v58 = vadd.f32 %v826_v57, %v3439_v62  ;;  %v3015_v57 = vld [vmem:[%s4193_s5 + $0xc] ss:$0 sm:$0xff] }
 0xb3e   :  { %v835_v60 = vsel %vm65_vm0, %v831_v58, 0.0 }
 0xb3f   :  { %836 = vadd.xlane.f32.xlu0 %v835_v60 }
 0xb41   :  { %v828_v61 = vpop.f32.mrf.mxu1 }
 0xb42   :  { %v829_v63 = vadd.f32 %v3012_v55, %v828_v61  ;;  %v891_v55 = vld [vmem:[#allocation2 + $0x108] sm:$0xff] }
 0xb43   :  { %952 = vmatpush.msra.mxu1 %v891_v55 }
 0xb44   :  { %v832_v0 = vadd.f32 %v829_v63, %v3443_v6 }
 0xb45   :  { %953 = vmatpush.msra.mxu1 %v890_v56 }
 0xb46   :  { %v838_v59 = vsel %vm65_vm0, %v832_v0, 0.0 }
 0xb47   :  { %839 = vadd.xlane.f32.xlu0 %v838_v59 }
 0xbb2   :  { %v837_v1 = vpop.xlane.xlu0 %836 }
 0xbb3   :  { %v841_v2 = vmul.f32 %v837_v1, %v3401_v16  ;;  %v3016_v1 = vld [vmem:[%s4195_s7] ss:$0 sm:$0xff] }
 0xbb5   :  { %v843_v7 = vsub.f32 %v831_v58, %v841_v2 }
 0xbb7   :  { %v845_v8 = vmul.f32 %v843_v7, %v843_v7 }
 0xbb9   :  { %v847_v3 = vsel %vm65_vm0, %v845_v8, 0.0 }
 0xbba   :  { %848 = vadd.xlane.f32.xlu0 %v847_v3  ;;  %v840_v9 = vpop.xlane.xlu0 %839 }
 0xbbb   :  { %v842_v62 = vmul.f32 %v840_v9, %v3401_v16 }
 0xbbd   :  { %v3504_v10 = vsub.f32 %v832_v0, %v842_v62 }
 0xbbf   :  { %v846_v11 = vmul.f32 %v3504_v10, %v3504_v10 }
 0xbc1   :  { %v850_v6 = vsel %vm65_vm0, %v846_v11, 0.0 }
 0xbc2   :  { %851 = vadd.xlane.f32.xlu1 %v850_v6 }
 0xc2d   :  { %v849_v4 = vpop.xlane.xlu0 %848 }
 0xc2e   :  { %v853_v17 = vmul.f32 %v849_v4, %v3401_v16 }
 0xc30   :  { %v855_v18 = vadd.f32 1e-05, %v853_v17 }
 0xc32   :  { %3088 = vrsqrt.f32 %v855_v18  ;;  %vm863_vm8 = vweird.f32 %v855_v18 }
 0xc35   :  { %v852_v21 = vpop.xlane.xlu1 %851 }
 0xc36   :  { %v854_v22 = vmul.f32 %v852_v21, %v3401_v16 }
 0xc38   :  { %v3089_v24 = vpop.eup %3088  ;;  %v856_v26 = vadd.f32 1e-05, %v854_v22 }
 0xc39   :  { %v858_v27 = vmul.f32 %v3089_v24, %v855_v18  ;;  %vm864_vm7 = vweird.f32 %v3089_v24 }
 0xc3a   :  { %3090 = vrsqrt.f32 %v856_v26  ;;  %vm865_vm9 = vmor %vm863_vm8, %vm864_vm7  ;;  %vm873_vm12 = vweird.f32 %v856_v26 }
 0xc3b   :  { %v859_v28 = vmul.f32 %v3089_v24, %v858_v27 }
 0xc3d   :  { %v860_v30 = vmul.f32 0.5, %v859_v28 }
 0xc3f   :  { %v861_v31 = vsub.f32 1.5, %v860_v30 }
 0xc40   :  { %v3091_v32 = vpop.eup %3090 }
 0xc41   :  { %v862_v35 = vmul.f32 %v3089_v24, %v861_v31  ;;  %v868_v36 = vmul.f32 %v3091_v32, %v856_v26  ;;  %vm874_vm10 = vweird.f32 %v3091_v32  ;;  %v55_v31 = vld [vmem:[%s4191_s3 + $0x10] sm:$0xff] }
 0xc42   :  { %vm875_vm13 = vmor %vm873_vm12, %vm874_vm10 }
 0xc43   :  { %v866_v39 = vsel %vm865_vm9, %v3089_v24, %v862_v35  ;;  %v869_v40 = vmul.f32 %v3091_v32, %v868_v36  ;;  %v54_v24 = vld [vmem:[%s4191_s3 + $0x8] sm:$0xff] }
 0xc44   :  { %v877_v41 = vmul.f32 %v866_v39, %v843_v7 }
 0xc45   :  { %v870_v43 = vmul.f32 0.5, %v869_v40 }
 0xc46   :  { %v880_v44 = vmul.f32 %v3013_v34, %v877_v41 }
 0xc47   :  { %v871_v45 = vsub.f32 1.5, %v870_v43 }
 0xc48   :  { %v3529_v46 = vadd.f32 %v3014_v29, %v880_v44 }
 0xc49   :  { %v872_v37 = vmul.f32 %v3091_v32, %v871_v45 }
 0xc4a   :  { %2805 = vmatmul.msk.f32.vlgmr.msrb.gmra.mxu0 %vm65_vm0, %v3529_v46 }
 0xc4b   :  { %v876_v48 = vsel %vm875_vm13, %v3091_v32, %v872_v37  ;;  %v3017_v32 = vld [vmem:[%s4193_s5 + $0xd] ss:$0 sm:$0xff] }
 0xc4c   :  { %v878_v49 = vmul.f32 %v876_v48, %v3504_v10 }
 0xc4e   :  { %v881_v50 = vmul.f32 %v3013_v34, %v878_v49 }
 0xc50   :  { %v3534_v51 = vadd.f32 %v3014_v29, %v881_v50 }
 0xc52   :  { %2806 = vmatmul.msk.f32.gmra.mxu0 %vm65_vm0, %v3534_v51 }
 0xc5a   :  { %2811 = vmatmul.msk.f32.vlgmr.msra.gmra.mxu0 %vm65_vm0, %v3541_v52 }
 0xc62   :  { %2812 = vmatmul.msk.f32.gmra.mxu0 %vm65_vm0, %v3548_v53 }
 0xcc7   :  { %v923_v58 = vpop.f32.mrf.mxu0 }
 0xcc8   :  { %v924_v60 = vadd.f32 %v3015_v57, %v923_v58 }
 0xcca   :  { %v929_v61 = vmax.f32 %v924_v60, 0.0 }
 0xccc   :  { %2807 = vmatmul.msk.f32.vlgmr.msra.gmra.mxu1 %vm457_vm11, %v929_v61 }
 0xccf   :  { %v926_v63 = vpop.f32.mrf.mxu0 }
 0xcd0   :  { %v927_v0 = vadd.f32 %v3015_v57, %v926_v63 }
 0xcd2   :  { %v930_v59 = vmax.f32 %v927_v0, 0.0 }
 0xcd4   :  { %2808 = vmatmul.msk.f32.gmra.mxu1 %vm457_vm11, %v930_v59 }
 0xcd7   :  { %v1046_v2 = vpop.f32.mrf.mxu0 }
 0xcd8   :  { %v1047_v7 = vadd.f32 %v3016_v1, %v1046_v2 }
 0xcda   :  { %1059 = vrot.lane.b32.xlu0 %v1047_v7, %s3252_s22 }
 0xcdf   :  { %v1049_v8 = vpop.f32.mrf.mxu0 }
 0xce0   :  { %v1050_v3 = vadd.f32 %v3016_v1, %v1049_v8 }
 0xce2   :  { %v2968_v9 = vpack.i.bf16 %v1047_v7, %v1050_v3  ;;  %1061 = vrot.lane.b32.xlu2 %v1050_v3, %s3252_s22  ;;  %1065 = vrot.lane.b32.xlu0 %v1050_v3, %s3251_s21 }
 0xce4   :  { %2969 = vrot.lane.b32.xlu1 %v2968_v9, %s3253_s0 }
 0xd3c   :  { %v1062_v62 = vpop.permute.xlu2 %1061 }
 0xd3d   :  { %1069 = vrot.lane.b32.xlu2 %v1062_v62, %s3251_s21 }
 0xd49   :  { %v955_v30 = vpop.f32.mrf.mxu1 }
 0xd4a   :  { %v956_v36 = vadd.f32 %v3017_v32, %v955_v30 }
 0xd4c   :  { %v1060_v10 = vpop.permute.xlu0 %1059  ;;  %v3595_v39 = vadd.f32 %v956_v36, %v3529_v46  ;;  %v1054_v36 = vld [vmem:[%s4194_s6 + $0x30] sm:$0xff] }
 0xd4d   :  { %1067 = vrot.lane.b32.xlu2 %v1060_v10, %s3251_s21  ;;  %v2963_v11 = vpack.i.bf16 %v1060_v10, %v1062_v62 }
 0xd4e   :  { %v965_v44 = vsel %vm65_vm0, %v3595_v39, 0.0 }
 0xd51   :  { %v958_v40 = vpop.f32.mrf.mxu1 }
 0xd52   :  { %v959_v42 = vadd.f32 %v3017_v32, %v958_v40 }
 0xd54   :  { %v1066_v13 = vpop.permute.xlu0 %1065  ;;  %v3601_v33 = vadd.f32 %v959_v42, %v3534_v51 }
 0xd55   :  { %1063 = vrot.lane.b32.xlu2 %v1047_v7, %s3251_s21 }
 0xd56   :  { %v2970_v17 = vpop.permute.xlu1 %2969  ;;  %v968_v45 = vsel %vm65_vm0, %v3601_v33, 0.0 }
 0xd57   :  { %v2971_v19 = vunpack.i.l.bf16 %v2970_v17  ;;  %v2972_v5 = vunpack.i.h.bf16 %v2970_v17 }
 0xd5d   :  { %2964 = vrot.lane.b32.xlu2 %v2963_v11, %s3253_s0 }
 0xd97   :  { %v1070_v6 = vpop.permute.xlu2 %1069 }
 0xd98   :  { %2813 = vmatpush.xpose.msk.msra.mxu2 %vm114_vm1, %v1070_v6 }
 0xda7   :  { %v1068_v12 = vpop.permute.xlu2 %1067 }
 0xda8   :  { %2814 = vmatpush.xpose.msk.msra.mxu2 %vm114_vm1, %v1068_v12 }
 0xdac   :  { %2815 = vmatpush.xpose.msk.msra.mxu2 %vm114_vm1, %v1066_v13 }
 0xdaf   :  { %v1064_v14 = vpop.permute.xlu2 %1063 }
 0xdb0   :  { %2816 = vmatpush.xpose.msk.msra.mxu2 %vm114_vm1, %v1064_v14 }
 0xdb3   :  { %2817 = vmatmul.msk.f32.vlgmr.msra.gmra.mxu2 %vm114_vm1, %v1047_v7 }
 0xdb7   :  { %v2965_v15 = vpop.permute.xlu2 %2964 }
 0xdb8   :  { %v2966_v4 = vunpack.i.l.bf16 %v2965_v15  ;;  %v2967_v18 = vunpack.i.h.bf16 %v2965_v15 }
 0xdba   :  { %1188 = vmatpush.msrb.mxu3 %v2966_v4 }
 0xdbb   :  { %2818 = vmatmul.msk.f32.gmra.mxu2 %vm114_vm1, %v1050_v3 }
 0xdbc   :  { %1189 = vmatpush.msrb.mxu3 %v2967_v18 }
 0xdbe   :  { %1190 = vmatpush.msrb.mxu3 %v2971_v19 }
 0xdc0   :  { %1191 = vmatpush.msrb.mxu3 %v2972_v5 }
 0xdc3   :  { %2819 = vmatmul.msk.f32.gmra.mxu2 %vm114_vm1, %v1060_v10 }
 0xdcb   :  { %2820 = vmatmul.msk.f32.gmra.mxu2 %vm114_vm1, %v1062_v62 }
 0xe36   :  { %v1104_v21 = vpop.f32.mrf.mxu2 }
 0xe37   :  { %v1105_v22 = vadd.f32 %v1104_v21, %v53_v20 }
 0xe39   :  { %v1116_v23 = vsel %vm65_vm0, %v1105_v22, -inf }
 0xe3a   :  { %1117 = vmax.xlane.f32.xlu0 %v1116_v23 }
 0xe3e   :  { %v1107_v26 = vpop.f32.mrf.mxu2 }
 0xe3f   :  { %v1108_v27 = vadd.f32 %v1107_v26, %v54_v24 }
 0xe41   :  { %v1119_v28 = vsel %vm65_vm0, %v1108_v27, -inf }
 0xe42   :  { %1120 = vmax.xlane.f32.xlu2 %v1119_v28 }
 0xe46   :  { %v1110_v34 = vpop.f32.mrf.mxu2 }
 0xe47   :  { %v1111_v35 = vadd.f32 %v1110_v34, %v55_v31 }
 0xe49   :  { %v1122_v38 = vsel %vm65_vm0, %v1111_v35, -inf }
 0xe4a   :  { %1123 = vmax.xlane.f32.xlu1 %v1122_v38  ;;  %v1053_v38 = vld [vmem:[%s4194_s6 + $0x28] sm:$0xff] }
 0xe4e   :  { %v1113_v41 = vpop.f32.mrf.mxu2 }
 0xe4f   :  { %v1114_v29 = vadd.f32 %v1113_v41, %v56_v25 }
 0xe51   :  { %v1125_v43 = vsel %vm65_vm0, %v1114_v29, -inf }
 0xe52   :  { %1126 = vmax.xlane.f32.xlu0 %v1125_v43  ;;  %966 = vadd.xlane.f32.xlu1 %v965_v44  ;;  %v1052_v44 = vld [vmem:[%s4194_s6 + $0x20] sm:$0xff] }
 0xe5a   :  { %969 = vadd.xlane.f32.xlu1 %v968_v45 }
 0xead   :  { %v1118_v46 = vpop.xlane.xlu0 %1117 }
 0xeae   :  { %v1128_v47 = vsub.f32 %v1105_v22, %v1118_v46 }
 0xeb0   :  { %v1132_v37 = vmul.f32 1.442695, %v1128_v47 }
 0xeb2   :  { %3092 = vpow2.f32 %v1132_v37 }
 0xeb5   :  { %v1121_v48 = vpop.xlane.xlu2 %1120 }
 0xeb6   :  { %v1129_v49 = vsub.f32 %v1108_v27, %v1121_v48 }
 0xeb8   :  { %v3093_v50 = vpop.eup %3092  ;;  %v1134_v54 = vmul.f32 1.442695, %v1129_v49 }
 0xeb9   :  { %2821 = vmatmul.msk.f32.vlgmr.msrb.gmra.mxu3 %vm65_vm0, %v3093_v50  ;;  %v1140_v1 = vsel %vm65_vm0, %v3093_v50, 0.0 }
 0xeba   :  { %3094 = vpow2.f32 %v1134_v54 }
 0xebd   :  { %v1124_v55 = vpop.xlane.xlu1 %1123 }
 0xebe   :  { %v1130_v56 = vsub.f32 %v1111_v35, %v1124_v55  ;;  %v1055_v35 = vld [vmem:[%s4194_s6 + $0x38] sm:$0xff] }
 0xebf   :  { %1294 = vmatpush.msrb.mxu1 %v1055_v35 }
 0xec0   :  { %v3095_v57 = vpop.eup %3094  ;;  %v1136_v51 = vmul.f32 1.442695, %v1130_v56 }
 0xec1   :  { %2822 = vmatmul.msk.f32.gmra.mxu3 %vm65_vm0, %v3095_v57  ;;  %v1143_v7 = vsel %vm65_vm0, %v3095_v57, 0.0  ;;  %1295 = vmatpush.msrb.mxu1 %v1054_v36 }
 0xec2   :  { %3096 = vpow2.f32 %v1136_v51 }
 0xec3   :  { %1296 = vmatpush.msrb.mxu1 %v1053_v38 }
 0xec5   :  { %v1127_v58 = vpop.xlane.xlu0 %1126  ;;  %v967_v25 = vpop.xlane.xlu1 %966  ;;  %1297 = vmatpush.msrb.mxu1 %v1052_v44 }
 0xec6   :  { %v1131_v60 = vsub.f32 %v1114_v29, %v1127_v58  ;;  %v971_v40 = vmul.f32 %v967_v25, %v3401_v16 }
 0xec8   :  { %v3097_v61 = vpop.eup %3096  ;;  %v1138_v63 = vmul.f32 1.442695, %v1131_v60  ;;  %v3630_v41 = vsub.f32 %v3595_v39, %v971_v40 }
 0xec9   :  { %2823 = vmatmul.msk.f32.gmra.mxu3 %vm65_vm0, %v3097_v61  ;;  %v1146_v0 = vsel %vm65_vm0, %v3097_v61, 0.0 }
 0xeca   :  { %3098 = vpow2.f32 %v1138_v63  ;;  %1147 = vadd.xlane.f32.xlu2 %v1146_v0  ;;  %v975_v29 = vmul.f32 %v3630_v41, %v3630_v41 }
 0xecc   :  { %v977_v42 = vsel %vm65_vm0, %v975_v29, 0.0 }
 0xecd   :  { %v970_v36 = vpop.xlane.xlu1 %969 }
 0xece   :  { %v972_v25 = vmul.f32 %v970_v36, %v3401_v16 }
 0xed0   :  { %v3099_v59 = vpop.eup %3098  ;;  %v974_v29 = vsub.f32 %v3601_v33, %v972_v25 }
 0xed1   :  { %2824 = vmatmul.msk.f32.gmra.mxu3 %vm65_vm0, %v3099_v59  ;;  %v1149_v2 = vsel %vm65_vm0, %v3099_v59, 0.0 }
 0xed2   :  { %1141 = vadd.xlane.f32.xlu2 %v1140_v1  ;;  %1150 = vadd.xlane.f32.xlu0 %v1149_v2 }
 0xeda   :  { %1144 = vadd.xlane.f32.xlu0 %v1143_v7 }
 0xf3c   :  { %v3613_v8 = vpop.f32.mrf.mxu3 }
 0xf3d   :  { %v1148_v3 = vpop.xlane.xlu2 %1147 }
 0xf3e   :  { %3100 = vrcp.f32 %v1148_v3  ;;  %v1244_v12 = vand.u32 2147483648, %v1148_v3  ;;  %v1242_v14 = vand.u32 2147483647, %v1148_v3  ;;  %vm1238_vm15 = vweird.f32 %v1148_v3 }
 0xf40   :  { %v1245_v18 = vor.u32 1.1754944e-38, %v1244_v12  ;;  %vm1243_vm3 = vcmp.eq.f32.partialorder %v1242_v14, 8.507059e+37  ;;  %v1396_v12 = vld [vmem:[%s4194_s6 + $0x70] sm:$0xff] }
 0xf44   :  { %v3101_v9 = vpop.eup %3100  ;;  %v3615_v62 = vpop.f32.mrf.mxu3 }
 0xf45   :  { %v1234_v10 = vmul.f32 %v3101_v9, %v1148_v3  ;;  %v1151_v11 = vpop.xlane.xlu0 %1150  ;;  %vm1239_vm14 = vweird.f32 %v3101_v9  ;;  %v1142_v43 = vpop.xlane.xlu2 %1141 }
 0xf46   :  { %3102 = vrcp.f32 %v1151_v11  ;;  %vm1240_vm2 = vmor %vm1238_vm15, %vm1239_vm14  ;;  %v1258_v23 = vand.u32 2147483648, %v1151_v11  ;;  %v1256_v26 = vand.u32 2147483647, %v1151_v11  ;;  %vm1252_vm5 = vweird.f32 %v1151_v11 }
 0xf47   :  { %v1235_v6 = vsub.f32 1.0, %v1234_v10  ;;  %3104 = vrcp.f32 %v1142_v43  ;;  %v1216_v39 = vand.u32 2147483648, %v1142_v43  ;;  %vm1210_vm9 = vweird.f32 %v1142_v43 }
 0xf48   :  { %v1259_v28 = vor.u32 1.1754944e-38, %v1258_v23  ;;  %vm1257_vm7 = vcmp.eq.f32.partialorder %v1256_v26, 8.507059e+37  ;;  %v1214_v49 = vand.u32 2147483647, %v1142_v43  ;;  %v3019_v26 = vld [vmem:[%s4193_s5 + $0xf] ss:$0 sm:$0xff] }
 0xf49   :  { %v1236_v13 = vmul.f32 %v3101_v9, %v1235_v6  ;;  %v1217_v54 = vor.u32 1.1754944e-38, %v1216_v39  ;;  %v1397_v6 = vld [vmem:[%s4194_s6 + $0x78] sm:$0xff] }
 0xf4a   :  { %vm1215_vm12 = vcmp.eq.f32.partialorder %v1214_v49, 8.507059e+37  ;;  %1418 = vmatpush.msra.mxu1 %v1397_v6 }
 0xf4b   :  { %v1237_v15 = vadd.f32 %v3101_v9, %v1236_v13  ;;  %v1395_v13 = vld [vmem:[%s4194_s6 + $0x68] sm:$0xff] }
 0xf4c   :  { %v3103_v4 = vpop.eup %3102  ;;  %v1199_v17 = vpop.f32.mrf.mxu3  ;;  %1419 = vmatpush.msra.mxu1 %v1396_v12 }
 0xf4d   :  { %v1248_v19 = vmul.f32 %v3103_v4, %v1151_v11  ;;  %v1241_v5 = vsel %vm1240_vm2, %v3101_v9, %v1237_v15  ;;  %vm1253_vm4 = vweird.f32 %v3103_v4  ;;  %v3105_v45 = vpop.eup %3104  ;;  %v1145_v56 = vpop.xlane.xlu0 %1144 }
 0xf4e   :  { %v1246_v20 = vsel %vm1243_vm3, %v1245_v18, %v1241_v5  ;;  %vm1254_vm6 = vmor %vm1252_vm5, %vm1253_vm4  ;;  %v1206_v46 = vmul.f32 %v3105_v45, %v1142_v43  ;;  %vm1211_vm8 = vweird.f32 %v3105_v45  ;;  %3106 = vrcp.f32 %v1145_v56  ;;  %1420 = vmatpush.msra.mxu1 %v1395_v13 }
 0xf4f   :  { %v1249_v21 = vsub.f32 1.0, %v1248_v19  ;;  %v1263_v22 = vmul.f32 %v1246_v20, %v1199_v17  ;;  %vm1212_vm10 = vmor %vm1210_vm9, %vm1211_vm8  ;;  %v1230_v1 = vand.u32 2147483648, %v1145_v56  ;;  %vm1224_vm14 = vweird.f32 %v1145_v56 }
 0xf50   :  { %v1207_v47 = vsub.f32 1.0, %v1206_v46  ;;  %v1228_v2 = vand.u32 2147483647, %v1145_v56  ;;  %v976_v43 = vmul.f32 %v974_v29, %v974_v29 }
 0xf51   :  { %1267 = vrot.lane.b32.xlu2 %v1263_v22, %s3254_s10  ;;  %v1250_v24 = vmul.f32 %v3103_v4, %v1249_v21  ;;  %v1231_v3 = vor.u32 1.1754944e-38, %v1230_v1  ;;  %v3018_v22 = vld [vmem:[%s4193_s5 + $0xe] ss:$0 sm:$0xff] }
 0xf52   :  { %v1208_v37 = vmul.f32 %v3105_v45, %v1207_v47  ;;  %vm1229_vm2 = vcmp.eq.f32.partialorder %v1228_v2, 8.507059e+37  ;;  %v980_v44 = vsel %vm65_vm0, %v976_v43, 0.0  ;;  %v3024_v43 = vld [vmem:[%s4195_s7 + $0x4] ss:$0 sm:$0xff] }
 0xf53   :  { %v1251_v27 = vadd.f32 %v3103_v4, %v1250_v24 }
 0xf54   :  { %v1202_v31 = vpop.f32.mrf.mxu3  ;;  %v1209_v48 = vadd.f32 %v3105_v45, %v1208_v37  ;;  %v3107_v60 = vpop.eup %3106 }
 0xf55   :  { %v1255_v30 = vsel %vm1254_vm6, %v3103_v4, %v1251_v27  ;;  %v1220_v61 = vmul.f32 %v3107_v60, %v1145_v56  ;;  %vm1225_vm13 = vweird.f32 %v3107_v60 }
 0xf56   :  { %v1260_v32 = vsel %vm1257_vm7, %v1259_v28, %v1255_v30  ;;  %v1213_v50 = vsel %vm1212_vm10, %v3105_v45, %v1209_v48  ;;  %vm1226_vm15 = vmor %vm1224_vm14, %vm1225_vm13  ;;  %v3020_v30 = vld [vmem:[%s4195_s7 + $0x1] ss:$0 sm:$0xff] }
 0xf57   :  { %v1264_v34 = vmul.f32 %v1260_v32, %v1202_v31  ;;  %v1218_v55 = vsel %vm1215_vm12, %v1217_v54, %v1213_v50  ;;  %v1221_v63 = vsub.f32 1.0, %v1220_v61 }
 0xf58   :  { %v1261_v57 = vmul.f32 %v1218_v55, %v3613_v8 }
 0xf59   :  { %1269 = vrot.lane.b32.xlu0 %v1264_v34, %s3254_s10  ;;  %v1222_v0 = vmul.f32 %v3107_v60, %v1221_v63 }
 0xf5b   :  { %v1223_v59 = vadd.f32 %v3107_v60, %v1222_v0 }
 0xf5d   :  { %v1227_v7 = vsel %vm1226_vm15, %v3107_v60, %v1223_v59 }
 0xf5e   :  { %v1232_v8 = vsel %vm1229_vm2, %v1231_v3, %v1227_v7 }
 0xf5f   :  { %v1262_v9 = vmul.f32 %v1232_v8, %v3615_v62  ;;  %v1394_v62 = vld [vmem:[%s4194_s6 + $0x60] sm:$0xff]  ;;  %v1362_v8 = vld [vmem:[%s4194_s6 + $0x58] sm:$0xff] }
 0xf60   :  { %1421 = vmatpush.msra.mxu1 %v1394_v62  ;;  %1383 = vmatpush.msrb.mxu0 %v1362_v8 }
 0xf7a   :  { %978 = vadd.xlane.f32.xlu2 %v977_v42 }
 0xfab   :  { %v1268_v51 = vpop.permute.xlu2 %1267 }
 0xfac   :  { %v1273_v58 = vsel %vm114_vm1, %v1261_v57, %v1268_v51 }
 0xfad   :  { %2825 = vmatmul.msk.f32.vlgmr.msrb.gmra.mxu1 %vm65_vm0, %v1273_v58 }
 0xfcb   :  { %v1270_v10 = vpop.permute.xlu0 %1269 }
 0xfcc   :  { %v1274_v11 = vsel %vm114_vm1, %v1262_v9, %v1270_v10  ;;  %v1361_v9 = vld [vmem:[%s4194_s6 + $0x50] sm:$0xff]  ;;  %v1360_v10 = vld [vmem:[%s4194_s6 + $0x48] sm:$0xff] }
 0xfcd   :  { %2826 = vmatmul.msk.f32.gmra.mxu1 %vm65_vm0, %v1274_v11  ;;  %1384 = vmatpush.msrb.mxu0 %v1361_v9  ;;  %v1359_v11 = vld [vmem:[%s4194_s6 + $0x40] sm:$0xff] }
 0xfcf   :  { %1385 = vmatpush.msrb.mxu0 %v1360_v10 }
 0xfd1   :  { %1386 = vmatpush.msrb.mxu0 %v1359_v11  ;;  %v3187_v11 = vld [vmem:[%s4190_s2 + $0x18] sm:$0xff] }
 0xfed   :  { %v979_v14 = vpop.xlane.xlu2 %978 }
 0xfee   :  { %v983_v15 = vmul.f32 %v979_v14, %v3401_v16 }
 0xff0   :  { %v985_v4 = vadd.f32 1e-05, %v983_v15 }
 0xff2   :  { %3108 = vrsqrt.f32 %v985_v4  ;;  %vm993_vm4 = vweird.f32 %v985_v4 }
 0xff8   :  { %v3109_v17 = vpop.eup %3108 }
 0xff9   :  { %v988_v18 = vmul.f32 %v3109_v17, %v985_v4  ;;  %vm994_vm3 = vweird.f32 %v3109_v17 }
 0xffa   :  { %vm995_vm5 = vmor %vm993_vm4, %vm994_vm3 }
 0xffb   :  { %v989_v19 = vmul.f32 %v3109_v17, %v988_v18 }
 0xffd   :  { %v990_v5 = vmul.f32 0.5, %v989_v19  ;;  %v3022_v19 = vld [vmem:[%s4195_s7 + $0x2] ss:$0 sm:$0xff] }
 0xfff   :  { %v991_v20 = vsub.f32 1.5, %v990_v5 }
0x1001   :  { %v992_v21 = vmul.f32 %v3109_v17, %v991_v20 }
0x1003   :  { %v996_v23 = vsel %vm995_vm5, %v3109_v17, %v992_v21  ;;  %v3023_v21 = vld [vmem:[%s4195_s7 + $0x3] ss:$0 sm:$0xff] }
0x1004   :  { %v1007_v24 = vmul.f32 %v996_v23, %v3630_v41 }
0x1006   :  { %v1010_v27 = vmul.f32 %v3018_v22, %v1007_v24 }
0x1008   :  { %v3664_v28 = vadd.f32 %v3019_v26, %v1010_v27 }
0x100a   :  { %2829 = vmatmul.msk.f32.vlgmr.msra.gmra.mxu1 %vm65_vm0, %v3664_v28 }
0x102a   :  { %v1299_v31 = vpop.f32.mrf.mxu1 }
0x102b   :  { %v1300_v32 = vadd.f32 %v3020_v30, %v1299_v31 }
0x102d   :  { %v1305_v34 = vadd.f32 %v1300_v32, %v3541_v52  ;;  %v3681_v52 = vld [vmem:[%s4195_s7 + $0x5] ss:$0 sm:$0xff] }
0x102f   :  { %v1309_v35 = vsel %vm65_vm0, %v1305_v34, 0.0 }
0x1030   :  { %1310 = vadd.xlane.f32.xlu0 %v1309_v35 }
0x104a   :  { %v1302_v38 = vpop.f32.mrf.mxu1 }
0x104b   :  { %v1303_v40 = vadd.f32 %v3020_v30, %v1302_v38 }
0x104d   :  { %v1306_v41 = vadd.f32 %v1303_v40, %v3548_v53 }
0x104f   :  { %v1312_v42 = vsel %vm65_vm0, %v1306_v41, 0.0 }
0x1050   :  { %1313 = vadd.xlane.f32.xlu1 %v1312_v42 }
0x1058   :  { %981 = vadd.xlane.f32.xlu1 %v980_v44 }
0x1087   :  { %v1423_v45 = vpop.f32.mrf.mxu1 }
0x1088   :  { %v3684_v46 = vadd.f32 %v3681_v52, %v1423_v45 }
0x108a   :  { %1442 = vrot.lane.b32.xlu0 %v3684_v46, %s3252_s22 }
0x10a3   :  { %v1311_v53 = vpop.xlane.xlu0 %1310 }
0x10a4   :  { %v1315_v33 = vmul.f32 %v1311_v53, %v3401_v16 }
0x10a6   :  { %v1317_v47 = vsub.f32 %v1305_v34, %v1315_v33 }
0x10a8   :  { %v1319_v37 = vmul.f32 %v1317_v47, %v1317_v47 }
0x10aa   :  { %v1321_v48 = vsel %vm65_vm0, %v1319_v37, 0.0 }
0x10ab   :  { %1322 = vadd.xlane.f32.xlu1 %v1321_v48 }
0x10c3   :  { %v1314_v39 = vpop.xlane.xlu1 %1313 }
0x10c4   :  { %v1316_v49 = vmul.f32 %v1314_v39, %v3401_v16 }
0x10c6   :  { %v3691_v50 = vsub.f32 %v1306_v41, %v1316_v49 }
0x10c8   :  { %v1320_v54 = vmul.f32 %v3691_v50, %v3691_v50 }
0x10ca   :  { %v1324_v55 = vsel %vm65_vm0, %v1320_v54, 0.0 }
0x10cb   :  { %1325 = vadd.xlane.f32.xlu1 %v1324_v55  ;;  %v982_v56 = vpop.xlane.xlu1 %981 }
0x10cc   :  { %v984_v57 = vmul.f32 %v982_v56, %v3401_v16 }
0x10ce   :  { %v986_v51 = vadd.f32 1e-05, %v984_v57 }
0x10d0   :  { %3110 = vrsqrt.f32 %v986_v51  ;;  %vm1003_vm7 = vweird.f32 %v986_v51 }
0x10d6   :  { %v3111_v58 = vpop.eup %3110 }
0x10d7   :  { %v998_v60 = vmul.f32 %v3111_v58, %v986_v51  ;;  %vm1004_vm6 = vweird.f32 %v3111_v58 }
0x10d8   :  { %vm1005_vm8 = vmor %vm1003_vm7, %vm1004_vm6 }
0x10d9   :  { %v999_v61 = vmul.f32 %v3111_v58, %v998_v60 }
0x10db   :  { %v1000_v63 = vmul.f32 0.5, %v999_v61 }
0x10dd   :  { %v1001_v0 = vsub.f32 1.5, %v1000_v63 }
0x10df   :  { %v1002_v59 = vmul.f32 %v3111_v58, %v1001_v0  ;;  %v3185_v0 = vld [vmem:[%s4190_s2 + $0x8] sm:$0xff] }
0x10e1   :  { %v1006_v1 = vsel %vm1005_vm8, %v3111_v58, %v1002_v59  ;;  %v3184_v58 = vld [vmem:[%s4190_s2] sm:$0xff] }
0x10e2   :  { %v1008_v2 = vmul.f32 %v1006_v1, %v974_v29 }
0x10e4   :  { %v1011_v7 = vmul.f32 %v3018_v22, %v1008_v2 }
0x10e6   :  { %v3697_v3 = vadd.f32 %v3019_v26, %v1011_v7  ;;  %v3186_v7 = vld [vmem:[%s4190_s2 + $0x10] sm:$0xff] }
0x10e8   :  { %2830 = vmatmul.msk.f32.gmra.mxu1 %vm65_vm0, %v3697_v3 }
0x111e   :  { %v1323_v6 = vpop.xlane.xlu1 %1322 }
0x111f   :  { %v1327_v12 = vmul.f32 %v1323_v6, %v3401_v16 }
0x1121   :  { %v1329_v13 = vadd.f32 1e-05, %v1327_v12 }
0x1123   :  { %3112 = vrsqrt.f32 %v1329_v13  ;;  %vm1337_vm10 = vweird.f32 %v1329_v13 }
0x1129   :  { %v3113_v62 = vpop.eup %3112 }
0x112a   :  { %v1332_v14 = vmul.f32 %v3113_v62, %v1329_v13  ;;  %vm1338_vm9 = vweird.f32 %v3113_v62 }
0x112b   :  { %vm1339_vm12 = vmor %vm1337_vm10, %vm1338_vm9 }
0x112c   :  { %v1333_v15 = vmul.f32 %v3113_v62, %v1332_v14 }
0x112e   :  { %v1334_v4 = vmul.f32 0.5, %v1333_v15 }
0x1130   :  { %v1335_v17 = vsub.f32 1.5, %v1334_v4 }
0x1132   :  { %v1336_v18 = vmul.f32 %v3113_v62, %v1335_v17 }
0x1134   :  { %v1340_v5 = vsel %vm1339_vm12, %v3113_v62, %v1336_v18 }
0x1135   :  { %v1351_v20 = vmul.f32 %v1340_v5, %v1317_v47  ;;  %v1443_v47 = vpop.permute.xlu0 %1442 }
0x1137   :  { %v1354_v22 = vmul.f32 %v3022_v19, %v1351_v20 }
0x1139   :  { %v3720_v23 = vadd.f32 %v3023_v21, %v1354_v22 }
0x113b   :  { %2827 = vmatmul.msk.f32.vlgmr.msrb.gmra.mxu0 %vm65_vm0, %v3720_v23 }
0x113e   :  { %v1326_v24 = vpop.xlane.xlu1 %1325 }
0x113f   :  { %v1328_v26 = vmul.f32 %v1326_v24, %v3401_v16 }
0x1141   :  { %v1330_v27 = vadd.f32 1e-05, %v1328_v26 }
0x1143   :  { %3114 = vrsqrt.f32 %v1330_v27  ;;  %vm1347_vm14 = vweird.f32 %v1330_v27 }
0x1149   :  { %v3115_v30 = vpop.eup %3114 }
0x114a   :  { %v1342_v31 = vmul.f32 %v3115_v30, %v1330_v27  ;;  %vm1348_vm13 = vweird.f32 %v3115_v30 }
0x114b   :  { %vm1349_vm15 = vmor %vm1347_vm14, %vm1348_vm13 }
0x114c   :  { %v1343_v32 = vmul.f32 %v3115_v30, %v1342_v31 }
0x114e   :  { %v1344_v34 = vmul.f32 0.5, %v1343_v32 }
0x1150   :  { %v1345_v35 = vsub.f32 1.5, %v1344_v34 }
0x1152   :  { %v1346_v36 = vmul.f32 %v3115_v30, %v1345_v35 }
0x1154   :  { %v1350_v38 = vsel %vm1349_vm15, %v3115_v30, %v1346_v36 }
0x1155   :  { %v1352_v25 = vmul.f32 %v1350_v38, %v3691_v50 }
0x1157   :  { %v1355_v40 = vmul.f32 %v3022_v19, %v1352_v25 }
0x1159   :  { %v3726_v41 = vadd.f32 %v3023_v21, %v1355_v40 }
0x115b   :  { %2828 = vmatmul.msk.f32.gmra.mxu0 %vm65_vm0, %v3726_v41 }
0x1165   :  { %v1426_v29 = vpop.f32.mrf.mxu1 }
0x1166   :  { %v1427_v42 = vadd.f32 %v3681_v52, %v1426_v29 }
0x1168   :  { %1444 = vrot.lane.b32.xlu1 %v1427_v42, %s3252_s22  ;;  %v2978_v52 = vpack.i.bf16 %v3684_v46, %v1427_v42 }
0x11b8   :  { %v1388_v44 = vpop.f32.mrf.mxu0 }
0x11b9   :  { %v1389_v45 = vadd.f32 %v3024_v43, %v1388_v44 }
0x11bb   :  { %1436 = vrot.lane.b32.xlu2 %v1389_v45, %s3252_s22 }
0x11d8   :  { %v1391_v53 = vpop.f32.mrf.mxu0 }
0x11d9   :  { %v1392_v33 = vadd.f32 %v3024_v43, %v1391_v53 }
0x11da   :  { %v1445_v37 = vpop.permute.xlu1 %1444 }
0x11db   :  { %v2973_v48 = vpack.i.bf16 %v1443_v47, %v1445_v37  ;;  %1438 = vrot.lane.b32.xlu0 %v1392_v33, %s3252_s22  ;;  %2831 = vmatpush.xpose.msk.msra.mxu0 %vm114_vm1, %v1445_v37 }
0x11dd   :  { %2974 = vrot.lane.b32.xlu2 %v2973_v48, %s3251_s21 }
0x11df   :  { %2832 = vmatpush.xpose.msk.msra.mxu0 %vm114_vm1, %v1443_v47 }
0x11e3   :  { %2833 = vmatpush.xpose.msk.msra.mxu0 %vm114_vm1, %v1427_v42 }
0x11e5   :  { %2979 = vrot.lane.b32.xlu2 %v2978_v52, %s3251_s21 }
0x11e7   :  { %2834 = vmatpush.xpose.msk.msra.mxu0 %vm114_vm1, %v3684_v46 }
0x11ea   :  { %2835 = vmatmul.msk.f32.vlgmr.msra.gmra.mxu0 %vm114_vm1, %v1389_v45 }
0x11f2   :  { %2836 = vmatmul.msk.f32.gmra.mxu0 %vm114_vm1, %v1392_v33 }
0x1215   :  { %v1437_v39 = vpop.permute.xlu2 %1436 }
0x1216   :  { %2837 = vmatmul.msk.f32.gmra.mxu0 %vm114_vm1, %v1437_v39  ;;  %v1432_v39 = vld [vmem:[%s4194_s6 + $0x98] sm:$0xff] }
0x1217   :  { %1669 = vmatpush.msra.mxu3 %v1432_v39 }
0x1237   :  { %v2975_v49 = vpop.permute.xlu2 %2974 }
0x1238   :  { %v2976_v50 = vunpack.i.l.bf16 %v2975_v49  ;;  %v2977_v54 = vunpack.i.h.bf16 %v2975_v49  ;;  %v1431_v49 = vld [vmem:[%s4194_s6 + $0x90] sm:$0xff] }
0x1239   :  { %1670 = vmatpush.msra.mxu3 %v1431_v49 }
0x123a   :  { %1563 = vmatpush.msrb.mxu2 %v2976_v50  ;;  %v1430_v50 = vld [vmem:[%s4194_s6 + $0x88] sm:$0xff] }
0x123b   :  { %1671 = vmatpush.msra.mxu3 %v1430_v50 }
0x123c   :  { %1564 = vmatpush.msrb.mxu2 %v2977_v54 }
0x123f   :  { %v2980_v55 = vpop.permute.xlu2 %2979 }
0x1240   :  { %v2981_v56 = vunpack.i.l.bf16 %v2980_v55  ;;  %v2982_v57 = vunpack.i.h.bf16 %v2980_v55 }
0x1242   :  { %1565 = vmatpush.msrb.mxu2 %v2981_v56 }
0x1244   :  { %1566 = vmatpush.msrb.mxu2 %v2982_v57 }
0x124d   :  { %v1439_v51 = vpop.permute.xlu0 %1438 }
0x124e   :  { %2838 = vmatmul.msk.f32.gmra.mxu0 %vm114_vm1, %v1439_v51 }
0x1267   :  { %v1479_v46 = vpop.f32.mrf.mxu0 }
0x1268   :  { %v1480_v60 = vadd.f32 %v3184_v58, %v1479_v46 }
0x126a   :  { %v1491_v61 = vsel %vm65_vm0, %v1480_v60, -inf }
0x126b   :  { %1492 = vmax.xlane.f32.xlu1 %v1491_v61 }
0x126f   :  { %v1482_v63 = vpop.f32.mrf.mxu0 }
0x1270   :  { %v1483_v59 = vadd.f32 %v3185_v0, %v1482_v63 }
0x1272   :  { %v1494_v1 = vsel %vm65_vm0, %v1483_v59, -inf }
0x1273   :  { %1495 = vmax.xlane.f32.xlu0 %v1494_v1 }
0x1293   :  { %v1485_v2 = vpop.f32.mrf.mxu0 }
0x1294   :  { %v1486_v8 = vadd.f32 %v3186_v7, %v1485_v2  ;;  %v1429_v7 = vld [vmem:[%s4194_s6 + $0x80] sm:$0xff] }
0x1295   :  { %1672 = vmatpush.msra.mxu3 %v1429_v7 }
0x1296   :  { %v1497_v9 = vsel %vm65_vm0, %v1486_v8, -inf }
0x1297   :  { %1498 = vmax.xlane.f32.xlu2 %v1497_v9 }
0x12cb   :  { %v1488_v10 = vpop.f32.mrf.mxu0 }
0x12cc   :  { %v1489_v6 = vadd.f32 %v3187_v11, %v1488_v10 }
0x12ce   :  { %v1500_v12 = vsel %vm65_vm0, %v1489_v6, -inf }
0x12cf   :  { %1501 = vmax.xlane.f32.xlu1 %v1500_v12 }
0x12de   :  { %v1493_v13 = vpop.xlane.xlu1 %1492 }
0x12df   :  { %v1503_v62 = vsub.f32 %v1480_v60, %v1493_v13 }
0x12e1   :  { %v1507_v14 = vmul.f32 1.442695, %v1503_v62 }
0x12e3   :  { %3116 = vpow2.f32 %v1507_v14 }
0x12e6   :  { %v1496_v15 = vpop.xlane.xlu0 %1495 }
0x12e7   :  { %v1504_v4 = vsub.f32 %v1483_v59, %v1496_v15 }
0x12e9   :  { %v3117_v17 = vpop.eup %3116  ;;  %v1509_v18 = vmul.f32 1.442695, %v1504_v4 }
0x12ea   :  { %2839 = vmatmul.msk.f32.vlgmr.msrb.gmra.mxu2 %vm65_vm0, %v3117_v17  ;;  %v1515_v26 = vsel %vm65_vm0, %v3117_v17, 0.0 }
0x12eb   :  { %3118 = vpow2.f32 %v1509_v18 }
0x12f1   :  { %v3119_v19 = vpop.eup %3118 }
0x12f2   :  { %2840 = vmatmul.msk.f32.gmra.mxu2 %vm65_vm0, %v3119_v19  ;;  %v1518_v35 = vsel %vm65_vm0, %v3119_v19, 0.0 }
0x130a   :  { %v1499_v5 = vpop.xlane.xlu2 %1498 }
0x130b   :  { %v1505_v20 = vsub.f32 %v1486_v8, %v1499_v5 }
0x130d   :  { %v1511_v21 = vmul.f32 1.442695, %v1505_v20 }
0x130f   :  { %3120 = vpow2.f32 %v1511_v21 }
0x1315   :  { %v3121_v22 = vpop.eup %3120 }
0x1316   :  { %2841 = vmatmul.msk.f32.gmra.mxu2 %vm65_vm0, %v3121_v22  ;;  %v1521_v24 = vsel %vm65_vm0, %v3121_v22, 0.0 }
0x1317   :  { %1522 = vadd.xlane.f32.xlu0 %v1521_v24 }
0x131f   :  { %1516 = vadd.xlane.f32.xlu0 %v1515_v26 }
0x1342   :  { %v1502_v27 = vpop.xlane.xlu1 %1501 }
0x1343   :  { %v1506_v30 = vsub.f32 %v1489_v6, %v1502_v27 }
0x1345   :  { %v1513_v31 = vmul.f32 1.442695, %v1506_v30 }
0x1347   :  { %3122 = vpow2.f32 %v1513_v31 }
0x134d   :  { %v3123_v32 = vpop.eup %3122 }
0x134e   :  { %2842 = vmatmul.msk.f32.gmra.mxu2 %vm65_vm0, %v3123_v32  ;;  %v1524_v34 = vsel %vm65_vm0, %v3123_v32, 0.0 }
0x134f   :  { %1525 = vadd.xlane.f32.xlu1 %v1524_v34 }
0x1357   :  { %1519 = vadd.xlane.f32.xlu1 %v1518_v35 }
0x136d   :  { %v3773_v36 = vpop.f32.mrf.mxu2 }
0x1375   :  { %v3775_v29 = vpop.f32.mrf.mxu2 }
0x138a   :  { %v1523_v38 = vpop.xlane.xlu0 %1522 }
0x138b   :  { %3124 = vrcp.f32 %v1523_v38  ;;  %v1619_v43 = vand.u32 2147483648, %v1523_v38  ;;  %v1617_v45 = vand.u32 2147483647, %v1523_v38  ;;  %vm1613_vm3 = vweird.f32 %v1523_v38 }
0x138d   :  { %v1620_v33 = vor.u32 1.1754944e-38, %v1619_v43  ;;  %vm1618_vm5 = vcmp.eq.f32.partialorder %v1617_v45, 8.507059e+37 }
0x1391   :  { %v3125_v25 = vpop.eup %3124 }
0x1392   :  { %v1609_v40 = vmul.f32 %v3125_v25, %v1523_v38  ;;  %vm1614_vm2 = vweird.f32 %v3125_v25  ;;  %v1517_v2 = vpop.xlane.xlu0 %1516  ;;  %v3025_v38 = vld [vmem:[%s4195_s7 + $0x6] ss:$0 sm:$0xff] }
0x1393   :  { %vm1615_vm4 = vmor %vm1613_vm3, %vm1614_vm2  ;;  %v1591_v12 = vand.u32 2147483648, %v1517_v2  ;;  %vm1585_vm12 = vweird.f32 %v1517_v2  ;;  %v1589_v13 = vand.u32 2147483647, %v1517_v2 }
0x1394   :  { %v1610_v42 = vsub.f32 1.0, %v1609_v40 }
0x1395   :  { %v1592_v14 = vor.u32 1.1754944e-38, %v1591_v12  ;;  %vm1590_vm14 = vcmp.eq.f32.partialorder %v1589_v13, 8.507059e+37  ;;  %v1745_v12 = vld [vmem:[%s4194_s6 + $0xf0] sm:$0xff]  ;;  %v1744_v13 = vld [vmem:[%s4194_s6 + $0xe8] sm:$0xff] }
0x1396   :  { %v1611_v44 = vmul.f32 %v3125_v25, %v1610_v42 }
0x1398   :  { %v1612_v53 = vadd.f32 %v3125_v25, %v1611_v44 }
0x1399   :  { %v1574_v37 = vpop.f32.mrf.mxu2 }
0x139a   :  { %v1616_v47 = vsel %vm1615_vm4, %v3125_v25, %v1612_v53 }
0x139b   :  { %v1621_v48 = vsel %vm1618_vm5, %v1620_v33, %v1616_v47 }
0x139c   :  { %v1638_v52 = vmul.f32 %v1621_v48, %v1574_v37 }
0x139e   :  { %1642 = vrot.lane.b32.xlu2 %v1638_v52, %s3254_s10 }
0x13c2   :  { %v1526_v54 = vpop.xlane.xlu1 %1525 }
0x13c3   :  { %3126 = vrcp.f32 %v1526_v54  ;;  %v1633_v51 = vand.u32 2147483648, %v1526_v54  ;;  %v1631_v58 = vand.u32 2147483647, %v1526_v54  ;;  %vm1627_vm7 = vweird.f32 %v1526_v54 }
0x13c4   :  { %3128 = vrcp.f32 %v1517_v2 }
0x13c5   :  { %v1634_v61 = vor.u32 1.1754944e-38, %v1633_v51  ;;  %vm1632_vm9 = vcmp.eq.f32.partialorder %v1631_v58, 8.507059e+37 }
0x13c9   :  { %v3127_v55 = vpop.eup %3126 }
0x13ca   :  { %v1623_v56 = vmul.f32 %v3127_v55, %v1526_v54  ;;  %vm1628_vm6 = vweird.f32 %v3127_v55  ;;  %v3129_v8 = vpop.eup %3128  ;;  %v1520_v19 = vpop.xlane.xlu1 %1519 }
0x13cb   :  { %vm1629_vm8 = vmor %vm1627_vm7, %vm1628_vm6  ;;  %v1581_v9 = vmul.f32 %v3129_v8, %v1517_v2  ;;  %vm1586_vm10 = vweird.f32 %v3129_v8  ;;  %3130 = vrcp.f32 %v1520_v19  ;;  %v1605_v26 = vand.u32 2147483648, %v1520_v19  ;;  %v3026_v2 = vld [vmem:[%s4195_s7 + $0x7] ss:$0 sm:$0xff] }
0x13cc   :  { %v1624_v57 = vsub.f32 1.0, %v1623_v56  ;;  %vm1587_vm13 = vmor %vm1585_vm12, %vm1586_vm10  ;;  %vm1599_vm2 = vweird.f32 %v1520_v19  ;;  %v1603_v27 = vand.u32 2147483647, %v1520_v19  ;;  %v1735_v56 = vld [vmem:[%s4194_s6 + $0xa8] sm:$0xff] }
0x13cd   :  { %v1582_v10 = vsub.f32 1.0, %v1581_v9  ;;  %v1606_v31 = vor.u32 1.1754944e-38, %v1605_v26  ;;  %v3027_v9 = vld [vmem:[%s4195_s7 + $0x8] ss:$0 sm:$0xff] }
0x13ce   :  { %v1625_v46 = vmul.f32 %v3127_v55, %v1624_v57  ;;  %vm1604_vm4 = vcmp.eq.f32.partialorder %v1603_v27, 8.507059e+37  ;;  %v1734_v57 = vld [vmem:[%s4194_s6 + $0xa0] sm:$0xff] }
0x13cf   :  { %v1583_v11 = vmul.f32 %v3129_v8, %v1582_v10 }
0x13d0   :  { %v1626_v60 = vadd.f32 %v3127_v55, %v1625_v46 }
0x13d1   :  { %v1577_v0 = vpop.f32.mrf.mxu2  ;;  %v1584_v6 = vadd.f32 %v3129_v8, %v1583_v11  ;;  %v3131_v5 = vpop.eup %3130 }
0x13d2   :  { %v1630_v63 = vsel %vm1629_vm8, %v3127_v55, %v1626_v60  ;;  %v1595_v20 = vmul.f32 %v3131_v5, %v1520_v19  ;;  %vm1600_vm15 = vweird.f32 %v3131_v5  ;;  %v1736_v55 = vld [vmem:[%s4194_s6 + $0xb0] sm:$0xff] }
0x13d3   :  { %v1635_v59 = vsel %vm1632_vm9, %v1634_v61, %v1630_v63  ;;  %v1588_v62 = vsel %vm1587_vm13, %v3129_v8, %v1584_v6  ;;  %vm1601_vm3 = vmor %vm1599_vm2, %vm1600_vm15  ;;  %v1746_v6 = vld [vmem:[%s4194_s6 + $0xf8] sm:$0xff] }
0x13d4   :  { %v1639_v1 = vmul.f32 %v1635_v59, %v1577_v0  ;;  %v1593_v15 = vsel %vm1590_vm14, %v1592_v14, %v1588_v62  ;;  %v1596_v21 = vsub.f32 1.0, %v1595_v20  ;;  %1795 = vmatpush.msrb.mxu3 %v1746_v6 }
0x13d5   :  { %v1636_v4 = vmul.f32 %v1593_v15, %v3773_v36  ;;  %v1743_v15 = vld [vmem:[%s4194_s6 + $0xe0] sm:$0xff] }
0x13d6   :  { %1644 = vrot.lane.b32.xlu0 %v1639_v1, %s3254_s10  ;;  %v1597_v22 = vmul.f32 %v3131_v5, %v1596_v21  ;;  %1796 = vmatpush.msrb.mxu3 %v1745_v12 }
0x13d8   :  { %v1598_v24 = vadd.f32 %v3131_v5, %v1597_v22  ;;  %1797 = vmatpush.msrb.mxu3 %v1744_v13  ;;  %v3031_v13 = vld [vmem:[%s4195_s7 + $0xc] ss:$0 sm:$0xff] }
0x13da   :  { %v1602_v30 = vsel %vm1601_vm3, %v3131_v5, %v1598_v24  ;;  %1798 = vmatpush.msrb.mxu3 %v1743_v15 }
0x13db   :  { %v1607_v32 = vsel %vm1604_vm4, %v1606_v31, %v1602_v30  ;;  %v1741_v31 = vld [vmem:[%s4194_s6 + $0xd0] sm:$0xff] }
0x13dc   :  { %v1637_v34 = vmul.f32 %v1607_v32, %v3775_v29  ;;  %v1740_v32 = vld [vmem:[%s4194_s6 + $0xc8] sm:$0xff] }
0x13f8   :  { %v1643_v17 = vpop.permute.xlu2 %1642 }
0x13f9   :  { %v1648_v18 = vsel %vm114_vm1, %v1636_v4, %v1643_v17  ;;  %v1742_v17 = vld [vmem:[%s4194_s6 + $0xd8] sm:$0xff] }
0x13fa   :  { %2843 = vmatmul.msk.f32.vlgmr.msra.gmra.mxu3 %vm65_vm0, %v1648_v18 }
0x13fb   :  { %1799 = vmatpush.msrb.mxu3 %v1742_v17 }
0x13fd   :  { %1800 = vmatpush.msrb.mxu3 %v1741_v31  ;;  %v3032_v31 = vld [vmem:[%s4195_s7 + $0x10] ss:$0 sm:$0xff] }
0x13ff   :  { %1801 = vmatpush.msrb.mxu3 %v1740_v32 }
0x1448   :  { %v1645_v35 = vpop.permute.xlu0 %1644 }
0x1449   :  { %v1649_v36 = vsel %vm114_vm1, %v1637_v34, %v1645_v35  ;;  %v1739_v34 = vld [vmem:[%s4194_s6 + $0xc0] sm:$0xff]  ;;  %v3028_v35 = vld [vmem:[%s4195_s7 + $0x9] ss:$0 sm:$0xff] }
0x144a   :  { %2844 = vmatmul.msk.f32.gmra.mxu3 %vm65_vm0, %v1649_v36 }
0x144b   :  { %1802 = vmatpush.msrb.mxu3 %v1739_v34 }
0x147d   :  { %v1674_v25 = vpop.f32.mrf.mxu3 }
0x147e   :  { %v1675_v40 = vadd.f32 %v3025_v38, %v1674_v25 }
0x1480   :  { %v1680_v42 = vadd.f32 %v1675_v40, %v3720_v23 }
0x1482   :  { %v1684_v43 = vsel %vm65_vm0, %v1680_v42, 0.0 }
0x1483   :  { %1685 = vadd.xlane.f32.xlu1 %v1684_v43 }
0x14cd   :  { %v1677_v44 = vpop.f32.mrf.mxu3 }
0x14ce   :  { %v1678_v45 = vadd.f32 %v3025_v38, %v1677_v44  ;;  %v3029_v44 = vld [vmem:[%s4195_s7 + $0xa] ss:$0 sm:$0xff] }
0x14d0   :  { %v1681_v29 = vadd.f32 %v1678_v45, %v3726_v41  ;;  %v1737_v41 = vld [vmem:[%s4194_s6 + $0xb8] sm:$0xff] }
0x14d1   :  { %1767 = vmatpush.msrb.mxu1 %v1737_v41 }
0x14d2   :  { %v1687_v53 = vsel %vm65_vm0, %v1681_v29, 0.0 }
0x14d3   :  { %1688 = vadd.xlane.f32.xlu1 %v1687_v53  ;;  %1768 = vmatpush.msrb.mxu1 %v1736_v55 }
0x14d5   :  { %1769 = vmatpush.msrb.mxu1 %v1735_v56 }
0x14d7   :  { %1770 = vmatpush.msrb.mxu1 %v1734_v57 }
0x14f6   :  { %v1686_v33 = vpop.xlane.xlu1 %1685 }
0x14f7   :  { %v1690_v47 = vmul.f32 %v1686_v33, %v3401_v16 }
0x14f9   :  { %v1692_v37 = vsub.f32 %v1680_v42, %v1690_v47 }
0x14fb   :  { %v1694_v48 = vmul.f32 %v1692_v37, %v1692_v37 }
0x14fd   :  { %v1696_v52 = vsel %vm65_vm0, %v1694_v48, 0.0 }
0x14fe   :  { %1697 = vadd.xlane.f32.xlu1 %v1696_v52 }
0x1546   :  { %v1689_v39 = vpop.xlane.xlu1 %1688 }
0x1547   :  { %v1691_v23 = vmul.f32 %v1689_v39, %v3401_v16 }
0x1549   :  { %v1693_v49 = vsub.f32 %v1681_v29, %v1691_v23 }
0x154b   :  { %v1695_v50 = vmul.f32 %v1693_v49, %v1693_v49 }
0x154d   :  { %v1699_v54 = vsel %vm65_vm0, %v1695_v50, 0.0 }
0x154e   :  { %1700 = vadd.xlane.f32.xlu0 %v1699_v54 }
0x1571   :  { %v1698_v51 = vpop.xlane.xlu1 %1697 }
0x1572   :  { %v1702_v46 = vmul.f32 %v1698_v51, %v3401_v16 }
0x1574   :  { %v1704_v58 = vadd.f32 1e-05, %v1702_v46  ;;  %v2852_v46 = vld [vmem:[%s4194_s6 + $0x118] sm:$0xff] }
0x1575   :  { %1890 = vmatpush.msra.mxu1 %v2852_v46 }
0x1576   :  { %3132 = vrsqrt.f32 %v1704_v58  ;;  %vm1712_vm6 = vweird.f32 %v1704_v58 }
0x157c   :  { %v3133_v60 = vpop.eup %3132 }
0x157d   :  { %v1707_v61 = vmul.f32 %v3133_v60, %v1704_v58  ;;  %vm1713_vm5 = vweird.f32 %v3133_v60  ;;  %v2851_v58 = vld [vmem:[%s4194_s6 + $0x110] sm:$0xff] }
0x157e   :  { %vm1714_vm7 = vmor %vm1712_vm6, %vm1713_vm5  ;;  %1891 = vmatpush.msra.mxu1 %v2851_v58 }
0x157f   :  { %v1708_v63 = vmul.f32 %v3133_v60, %v1707_v61  ;;  %v2849_v61 = vld [vmem:[%s4194_s6 + $0x100] sm:$0xff] }
0x1581   :  { %v1709_v0 = vmul.f32 0.5, %v1708_v63 }
0x1583   :  { %v1710_v59 = vsub.f32 1.5, %v1709_v0 }
0x1585   :  { %v1711_v1 = vmul.f32 %v3133_v60, %v1710_v59 }
0x1587   :  { %v1715_v7 = vsel %vm1714_vm7, %v3133_v60, %v1711_v1  ;;  %v2850_v60 = vld [vmem:[%s4194_s6 + $0x108] sm:$0xff] }
0x1588   :  { %v1726_v8 = vmul.f32 %v1715_v7, %v1692_v37  ;;  %1892 = vmatpush.msra.mxu1 %v2850_v60 }
0x158a   :  { %v1729_v10 = vmul.f32 %v3026_v2, %v1726_v8  ;;  %1893 = vmatpush.msra.mxu1 %v2849_v61  ;;  %v3191_v61 = vld [vmem:[%s4191_s3 + $0x18] sm:$0xff] }
0x158c   :  { %v1732_v11 = vadd.f32 %v3027_v9, %v1729_v10 }
0x158e   :  { %2845 = vmatmul.msk.f32.vlgmr.msrb.gmra.mxu1 %vm65_vm0, %v1732_v11 }
0x15c1   :  { %v1701_v62 = vpop.xlane.xlu0 %1700 }
0x15c2   :  { %v1703_v14 = vmul.f32 %v1701_v62, %v3401_v16 }
0x15c4   :  { %v1705_v4 = vadd.f32 1e-05, %v1703_v14 }
0x15c6   :  { %3134 = vrsqrt.f32 %v1705_v4  ;;  %vm1722_vm9 = vweird.f32 %v1705_v4 }
0x15cc   :  { %v3135_v18 = vpop.eup %3134 }
0x15cd   :  { %v1717_v19 = vmul.f32 %v3135_v18, %v1705_v4  ;;  %vm1723_vm8 = vweird.f32 %v3135_v18 }
0x15ce   :  { %vm1724_vm10 = vmor %vm1722_vm9, %vm1723_vm8 }
0x15cf   :  { %v1718_v5 = vmul.f32 %v3135_v18, %v1717_v19 }
0x15d1   :  { %v1719_v20 = vmul.f32 0.5, %v1718_v5 }
0x15d3   :  { %v1720_v21 = vsub.f32 1.5, %v1719_v20 }
0x15d5   :  { %v1721_v22 = vmul.f32 %v3135_v18, %v1720_v21 }
0x15d7   :  { %v1725_v24 = vsel %vm1724_vm10, %v3135_v18, %v1721_v22 }
0x15d8   :  { %v1727_v26 = vmul.f32 %v1725_v24, %v1693_v49 }
0x15da   :  { %v1730_v27 = vmul.f32 %v3026_v2, %v1727_v26 }
0x15dc   :  { %v1733_v30 = vadd.f32 %v3027_v9, %v1730_v27 }
0x15de   :  { %2846 = vmatmul.msk.f32.gmra.mxu1 %vm65_vm0, %v1733_v30 }
0x160b   :  { %v1772_v36 = vpop.f32.mrf.mxu1 }
0x160c   :  { %v1773_v38 = vadd.f32 %v3028_v35, %v1772_v36 }
0x160e   :  { %v1778_v25 = vmax.f32 %v1773_v38, 0.0 }
0x1610   :  { %2847 = vmatmul.msk.f32.vlgmr.msrb.gmra.mxu3 %vm457_vm11, %v1778_v25 }
0x165b   :  { %v1775_v40 = vpop.f32.mrf.mxu1 }
0x165c   :  { %v1776_v42 = vadd.f32 %v3028_v35, %v1775_v40 }
0x165e   :  { %v1779_v43 = vmax.f32 %v1776_v42, 0.0 }
0x1660   :  { %2848 = vmatmul.msk.f32.gmra.mxu3 %vm457_vm11, %v1779_v43 }
0x1693   :  { %v1804_v45 = vpop.f32.mrf.mxu3 }
0x1694   :  { %v1805_v29 = vadd.f32 %v3029_v44, %v1804_v45 }
0x1696   :  { %v1810_v53 = vadd.f32 %v1805_v29, %v1732_v11  ;;  %v3030_v11 = vld [vmem:[%s4195_s7 + $0xb] ss:$0 sm:$0xff] }
0x1698   :  { %v1814_v33 = vsel %vm65_vm0, %v1810_v53, 0.0 }
0x1699   :  { %1815 = vadd.xlane.f32.xlu2 %v1814_v33 }
0x16e3   :  { %v1807_v47 = vpop.f32.mrf.mxu3 }
0x16e4   :  { %v1808_v37 = vadd.f32 %v3029_v44, %v1807_v47 }
0x16e6   :  { %v1811_v48 = vadd.f32 %v1808_v37, %v1733_v30 }
0x16e8   :  { %v1817_v52 = vsel %vm65_vm0, %v1811_v48, 0.0 }
0x16e9   :  { %1818 = vadd.xlane.f32.xlu1 %v1817_v52 }
0x170c   :  { %v1816_v39 = vpop.xlane.xlu2 %1815 }
0x170d   :  { %v1820_v23 = vmul.f32 %v1816_v39, %v3401_v16 }
0x170f   :  { %v1822_v49 = vsub.f32 %v1810_v53, %v1820_v23  ;;  %v3188_v23 = vld [vmem:[%s4191_s3] sm:$0xff] }
0x1711   :  { %v1824_v50 = vmul.f32 %v1822_v49, %v1822_v49 }
0x1713   :  { %v1826_v54 = vsel %vm65_vm0, %v1824_v50, 0.0 }
0x1714   :  { %1827 = vadd.xlane.f32.xlu1 %v1826_v54 }
0x175c   :  { %v1819_v41 = vpop.xlane.xlu1 %1818 }
0x175d   :  { %v1821_v55 = vmul.f32 %v1819_v41, %v3401_v16  ;;  %v3189_v41 = vld [vmem:[%s4191_s3 + $0x8] sm:$0xff] }
0x175f   :  { %v1823_v56 = vsub.f32 %v1811_v48, %v1821_v55 }
0x1761   :  { %v1825_v57 = vmul.f32 %v1823_v56, %v1823_v56 }
0x1763   :  { %v1829_v51 = vsel %vm65_vm0, %v1825_v57, 0.0 }
0x1764   :  { %1830 = vadd.xlane.f32.xlu1 %v1829_v51  ;;  %v3190_v51 = vld [vmem:[%s4191_s3 + $0x10] sm:$0xff] }
0x1787   :  { %v1828_v63 = vpop.xlane.xlu1 %1827 }
0x1788   :  { %v1832_v0 = vmul.f32 %v1828_v63, %v3401_v16 }
0x178a   :  { %v1834_v59 = vadd.f32 1e-05, %v1832_v0 }
0x178c   :  { %3136 = vrsqrt.f32 %v1834_v59  ;;  %vm1842_vm13 = vweird.f32 %v1834_v59 }
0x1792   :  { %v3137_v1 = vpop.eup %3136 }
0x1793   :  { %v1837_v2 = vmul.f32 %v3137_v1, %v1834_v59  ;;  %vm1843_vm12 = vweird.f32 %v3137_v1 }
0x1794   :  { %vm1844_vm14 = vmor %vm1842_vm13, %vm1843_vm12 }
0x1795   :  { %v1838_v7 = vmul.f32 %v3137_v1, %v1837_v2 }
0x1797   :  { %v1839_v8 = vmul.f32 0.5, %v1838_v7 }
0x1799   :  { %v1840_v9 = vsub.f32 1.5, %v1839_v8 }
0x179b   :  { %v1841_v10 = vmul.f32 %v3137_v1, %v1840_v9 }
0x179d   :  { %v1845_v6 = vsel %vm1844_vm14, %v3137_v1, %v1841_v10 }
0x179e   :  { %v1856_v12 = vmul.f32 %v1845_v6, %v1822_v49 }
0x17a0   :  { %v1859_v62 = vmul.f32 %v3030_v11, %v1856_v12 }
0x17a2   :  { %v3887_v14 = vadd.f32 %v3031_v13, %v1859_v62 }
0x17a4   :  { %2854 = vmatmul.msk.f32.vlgmr.msra.gmra.mxu1 %vm65_vm0, %v3887_v14 }
0x17d7   :  { %v1831_v15 = vpop.xlane.xlu1 %1830 }
0x17d8   :  { %v1833_v4 = vmul.f32 %v1831_v15, %v3401_v16 }
0x17da   :  { %v1835_v17 = vadd.f32 1e-05, %v1833_v4 }
0x17dc   :  { %3138 = vrsqrt.f32 %v1835_v17  ;;  %vm1852_vm2 = vweird.f32 %v1835_v17 }
0x17e2   :  { %v3139_v18 = vpop.eup %3138 }
0x17e3   :  { %v1847_v19 = vmul.f32 %v3139_v18, %v1835_v17  ;;  %vm1853_vm15 = vweird.f32 %v3139_v18 }
0x17e4   :  { %vm1854_vm3 = vmor %vm1852_vm2, %vm1853_vm15 }
0x17e5   :  { %v1848_v5 = vmul.f32 %v3139_v18, %v1847_v19 }
0x17e7   :  { %v1849_v20 = vmul.f32 0.5, %v1848_v5 }
0x17e9   :  { %v1850_v21 = vsub.f32 1.5, %v1849_v20 }
0x17eb   :  { %v1851_v22 = vmul.f32 %v3139_v18, %v1850_v21 }
0x17ed   :  { %v1855_v24 = vsel %vm1854_vm3, %v3139_v18, %v1851_v22  ;;  %v2859_v22 = vld [vmem:[%s4194_s6 + $0x138] sm:$0xff] }
0x17ee   :  { %v1857_v26 = vmul.f32 %v1855_v24, %v1823_v56  ;;  %v2858_v24 = vld [vmem:[%s4194_s6 + $0x130] sm:$0xff]  ;;  %2143 = vmatpush.msra.mxu3 %v2859_v22 }
0x17f0   :  { %v1860_v27 = vmul.f32 %v3030_v11, %v1857_v26  ;;  %2144 = vmatpush.msra.mxu3 %v2858_v24 }
0x17f2   :  { %v3892_v30 = vadd.f32 %v3031_v13, %v1860_v27 }
0x17f4   :  { %2855 = vmatmul.msk.f32.gmra.mxu1 %vm65_vm0, %v3892_v30 }
0x1821   :  { %v1895_v32 = vpop.f32.mrf.mxu1 }
0x1822   :  { %v1896_v34 = vadd.f32 %v3032_v31, %v1895_v32 }
0x1824   :  { %1908 = vrot.lane.b32.xlu0 %v1896_v34, %s3252_s22 }
0x1871   :  { %v1898_v35 = vpop.f32.mrf.mxu1 }
0x1872   :  { %v1899_v36 = vadd.f32 %v3032_v31, %v1898_v35  ;;  %v2857_v31 = vld [vmem:[%s4194_s6 + $0x128] sm:$0xff] }
0x1873   :  { %2145 = vmatpush.msra.mxu3 %v2857_v31 }
0x1874   :  { %1914 = vrot.lane.b32.xlu0 %v1899_v36, %s3251_s21  ;;  %1910 = vrot.lane.b32.xlu1 %v1899_v36, %s3252_s22  ;;  %v2988_v42 = vpack.i.bf16 %v1896_v34, %v1899_v36 }
0x1896   :  { %v1909_v38 = vpop.permute.xlu0 %1908 }
0x1897   :  { %1916 = vrot.lane.b32.xlu1 %v1909_v38, %s3251_s21 }
0x189f   :  { %1912 = vrot.lane.b32.xlu1 %v1896_v34, %s3251_s21 }
0x18e6   :  { %v1911_v25 = vpop.permute.xlu1 %1910  ;;  %v1915_v45 = vpop.permute.xlu0 %1914 }
0x18e7   :  { %v2983_v40 = vpack.i.bf16 %v1909_v38, %v1911_v25  ;;  %1918 = vrot.lane.b32.xlu2 %v1911_v25, %s3251_s21 }
0x18e9   :  { %2984 = vrot.lane.b32.xlu0 %v2983_v40, %s3253_s0 }
0x18f1   :  { %2989 = vrot.lane.b32.xlu0 %v2988_v42, %s3253_s0 }
0x1909   :  { %v1917_v44 = vpop.permute.xlu1 %1916 }
0x1911   :  { %v1913_v29 = vpop.permute.xlu1 %1912 }
0x1941   :  { %v1919_v43 = vpop.permute.xlu2 %1918 }
0x1942   :  { %2861 = vmatpush.xpose.msk.msrb.mxu0 %vm114_vm1, %v1919_v43 }
0x1946   :  { %2862 = vmatpush.xpose.msk.msrb.mxu0 %vm114_vm1, %v1917_v44 }
0x194a   :  { %2863 = vmatpush.xpose.msk.msrb.mxu0 %vm114_vm1, %v1915_v45 }
0x194e   :  { %2864 = vmatpush.xpose.msk.msrb.mxu0 %vm114_vm1, %v1913_v29 }
0x1951   :  { %2865 = vmatmul.msk.f32.vlgmr.msrb.gmra.mxu0 %vm114_vm1, %v1896_v34 }
0x1959   :  { %2866 = vmatmul.msk.f32.gmra.mxu0 %vm114_vm1, %v1899_v36 }
0x195b   :  { %v2985_v53 = vpop.permute.xlu0 %2984 }
0x195c   :  { %v2986_v33 = vunpack.i.l.bf16 %v2985_v53  ;;  %v2987_v47 = vunpack.i.h.bf16 %v2985_v53 }
0x195e   :  { %2037 = vmatpush.msra.mxu2 %v2986_v33 }
0x1960   :  { %2038 = vmatpush.msra.mxu2 %v2987_v47 }
0x1961   :  { %2867 = vmatmul.msk.f32.gmra.mxu0 %vm114_vm1, %v1909_v38 }
0x1963   :  { %v2990_v37 = vpop.permute.xlu0 %2989 }
0x1964   :  { %v2991_v48 = vunpack.i.l.bf16 %v2990_v37  ;;  %v2992_v52 = vunpack.i.h.bf16 %v2990_v37 }
0x1966   :  { %2039 = vmatpush.msra.mxu2 %v2991_v48 }
0x1968   :  { %2040 = vmatpush.msra.mxu2 %v2992_v52 }
0x1969   :  { %2868 = vmatmul.msk.f32.gmra.mxu0 %vm114_vm1, %v1911_v25 }
0x19ce   :  { %v1953_v39 = vpop.f32.mrf.mxu0 }
0x19cf   :  { %v1954_v49 = vadd.f32 %v3188_v23, %v1953_v39 }
0x19d1   :  { %v1965_v50 = vsel %vm65_vm0, %v1954_v49, -inf }
0x19d2   :  { %1966 = vmax.xlane.f32.xlu2 %v1965_v50 }
0x19d6   :  { %v1956_v54 = vpop.f32.mrf.mxu0 }
0x19d7   :  { %v1957_v55 = vadd.f32 %v3189_v41, %v1956_v54 }
0x19d9   :  { %v1968_v56 = vsel %vm65_vm0, %v1957_v55, -inf }
0x19da   :  { %1969 = vmax.xlane.f32.xlu1 %v1968_v56 }
0x19de   :  { %v1959_v57 = vpop.f32.mrf.mxu0 }
0x19df   :  { %v1960_v46 = vadd.f32 %v3190_v51, %v1959_v57  ;;  %v2856_v51 = vld [vmem:[%s4194_s6 + $0x120] sm:$0xff] }
0x19e0   :  { %2146 = vmatpush.msra.mxu3 %v2856_v51 }
0x19e1   :  { %v1971_v58 = vsel %vm65_vm0, %v1960_v46, -inf }
0x19e2   :  { %1972 = vmax.xlane.f32.xlu0 %v1971_v58 }
0x19e6   :  { %v1962_v60 = vpop.f32.mrf.mxu0 }
0x19e7   :  { %v1963_v63 = vadd.f32 %v3191_v61, %v1962_v60  ;;  %v2887_v61 = vld [vmem:[%s4194_s6 + $0x178] sm:$0xff] }
0x19e8   :  { %2261 = vmatpush.msrb.mxu3 %v2887_v61 }
0x19e9   :  { %v1974_v0 = vsel %vm65_vm0, %v1963_v63, -inf }
0x19ea   :  { %1975 = vmax.xlane.f32.xlu2 %v1974_v0 }
0x1a45   :  { %v1967_v59 = vpop.xlane.xlu2 %1966 }
0x1a46   :  { %v1977_v1 = vsub.f32 %v1954_v49, %v1967_v59  ;;  %v2885_v59 = vld [vmem:[%s4194_s6 + $0x168] sm:$0xff] }
0x1a48   :  { %v1981_v2 = vmul.f32 1.442695, %v1977_v1 }
0x1a4a   :  { %3140 = vpow2.f32 %v1981_v2  ;;  %v2884_v2 = vld [vmem:[%s4194_s6 + $0x160] sm:$0xff] }
0x1a4d   :  { %v1970_v7 = vpop.xlane.xlu1 %1969 }
0x1a4e   :  { %v1978_v8 = vsub.f32 %v1957_v55, %v1970_v7 }
0x1a50   :  { %v3141_v9 = vpop.eup %3140  ;;  %v1983_v10 = vmul.f32 1.442695, %v1978_v8 }
0x1a51   :  { %2869 = vmatmul.msk.f32.vlgmr.msra.gmra.mxu2 %vm65_vm0, %v3141_v9  ;;  %v1989_v5 = vsel %vm65_vm0, %v3141_v9, 0.0 }
0x1a52   :  { %3142 = vpow2.f32 %v1983_v10 }
0x1a55   :  { %v1973_v11 = vpop.xlane.xlu0 %1972 }
0x1a56   :  { %v1979_v6 = vsub.f32 %v1960_v46, %v1973_v11 }
0x1a58   :  { %v3143_v12 = vpop.eup %3142  ;;  %v1985_v13 = vmul.f32 1.442695, %v1979_v6 }
0x1a59   :  { %2870 = vmatmul.msk.f32.gmra.mxu2 %vm65_vm0, %v3143_v12  ;;  %v1992_v21 = vsel %vm65_vm0, %v3143_v12, 0.0 }
0x1a5a   :  { %3144 = vpow2.f32 %v1985_v13 }
0x1a5d   :  { %v1976_v62 = vpop.xlane.xlu2 %1975 }
0x1a5e   :  { %v1980_v15 = vsub.f32 %v1963_v63, %v1976_v62  ;;  %v2886_v63 = vld [vmem:[%s4194_s6 + $0x170] sm:$0xff] }
0x1a5f   :  { %2262 = vmatpush.msrb.mxu3 %v2886_v63 }
0x1a60   :  { %v3145_v4 = vpop.eup %3144  ;;  %v1987_v17 = vmul.f32 1.442695, %v1980_v15 }
0x1a61   :  { %2871 = vmatmul.msk.f32.gmra.mxu2 %vm65_vm0, %v3145_v4  ;;  %v1995_v18 = vsel %vm65_vm0, %v3145_v4, 0.0  ;;  %2263 = vmatpush.msrb.mxu3 %v2885_v59 }
0x1a62   :  { %3146 = vpow2.f32 %v1987_v17  ;;  %1996 = vadd.xlane.f32.xlu1 %v1995_v18 }
0x1a63   :  { %2264 = vmatpush.msrb.mxu3 %v2884_v2 }
0x1a68   :  { %v3147_v19 = vpop.eup %3146 }
0x1a69   :  { %2872 = vmatmul.msk.f32.gmra.mxu2 %vm65_vm0, %v3147_v19  ;;  %v1998_v20 = vsel %vm65_vm0, %v3147_v19, 0.0 }
0x1a6a   :  { %1990 = vadd.xlane.f32.xlu1 %v1989_v5  ;;  %1999 = vadd.xlane.f32.xlu2 %v1998_v20 }
0x1a72   :  { %1993 = vadd.xlane.f32.xlu2 %v1992_v21 }
0x1ad4   :  { %v3945_v26 = vpop.f32.mrf.mxu2 }
0x1ad5   :  { %v1997_v27 = vpop.xlane.xlu1 %1996 }
0x1ad6   :  { %3148 = vrcp.f32 %v1997_v27  ;;  %v2093_v25 = vand.u32 2147483648, %v1997_v27  ;;  %v2091_v42 = vand.u32 2147483647, %v1997_v27  ;;  %vm2087_vm5 = vweird.f32 %v1997_v27 }
0x1ad8   :  { %v2094_v44 = vor.u32 1.1754944e-38, %v2093_v25  ;;  %vm2092_vm7 = vcmp.eq.f32.partialorder %v2091_v42, 8.507059e+37 }
0x1adc   :  { %v3149_v32 = vpop.eup %3148  ;;  %v3950_v34 = vpop.f32.mrf.mxu2 }
0x1add   :  { %v2083_v35 = vmul.f32 %v3149_v32, %v1997_v27  ;;  %v2000_v36 = vpop.xlane.xlu2 %1999  ;;  %vm2088_vm4 = vweird.f32 %v3149_v32  ;;  %v1991_v57 = vpop.xlane.xlu1 %1990 }
0x1ade   :  { %3150 = vrcp.f32 %v2000_v36  ;;  %vm2089_vm6 = vmor %vm2087_vm5, %vm2088_vm4  ;;  %v2107_v52 = vand.u32 2147483648, %v2000_v36  ;;  %v2105_v23 = vand.u32 2147483647, %v2000_v36  ;;  %vm2101_vm9 = vweird.f32 %v2000_v36 }
0x1adf   :  { %v2084_v38 = vsub.f32 1.0, %v2083_v35  ;;  %3152 = vrcp.f32 %v1991_v57  ;;  %v2065_v10 = vand.u32 2147483648, %v1991_v57  ;;  %vm2059_vm14 = vweird.f32 %v1991_v57 }
0x1ae0   :  { %v2108_v50 = vor.u32 1.1754944e-38, %v2107_v52  ;;  %vm2106_vm12 = vcmp.eq.f32.partialorder %v2105_v23, 8.507059e+37  ;;  %v2063_v6 = vand.u32 2147483647, %v1991_v57 }
0x1ae1   :  { %v2085_v40 = vmul.f32 %v3149_v32, %v2084_v38  ;;  %v2066_v13 = vor.u32 1.1754944e-38, %v2065_v10 }
0x1ae2   :  { %vm2064_vm2 = vcmp.eq.f32.partialorder %v2063_v6, 8.507059e+37 }
0x1ae3   :  { %v2086_v43 = vadd.f32 %v3149_v32, %v2085_v40 }
0x1ae4   :  { %v3151_v45 = vpop.eup %3150  ;;  %v2048_v29 = vpop.f32.mrf.mxu2 }
0x1ae5   :  { %v2090_v53 = vsel %vm2089_vm6, %v3149_v32, %v2086_v43  ;;  %v2097_v33 = vmul.f32 %v3151_v45, %v2000_v36  ;;  %vm2102_vm8 = vweird.f32 %v3151_v45  ;;  %v3153_v46 = vpop.eup %3152  ;;  %v1994_v58 = vpop.xlane.xlu2 %1993 }
0x1ae6   :  { %v2095_v47 = vsel %vm2092_vm7, %v2094_v44, %v2090_v53  ;;  %vm2103_vm10 = vmor %vm2101_vm9, %vm2102_vm8  ;;  %v2055_v60 = vmul.f32 %v3153_v46, %v1991_v57  ;;  %3154 = vrcp.f32 %v1994_v58  ;;  %vm2060_vm13 = vweird.f32 %v3153_v46  ;;  %v2878_v53 = vld [vmem:[%s4194_s6 + $0x148] sm:$0xff] }
0x1ae7   :  { %v2112_v37 = vmul.f32 %v2095_v47, %v2048_v29  ;;  %v2098_v48 = vsub.f32 1.0, %v2097_v33  ;;  %vm2061_vm15 = vmor %vm2059_vm14, %vm2060_vm13  ;;  %v2079_v17 = vand.u32 2147483648, %v1994_v58  ;;  %vm2073_vm4 = vweird.f32 %v1994_v58  ;;  %v2877_v33 = vld [vmem:[%s4194_s6 + $0x140] sm:$0xff] }
0x1ae8   :  { %v2056_v0 = vsub.f32 1.0, %v2055_v60  ;;  %v2077_v19 = vand.u32 2147483647, %v1994_v58 }
0x1ae9   :  { %2116 = vrot.lane.b32.xlu0 %v2112_v37, %s3254_s10  ;;  %v2099_v39 = vmul.f32 %v3151_v45, %v2098_v48  ;;  %v2080_v22 = vor.u32 1.1754944e-38, %v2079_v17 }
0x1aea   :  { %v2057_v7 = vmul.f32 %v3153_v46, %v2056_v0  ;;  %vm2078_vm6 = vcmp.eq.f32.partialorder %v2077_v19, 8.507059e+37 }
0x1aeb   :  { %v2100_v49 = vadd.f32 %v3151_v45, %v2099_v39 }
0x1aec   :  { %v2051_v41 = vpop.f32.mrf.mxu2  ;;  %v3155_v1 = vpop.eup %3154  ;;  %v2058_v9 = vadd.f32 %v3153_v46, %v2057_v7 }
0x1aed   :  { %v2104_v54 = vsel %vm2103_vm10, %v3151_v45, %v2100_v49  ;;  %v2069_v8 = vmul.f32 %v3155_v1, %v1994_v58  ;;  %vm2074_vm3 = vweird.f32 %v3155_v1 }
0x1aee   :  { %v2109_v55 = vsel %vm2106_vm12, %v2108_v50, %v2104_v54  ;;  %v2062_v12 = vsel %vm2061_vm15, %v3153_v46, %v2058_v9  ;;  %vm2075_vm5 = vmor %vm2073_vm4, %vm2074_vm3 }
0x1aef   :  { %v2113_v56 = vmul.f32 %v2109_v55, %v2051_v41  ;;  %v2070_v11 = vsub.f32 1.0, %v2069_v8  ;;  %v2067_v15 = vsel %vm2064_vm2, %v2066_v13, %v2062_v12 }
0x1af0   :  { %v2110_v18 = vmul.f32 %v2067_v15, %v3945_v26  ;;  %v3033_v26 = vld [vmem:[%s4195_s7 + $0x11] ss:$0 sm:$0xff]  ;;  %v3036_v15 = vld [vmem:[%s4195_s7 + $0x13] ss:$0 sm:$0xff] }
0x1af1   :  { %2118 = vrot.lane.b32.xlu1 %v2113_v56, %s3254_s10  ;;  %v2071_v62 = vmul.f32 %v3155_v1, %v2070_v11  ;;  %v3035_v11 = vld [vmem:[%s4195_s7 + $0x12] ss:$0 sm:$0xff] }
0x1af3   :  { %v2072_v4 = vadd.f32 %v3155_v1, %v2071_v62 }
0x1af5   :  { %v2076_v21 = vsel %vm2075_vm5, %v3155_v1, %v2072_v4 }
0x1af6   :  { %v2081_v24 = vsel %vm2078_vm6, %v2080_v22, %v2076_v21 }
0x1af7   :  { %v2111_v27 = vmul.f32 %v2081_v24, %v3950_v34 }
0x1b5b   :  { %v2117_v5 = vpop.permute.xlu0 %2116 }
0x1b5c   :  { %v2122_v20 = vsel %vm114_vm1, %v2110_v18, %v2117_v5 }
0x1b5d   :  { %2873 = vmatmul.msk.f32.vlgmr.msra.gmra.mxu3 %vm65_vm0, %v2122_v20 }
0x1b63   :  { %v2119_v31 = vpop.permute.xlu1 %2118 }
0x1b64   :  { %v2123_v32 = vsel %vm114_vm1, %v2111_v27, %v2119_v31 }
0x1b65   :  { %2874 = vmatmul.msk.f32.gmra.mxu3 %vm65_vm0, %v2123_v32 }
0x1b6d   :  { %2889 = vmatmul.msk.f32.vlgmr.msrb.gmra.mxu3 %vm65_vm0, %v3664_v28 }
0x1b75   :  { %2890 = vmatmul.msk.f32.gmra.mxu3 %vm65_vm0, %v3697_v3  ;;  %v3034_v3 = vld [vmem:[%s4195_s7 + $0x15] ss:$0 sm:$0xff] }
0x1be0   :  { %v2148_v35 = vpop.f32.mrf.mxu3 }
0x1be1   :  { %v2149_v36 = vadd.f32 %v3033_v26, %v2148_v35 }
0x1be3   :  { %v2154_v38 = vadd.f32 %v2149_v36, %v3887_v14  ;;  %v2880_v14 = vld [vmem:[%s4194_s6 + $0x158] sm:$0xff] }
0x1be4   :  { %2232 = vmatpush.msrb.mxu1 %v2880_v14 }
0x1be5   :  { %v2158_v34 = vsel %vm65_vm0, %v2154_v38, 0.0 }
0x1be6   :  { %2159 = vadd.xlane.f32.xlu2 %v2158_v34 }
0x1be8   :  { %v2151_v25 = vpop.f32.mrf.mxu3 }
0x1be9   :  { %v2152_v40 = vadd.f32 %v3033_v26, %v2151_v25 }
0x1beb   :  { %v2155_v42 = vadd.f32 %v2152_v40, %v3892_v30  ;;  %v2879_v30 = vld [vmem:[%s4194_s6 + $0x150] sm:$0xff] }
0x1bec   :  { %2233 = vmatpush.msrb.mxu1 %v2879_v30  ;;  %v3193_v30 = vld [vmem:[%s4190_s2 + $0x8] sm:$0xff] }
0x1bed   :  { %v2161_v28 = vsel %vm65_vm0, %v2155_v42, 0.0 }
0x1bee   :  { %2162 = vadd.xlane.f32.xlu2 %v2161_v28  ;;  %2234 = vmatpush.msrb.mxu1 %v2878_v53 }
0x1bf0   :  { %v2266_v43 = vpop.f32.mrf.mxu3  ;;  %2235 = vmatpush.msrb.mxu1 %v2877_v33 }
0x1bf1   :  { %v2267_v44 = vadd.f32 %v3034_v3, %v2266_v43 }
0x1bf8   :  { %v2269_v45 = vpop.f32.mrf.mxu3 }
0x1bf9   :  { %v2270_v29 = vadd.f32 %v3034_v3, %v2269_v45 }
0x1bfb   :  { %2287 = vrot.lane.b32.xlu1 %v2270_v29, %s3252_s22  ;;  %v2998_v56 = vpack.i.bf16 %v2267_v44, %v2270_v29 }
0x1c59   :  { %v2160_v47 = vpop.xlane.xlu2 %2159 }
0x1c5a   :  { %v2164_v37 = vmul.f32 %v2160_v47, %v3401_v16 }
0x1c5c   :  { %v2166_v48 = vsub.f32 %v2154_v38, %v2164_v37  ;;  %v3037_v38 = vld [vmem:[%s4195_s7 + $0x14] ss:$0 sm:$0xff] }
0x1c5d   :  { %v3194_v37 = vld [vmem:[%s4190_s2 + $0x10] sm:$0xff] }
0x1c5e   :  { %v2168_v52 = vmul.f32 %v2166_v48, %v2166_v48 }
0x1c60   :  { %v2170_v39 = vsel %vm65_vm0, %v2168_v52, 0.0 }
0x1c61   :  { %2171 = vadd.xlane.f32.xlu2 %v2170_v39  ;;  %v2163_v23 = vpop.xlane.xlu2 %2162 }
0x1c62   :  { %v2165_v49 = vmul.f32 %v2163_v23, %v3401_v16 }
0x1c64   :  { %v2167_v50 = vsub.f32 %v2155_v42, %v2165_v49 }
0x1c66   :  { %v2169_v54 = vmul.f32 %v2167_v50, %v2167_v50 }
0x1c68   :  { %v2173_v41 = vsel %vm65_vm0, %v2169_v54, 0.0  ;;  %v3195_v54 = vld [vmem:[%s4190_s2 + $0x18] sm:$0xff] }
0x1c69   :  { %2174 = vadd.xlane.f32.xlu0 %v2173_v41 }
0x1c6d   :  { %v2288_v55 = vpop.permute.xlu1 %2287 }
0x1c6e   :  { %2896 = vmatpush.xpose.msk.msra.mxu1 %vm114_vm1, %v2288_v55 }
0x1c79   :  { %2285 = vrot.lane.b32.xlu2 %v2267_v44, %s3252_s22 }
0x1c7d   :  { %2999 = vrot.lane.b32.xlu0 %v2998_v56, %s3251_s21 }
0x1cd4   :  { %v2172_v57 = vpop.xlane.xlu2 %2171 }
0x1cd5   :  { %v2176_v51 = vmul.f32 %v2172_v57, %v3401_v16 }
0x1cd7   :  { %v2178_v46 = vadd.f32 1e-05, %v2176_v51 }
0x1cd9   :  { %3156 = vrsqrt.f32 %v2178_v46  ;;  %vm2186_vm8 = vweird.f32 %v2178_v46 }
0x1cdc   :  { %v2286_v58 = vpop.permute.xlu2 %2285  ;;  %v2175_v60 = vpop.xlane.xlu0 %2174 }
0x1cdd   :  { %v2993_v61 = vpack.i.bf16 %v2286_v58, %v2288_v55  ;;  %2897 = vmatpush.xpose.msk.msra.mxu1 %vm114_vm1, %v2286_v58  ;;  %v2177_v63 = vmul.f32 %v2175_v60, %v3401_v16 }
0x1cdf   :  { %v3157_v0 = vpop.eup %3156  ;;  %2994 = vrot.lane.b32.xlu2 %v2993_v61, %s3251_s21  ;;  %v2179_v1 = vadd.f32 1e-05, %v2177_v63 }
0x1ce0   :  { %v2181_v59 = vmul.f32 %v3157_v0, %v2178_v46  ;;  %vm2187_vm7 = vweird.f32 %v3157_v0 }
0x1ce1   :  { %2898 = vmatpush.xpose.msk.msra.mxu1 %vm114_vm1, %v2270_v29  ;;  %3158 = vrsqrt.f32 %v2179_v1  ;;  %vm2188_vm9 = vmor %vm2186_vm8, %vm2187_vm7  ;;  %vm2196_vm12 = vweird.f32 %v2179_v1 }
0x1ce2   :  { %v2182_v2 = vmul.f32 %v3157_v0, %v2181_v59 }
0x1ce4   :  { %v2183_v7 = vmul.f32 0.5, %v2182_v2 }
0x1ce5   :  { %2899 = vmatpush.xpose.msk.msra.mxu1 %vm114_vm1, %v2267_v44  ;;  %v3192_v44 = vld [vmem:[%s4190_s2] sm:$0xff] }
0x1ce6   :  { %v2184_v8 = vsub.f32 1.5, %v2183_v7 }
0x1ce7   :  { %v3159_v9 = vpop.eup %3158 }
0x1ce8   :  { %v2185_v10 = vmul.f32 %v3157_v0, %v2184_v8  ;;  %v2191_v6 = vmul.f32 %v3159_v9, %v2179_v1  ;;  %vm2197_vm10 = vweird.f32 %v3159_v9 }
0x1ce9   :  { %vm2198_vm13 = vmor %vm2196_vm12, %vm2197_vm10 }
0x1cea   :  { %v2189_v12 = vsel %vm2188_vm9, %v3157_v0, %v2185_v10  ;;  %v2192_v62 = vmul.f32 %v3159_v9, %v2191_v6 }
0x1ceb   :  { %v2200_v13 = vmul.f32 %v2189_v12, %v2166_v48 }
0x1cec   :  { %v2193_v17 = vmul.f32 0.5, %v2192_v62 }
0x1ced   :  { %v2203_v4 = vmul.f32 %v3035_v11, %v2200_v13 }
0x1cee   :  { %v2194_v18 = vsub.f32 1.5, %v2193_v17 }
0x1cef   :  { %v4021_v19 = vadd.f32 %v3036_v15, %v2203_v4  ;;  %v3000_v32 = vpop.permute.xlu0 %2999 }
0x1cf0   :  { %v2195_v5 = vmul.f32 %v3159_v9, %v2194_v18  ;;  %v3001_v35 = vunpack.i.l.bf16 %v3000_v32  ;;  %v3002_v36 = vunpack.i.h.bf16 %v3000_v32 }
0x1cf1   :  { %2882 = vmatmul.msk.f32.vlgmr.msrb.gmra.mxu1 %vm65_vm0, %v4021_v19 }
0x1cf2   :  { %v2199_v20 = vsel %vm2198_vm13, %v3159_v9, %v2195_v5 }
0x1cf3   :  { %v2201_v21 = vmul.f32 %v2199_v20, %v2167_v50 }
0x1cf5   :  { %v2204_v22 = vmul.f32 %v3035_v11, %v2201_v21 }
0x1cf7   :  { %v4025_v24 = vadd.f32 %v3036_v15, %v2204_v22 }
0x1cf9   :  { %2883 = vmatmul.msk.f32.gmra.mxu1 %vm65_vm0, %v4025_v24 }
0x1d39   :  { %v2995_v27 = vpop.permute.xlu2 %2994 }
0x1d3a   :  { %v2996_v31 = vunpack.i.l.bf16 %v2995_v27  ;;  %v2997_v26 = vunpack.i.h.bf16 %v2995_v27 }
0x1d3c   :  { %2406 = vmatpush.msra.mxu0 %v2996_v31 }
0x1d3e   :  { %2407 = vmatpush.msra.mxu0 %v2997_v26 }
0x1d40   :  { %2408 = vmatpush.msra.mxu0 %v3001_v35 }
0x1d42   :  { %2409 = vmatpush.msra.mxu0 %v3002_v36 }
0x1d6e   :  { %v2237_v34 = vpop.f32.mrf.mxu1 }
0x1d6f   :  { %v2238_v25 = vadd.f32 %v3037_v38, %v2237_v34 }
0x1d71   :  { %2279 = vrot.lane.b32.xlu1 %v2238_v25, %s3252_s22  ;;  %2900 = vmatmul.msk.f32.vlgmr.msra.gmra.mxu1 %vm114_vm1, %v2238_v25 }
0x1d76   :  { %v2240_v40 = vpop.f32.mrf.mxu1 }
0x1d77   :  { %v2241_v42 = vadd.f32 %v3037_v38, %v2240_v40 }
0x1d79   :  { %2281 = vrot.lane.b32.xlu1 %v2241_v42, %s3252_s22  ;;  %2901 = vmatmul.msk.f32.gmra.mxu1 %vm114_vm1, %v2241_v42 }
0x1de3   :  { %v2280_v28 = vpop.permute.xlu1 %2279 }
0x1de4   :  { %2902 = vmatmul.msk.f32.gmra.mxu1 %vm114_vm1, %v2280_v28 }
0x1deb   :  { %v2282_v3 = vpop.permute.xlu1 %2281 }
0x1dec   :  { %2903 = vmatmul.msk.f32.gmra.mxu1 %vm114_vm1, %v2282_v3 }
0x1dee   :  { %v2322_v43 = vpop.f32.mrf.mxu1 }
0x1def   :  { %v2323_v45 = vadd.f32 %v3192_v44, %v2322_v43 }
0x1df1   :  { %v2334_v29 = vsel %vm65_vm0, %v2323_v45, -inf }
0x1df2   :  { %2335 = vmax.xlane.f32.xlu1 %v2334_v29  ;;  %v2894_v29 = vld [vmem:[%s4194_s6 + $0x198] sm:$0xff] }
0x1df3   :  { %2512 = vmatpush.msrb.mxu2 %v2894_v29  ;;  %v2921_v29 = vld [vmem:[%s4194_s6 + $0x1e0] sm:$0xff] }
0x1df6   :  { %v2325_v14 = vpop.f32.mrf.mxu1 }
0x1df7   :  { %v2326_v53 = vadd.f32 %v3193_v30, %v2325_v14  ;;  %v2893_v14 = vld [vmem:[%s4194_s6 + $0x190] sm:$0xff]  ;;  %v2892_v30 = vld [vmem:[%s4194_s6 + $0x188] sm:$0xff] }
0x1df8   :  { %2513 = vmatpush.msrb.mxu2 %v2893_v14 }
0x1df9   :  { %v2337_v33 = vsel %vm65_vm0, %v2326_v53, -inf }
0x1dfa   :  { %2338 = vmax.xlane.f32.xlu2 %v2337_v33  ;;  %2514 = vmatpush.msrb.mxu2 %v2892_v30  ;;  %v2891_v33 = vld [vmem:[%s4194_s6 + $0x180] sm:$0xff] }
0x1dfc   :  { %2515 = vmatpush.msrb.mxu2 %v2891_v33 }
0x1e61   :  { %v2328_v47 = vpop.f32.mrf.mxu1 }
0x1e62   :  { %v2329_v48 = vadd.f32 %v3194_v37, %v2328_v47 }
0x1e64   :  { %v2340_v52 = vsel %vm65_vm0, %v2329_v48, -inf }
0x1e65   :  { %2341 = vmax.xlane.f32.xlu0 %v2340_v52  ;;  %v2336_v39 = vpop.xlane.xlu1 %2335 }
0x1e66   :  { %v2346_v23 = vsub.f32 %v2323_v45, %v2336_v39 }
0x1e68   :  { %v2350_v49 = vmul.f32 1.442695, %v2346_v23 }
0x1e69   :  { %v2331_v50 = vpop.f32.mrf.mxu1 }
0x1e6a   :  { %3160 = vpow2.f32 %v2350_v49  ;;  %v2332_v41 = vadd.f32 %v3195_v54, %v2331_v50 }
0x1e6c   :  { %v2343_v55 = vsel %vm65_vm0, %v2332_v41, -inf }
0x1e6d   :  { %2344 = vmax.xlane.f32.xlu1 %v2343_v55  ;;  %v2339_v56 = vpop.xlane.xlu2 %2338 }
0x1e6e   :  { %v2347_v57 = vsub.f32 %v2326_v53, %v2339_v56 }
0x1e70   :  { %v3161_v51 = vpop.eup %3160  ;;  %v2352_v46 = vmul.f32 1.442695, %v2347_v57 }
0x1e71   :  { %2904 = vmatmul.msk.f32.vlgmr.msra.gmra.mxu0 %vm65_vm0, %v3161_v51  ;;  %v2358_v9 = vsel %vm65_vm0, %v3161_v51, 0.0 }
0x1e72   :  { %3162 = vpow2.f32 %v2352_v46 }
0x1e78   :  { %v3163_v58 = vpop.eup %3162 }
0x1e79   :  { %2905 = vmatmul.msk.f32.gmra.mxu0 %vm65_vm0, %v3163_v58  ;;  %v2361_v11 = vsel %vm65_vm0, %v3163_v58, 0.0 }
0x1ed8   :  { %v2342_v60 = vpop.xlane.xlu0 %2341 }
0x1ed9   :  { %v2348_v61 = vsub.f32 %v2329_v48, %v2342_v60 }
0x1edb   :  { %v2354_v63 = vmul.f32 1.442695, %v2348_v61 }
0x1edd   :  { %3164 = vpow2.f32 %v2354_v63 }
0x1ee0   :  { %v2345_v0 = vpop.xlane.xlu1 %2344 }
0x1ee1   :  { %v2349_v59 = vsub.f32 %v2332_v41, %v2345_v0 }
0x1ee3   :  { %v3165_v1 = vpop.eup %3164  ;;  %v2356_v2 = vmul.f32 1.442695, %v2349_v59 }
0x1ee4   :  { %2906 = vmatmul.msk.f32.gmra.mxu0 %vm65_vm0, %v3165_v1  ;;  %v2364_v7 = vsel %vm65_vm0, %v3165_v1, 0.0 }
0x1ee5   :  { %2365 = vadd.xlane.f32.xlu1 %v2364_v7  ;;  %3166 = vpow2.f32 %v2356_v2 }
0x1eeb   :  { %v3167_v8 = vpop.eup %3166 }
0x1eec   :  { %2907 = vmatmul.msk.f32.gmra.mxu0 %vm65_vm0, %v3167_v8  ;;  %v2367_v10 = vsel %vm65_vm0, %v3167_v8, 0.0 }
0x1eed   :  { %2359 = vadd.xlane.f32.xlu1 %v2358_v9  ;;  %2368 = vadd.xlane.f32.xlu2 %v2367_v10 }
0x1eee   :  { %v4062_v6 = vpop.f32.mrf.mxu0 }
0x1ef5   :  { %2362 = vadd.xlane.f32.xlu2 %v2361_v11  ;;  %v3038_v11 = vld [vmem:[%s4195_s7 + $0x16] ss:$0 sm:$0xff] }
0x1ef6   :  { %v4064_v62 = vpop.f32.mrf.mxu0 }
0x1f58   :  { %v2366_v12 = vpop.xlane.xlu1 %2365 }
0x1f59   :  { %3168 = vrcp.f32 %v2366_v12  ;;  %v2462_v18 = vand.u32 2147483648, %v2366_v12  ;;  %v2460_v20 = vand.u32 2147483647, %v2366_v12  ;;  %vm2456_vm15 = vweird.f32 %v2366_v12 }
0x1f5b   :  { %v2463_v22 = vor.u32 1.1754944e-38, %v2462_v18  ;;  %vm2461_vm3 = vcmp.eq.f32.partialorder %v2460_v20, 8.507059e+37 }
0x1f5f   :  { %v3169_v13 = vpop.eup %3168 }
0x1f60   :  { %v2452_v15 = vmul.f32 %v3169_v13, %v2366_v12  ;;  %v2369_v4 = vpop.xlane.xlu2 %2368  ;;  %vm2457_vm14 = vweird.f32 %v3169_v13  ;;  %v2360_v53 = vpop.xlane.xlu1 %2359 }
0x1f61   :  { %3170 = vrcp.f32 %v2369_v4  ;;  %vm2458_vm2 = vmor %vm2456_vm15, %vm2457_vm14  ;;  %v2417_v31 = vpop.f32.mrf.mxu0  ;;  %v2476_v34 = vand.u32 2147483648, %v2369_v4  ;;  %v2474_v40 = vand.u32 2147483647, %v2369_v4  ;;  %vm2470_vm5 = vweird.f32 %v2369_v4 }
0x1f62   :  { %v2453_v17 = vsub.f32 1.0, %v2452_v15  ;;  %3172 = vrcp.f32 %v2360_v53  ;;  %v2434_v41 = vand.u32 2147483648, %v2360_v53  ;;  %vm2428_vm9 = vweird.f32 %v2360_v53 }
0x1f63   :  { %v2477_v28 = vor.u32 1.1754944e-38, %v2476_v34  ;;  %vm2475_vm7 = vcmp.eq.f32.partialorder %v2474_v40, 8.507059e+37  ;;  %v2432_v55 = vand.u32 2147483647, %v2360_v53  ;;  %v2912_v34 = vld [vmem:[%s4194_s6 + $0x1a0] sm:$0xff] }
0x1f64   :  { %v2454_v5 = vmul.f32 %v3169_v13, %v2453_v17  ;;  %v2435_v51 = vor.u32 1.1754944e-38, %v2434_v41 }
0x1f65   :  { %vm2433_vm12 = vcmp.eq.f32.partialorder %v2432_v55, 8.507059e+37  ;;  %v3040_v55 = vld [vmem:[%s4195_s7 + $0x18] ss:$0 sm:$0xff] }
0x1f66   :  { %v2455_v21 = vadd.f32 %v3169_v13, %v2454_v5 }
0x1f67   :  { %v3171_v27 = vpop.eup %3170 }
0x1f68   :  { %v2459_v32 = vsel %vm2458_vm2, %v3169_v13, %v2455_v21  ;;  %v2466_v26 = vmul.f32 %v3171_v27, %v2369_v4  ;;  %vm2471_vm4 = vweird.f32 %v3171_v27  ;;  %v2363_v47 = vpop.xlane.xlu2 %2362  ;;  %v3173_v37 = vpop.eup %3172 }
0x1f69   :  { %v2464_v35 = vsel %vm2461_vm3, %v2463_v22, %v2459_v32  ;;  %vm2472_vm6 = vmor %vm2470_vm5, %vm2471_vm4  ;;  %v2420_v43 = vpop.f32.mrf.mxu0  ;;  %3174 = vrcp.f32 %v2363_v47  ;;  %v2424_v48 = vmul.f32 %v3173_v37, %v2360_v53  ;;  %vm2429_vm8 = vweird.f32 %v3173_v37  ;;  %v2920_v53 = vld [vmem:[%s4194_s6 + $0x1d8] sm:$0xff] }
0x1f6a   :  { %v2481_v36 = vmul.f32 %v2464_v35, %v2417_v31  ;;  %v2467_v38 = vsub.f32 1.0, %v2466_v26  ;;  %vm2430_vm10 = vmor %vm2428_vm9, %vm2429_vm8  ;;  %v2448_v60 = vand.u32 2147483648, %v2363_v47  ;;  %vm2442_vm14 = vweird.f32 %v2363_v47 }
0x1f6b   :  { %v2425_v52 = vsub.f32 1.0, %v2424_v48  ;;  %v2446_v61 = vand.u32 2147483647, %v2363_v47 }
0x1f6c   :  { %2485 = vrot.lane.b32.xlu1 %v2481_v36, %s3254_s10  ;;  %v2468_v25 = vmul.f32 %v3171_v27, %v2467_v38  ;;  %v2449_v2 = vor.u32 1.1754944e-38, %v2448_v60  ;;  %v2914_v36 = vld [vmem:[%s4194_s6 + $0x1b0] sm:$0xff]  ;;  %v2913_v38 = vld [vmem:[%s4194_s6 + $0x1a8] sm:$0xff] }
0x1f6d   :  { %v2426_v23 = vmul.f32 %v3173_v37, %v2425_v52  ;;  %vm2447_vm2 = vcmp.eq.f32.partialorder %v2446_v61, 8.507059e+37 }
0x1f6e   :  { %v2469_v42 = vadd.f32 %v3171_v27, %v2468_v25 }
0x1f6f   :  { %v3175_v39 = vpop.eup %3174  ;;  %v2427_v50 = vadd.f32 %v3173_v37, %v2426_v23 }
0x1f70   :  { %v2473_v3 = vsel %vm2472_vm6, %v3171_v27, %v2469_v42  ;;  %v2438_v49 = vmul.f32 %v3175_v39, %v2363_v47  ;;  %vm2443_vm13 = vweird.f32 %v3175_v39 }
0x1f71   :  { %v2478_v44 = vsel %vm2475_vm7, %v2477_v28, %v2473_v3  ;;  %v2431_v57 = vsel %vm2430_vm10, %v3173_v37, %v2427_v50  ;;  %vm2444_vm15 = vmor %vm2442_vm14, %vm2443_vm13  ;;  %v2924_v28 = vld [vmem:[%s4194_s6 + $0x1f8] sm:$0xff]  ;;  %v2923_v3 = vld [vmem:[%s4194_s6 + $0x1f0] sm:$0xff] }
0x1f72   :  { %v2482_v45 = vmul.f32 %v2478_v44, %v2420_v43  ;;  %v2439_v54 = vsub.f32 1.0, %v2438_v49  ;;  %v2436_v46 = vsel %vm2433_vm12, %v2435_v51, %v2431_v57  ;;  %2638 = vmatpush.msra.mxu2 %v2924_v28  ;;  %v2922_v43 = vld [vmem:[%s4194_s6 + $0x1e8] sm:$0xff]  ;;  %v3039_v49 = vld [vmem:[%s4195_s7 + $0x17] ss:$0 sm:$0xff] }
0x1f73   :  { %v2479_v63 = vmul.f32 %v2436_v46, %v4062_v6 }
0x1f74   :  { %2487 = vrot.lane.b32.xlu2 %v2482_v45, %s3254_s10  ;;  %v2440_v56 = vmul.f32 %v3175_v39, %v2439_v54  ;;  %2639 = vmatpush.msra.mxu2 %v2923_v3  ;;  %s2750_s10 = sshll.u32 %s4197_s9, 4  ;;  %s2751_s10 = int_to_ptr.hbm [resolvable:$true] %s2750_s10 }
0x1f76   :  { %v2441_v58 = vadd.f32 %v3175_v39, %v2440_v56  ;;  %2640 = vmatpush.msra.mxu2 %v2922_v43 }
0x1f78   :  { %v2445_v1 = vsel %vm2444_vm15, %v3175_v39, %v2441_v58  ;;  %2641 = vmatpush.msra.mxu2 %v2921_v29 }
0x1f79   :  { %v2450_v7 = vsel %vm2447_vm2, %v2449_v2, %v2445_v1  ;;  %v2918_v1 = vld [vmem:[%s4194_s6 + $0x1c8] sm:$0xff]  ;;  %v2917_v2 = vld [vmem:[%s4194_s6 + $0x1c0] sm:$0xff] }
0x1f7a   :  { %v2480_v9 = vmul.f32 %v2450_v7, %v4064_v62  ;;  %2642 = vmatpush.msra.mxu2 %v2920_v53  ;;  %v3041_v7 = vld [vmem:[%s4195_s7 + $0x19] ss:$0 sm:$0xff] }
0x1fce   :  { %v2488_v8 = vpop.permute.xlu2 %2487 }
0x1fcf   :  { %v2492_v10 = vsel %vm114_vm1, %v2480_v9, %v2488_v8 }
0x1fde   :  { %v2486_v0 = vpop.permute.xlu1 %2485 }
0x1fdf   :  { %v2491_v59 = vsel %vm114_vm1, %v2479_v63, %v2486_v0 }
0x1fe0   :  { %2908 = vmatmul.msk.f32.vlgmr.msrb.gmra.mxu2 %vm65_vm0, %v2491_v59  ;;  %v2919_v59 = vld [vmem:[%s4194_s6 + $0x1d0] sm:$0xff] }
0x1fe1   :  { %2643 = vmatpush.msra.mxu2 %v2919_v59 }
0x1fe3   :  { %2644 = vmatpush.msra.mxu2 %v2918_v1 }
0x1fe5   :  { %2645 = vmatpush.msra.mxu2 %v2917_v2 }
0x1fe8   :  { %2909 = vmatmul.msk.f32.gmra.mxu2 %vm65_vm0, %v2492_v10 }
0x2063   :  { %v2517_v6 = vpop.f32.mrf.mxu2 }
0x2064   :  { %v2518_v12 = vadd.f32 %v3038_v11, %v2517_v6 }
0x2066   :  { %v2523_v13 = vadd.f32 %v2518_v12, %v4021_v19 }
0x2068   :  { %v2527_v15 = vsel %vm65_vm0, %v2523_v13, 0.0 }
0x2069   :  { %2528 = vadd.xlane.f32.xlu0 %v2527_v15 }
0x206b   :  { %v2520_v4 = vpop.f32.mrf.mxu2 }
0x206c   :  { %v2521_v17 = vadd.f32 %v3038_v11, %v2520_v4 }
0x206e   :  { %v2524_v18 = vadd.f32 %v2521_v17, %v4025_v24  ;;  %v2915_v24 = vld [vmem:[%s4194_s6 + $0x1b8] sm:$0xff] }
0x206f   :  { %2610 = vmatpush.msra.mxu3 %v2915_v24 }
0x2070   :  { %v2530_v62 = vsel %vm65_vm0, %v2524_v18, 0.0 }
0x2071   :  { %2531 = vadd.xlane.f32.xlu0 %v2530_v62  ;;  %2611 = vmatpush.msra.mxu3 %v2914_v36 }
0x2073   :  { %2612 = vmatpush.msra.mxu3 %v2913_v38 }
0x2075   :  { %2613 = vmatpush.msra.mxu3 %v2912_v34  ;;  %v2710_v34 = vld [vmem:[%s4196_s8 + $0x18] sm:$0xff] }
0x2077   :  { %2731 = vmatpush.msrb.mxu3 %v2710_v34 }
0x20dc   :  { %v2529_v5 = vpop.xlane.xlu0 %2528 }
0x20dd   :  { %v2533_v20 = vmul.f32 %v2529_v5, %v3401_v16 }
0x20df   :  { %v2535_v21 = vsub.f32 %v2523_v13, %v2533_v20  ;;  %v3042_v13 = vld [vmem:[%s4195_s7 + $0x1a] ss:$0 sm:$0xff] }
0x20e1   :  { %v2537_v22 = vmul.f32 %v2535_v21, %v2535_v21 }
0x20e3   :  { %v2539_v27 = vsel %vm65_vm0, %v2537_v22, 0.0 }
0x20e4   :  { %2540 = vadd.xlane.f32.xlu0 %v2539_v27  ;;  %v2532_v31 = vpop.xlane.xlu0 %2531 }
0x20e5   :  { %v2534_v19 = vmul.f32 %v2532_v31, %v3401_v16 }
0x20e7   :  { %v2536_v32 = vsub.f32 %v2524_v18, %v2534_v19 }
0x20e9   :  { %v2538_v26 = vmul.f32 %v2536_v32, %v2536_v32 }
0x20eb   :  { %v2542_v35 = vsel %vm65_vm0, %v2538_v26, 0.0 }
0x20ec   :  { %2543 = vadd.xlane.f32.xlu1 %v2542_v35 }
0x2157   :  { %v2541_v25 = vpop.xlane.xlu0 %2540 }
0x2158   :  { %v2545_v40 = vmul.f32 %v2541_v25, %v3401_v16  ;;  %v2709_v25 = vld [vmem:[%s4196_s8 + $0x10] sm:$0xff] }
0x2159   :  { %2732 = vmatpush.msrb.mxu3 %v2709_v25 }
0x215a   :  { %v2547_v42 = vadd.f32 1e-05, %v2545_v40  ;;  %v2708_v40 = vld [vmem:[%s4196_s8 + $0x8] sm:$0xff] }
0x215b   :  { %2733 = vmatpush.msrb.mxu3 %v2708_v40 }
0x215c   :  { %3176 = vrsqrt.f32 %v2547_v42  ;;  %vm2555_vm3 = vweird.f32 %v2547_v42 }
0x215f   :  { %v2544_v44 = vpop.xlane.xlu1 %2543 }
0x2160   :  { %v2546_v45 = vmul.f32 %v2544_v44, %v3401_v16 }
0x2162   :  { %v3177_v14 = vpop.eup %3176  ;;  %v2548_v30 = vadd.f32 1e-05, %v2546_v45 }
0x2163   :  { %v2550_v33 = vmul.f32 %v3177_v14, %v2547_v42  ;;  %vm2556_vm1 = vweird.f32 %v3177_v14  ;;  %v2707_v42 = vld [vmem:[%s4196_s8] sm:$0xff] }
0x2164   :  { %3178 = vrsqrt.f32 %v2548_v30  ;;  %vm2557_vm4 = vmor %vm2555_vm3, %vm2556_vm1  ;;  %vm2565_vm6 = vweird.f32 %v2548_v30  ;;  %2734 = vmatpush.msrb.mxu3 %v2707_v42 }
0x2165   :  { %v2551_v47 = vmul.f32 %v3177_v14, %v2550_v33 }
0x2167   :  { %v2552_v37 = vmul.f32 0.5, %v2551_v47 }
0x2169   :  { %v2553_v48 = vsub.f32 1.5, %v2552_v37 }
0x216a   :  { %v3179_v52 = vpop.eup %3178 }
0x216b   :  { %v2554_v39 = vmul.f32 %v3177_v14, %v2553_v48  ;;  %v2560_v23 = vmul.f32 %v3179_v52, %v2548_v30  ;;  %vm2566_vm5 = vweird.f32 %v3179_v52 }
0x216c   :  { %vm2567_vm7 = vmor %vm2565_vm6, %vm2566_vm5 }
0x216d   :  { %v2558_v50 = vsel %vm2557_vm4, %v3177_v14, %v2554_v39  ;;  %v2561_v54 = vmul.f32 %v3179_v52, %v2560_v23  ;;  %v3043_v39 = vld [vmem:[%s4195_s7 + $0x1b] ss:$0 sm:$0xff] }
0x216e   :  { %v2569_v41 = vmul.f32 %v2558_v50, %v2535_v21  ;;  %v3044_v50 = vld [vmem:[%s4195_s7 + $0x1c] ss:$0 sm:$0xff]  ;;  %s3256_s7 = smov [#allocation5]  }
0x216f   :  { %v2562_v56 = vmul.f32 0.5, %v2561_v54  ;;  %s2748_s24 = sshll.u32 %s3256_s7, 4  ;;  %s2749_s24 = int_to_ptr.vmem [resolvable:$true] %s2748_s24 }
0x2170   :  { %v2572_v57 = vmul.f32 %v3039_v49, %v2569_v41 }
0x2171   :  { %v2563_v51 = vsub.f32 1.5, %v2562_v56 }
0x2172   :  { %v2575_v46 = vadd.f32 %v3040_v55, %v2572_v57 }
0x2173   :  { %v2564_v58 = vmul.f32 %v3179_v52, %v2563_v51 }
0x2174   :  { %2926 = vmatmul.msk.f32.vlgmr.msra.gmra.mxu3 %vm65_vm0, %v2575_v46 }
0x2175   :  { %v2568_v60 = vsel %vm2567_vm7, %v3179_v52, %v2564_v58 }
0x2176   :  { %v2570_v61 = vmul.f32 %v2568_v60, %v2536_v32 }
0x2178   :  { %v2573_v63 = vmul.f32 %v3039_v49, %v2570_v61  ;;  %v3045_v61 = vld [vmem:[%s4196_s8 + $0x20] ss:$0 sm:$0xff] }
0x217a   :  { %v2576_v0 = vadd.f32 %v3040_v55, %v2573_v63 }
0x217c   :  { %2927 = vmatmul.msk.f32.gmra.mxu3 %vm65_vm0, %v2576_v0 }
0x21f7   :  { %v2615_v8 = vpop.f32.mrf.mxu3 }
0x21f8   :  { %v2616_v9 = vadd.f32 %v3041_v7, %v2615_v8 }
0x21fa   :  { %v2621_v10 = vmax.f32 %v2616_v9, 0.0 }
0x21fc   :  { %2928 = vmatmul.msk.f32.vlgmr.msra.gmra.mxu2 %vm457_vm11, %v2621_v10 }
0x21ff   :  { %v2618_v11 = vpop.f32.mrf.mxu3 }
0x2200   :  { %v2619_v6 = vadd.f32 %v3041_v7, %v2618_v11 }
0x2202   :  { %v2622_v12 = vmax.f32 %v2619_v6, 0.0 }
0x2204   :  { %2929 = vmatmul.msk.f32.gmra.mxu2 %vm457_vm11, %v2622_v12 }
0x227f   :  { %v2647_v15 = vpop.f32.mrf.mxu2 }
0x2280   :  { %v2648_v4 = vadd.f32 %v3042_v13, %v2647_v15 }
0x2282   :  { %v2653_v17 = vadd.f32 %v2648_v4, %v2575_v46 }
0x2284   :  { %v2657_v18 = vsel %vm65_vm0, %v2653_v17, 0.0 }
0x2285   :  { %2658 = vadd.xlane.f32.xlu2 %v2657_v18 }
0x2287   :  { %v2650_v62 = vpop.f32.mrf.mxu2 }
0x2288   :  { %v2651_v5 = vadd.f32 %v3042_v13, %v2650_v62 }
0x228a   :  { %v2654_v20 = vadd.f32 %v2651_v5, %v2576_v0 }
0x228c   :  { %v2660_v21 = vsel %vm65_vm0, %v2654_v20, 0.0 }
0x228d   :  { %2661 = vadd.xlane.f32.xlu0 %v2660_v21 }
0x22f8   :  { %v2659_v22 = vpop.xlane.xlu2 %2658 }
0x22f9   :  { %v2663_v27 = vmul.f32 %v2659_v22, %v3401_v16 }
0x22fb   :  { %v2665_v31 = vsub.f32 %v2653_v17, %v2663_v27 }
0x22fd   :  { %v2667_v19 = vmul.f32 %v2665_v31, %v2665_v31 }
0x22ff   :  { %v2669_v32 = vsel %vm65_vm0, %v2667_v19, 0.0 }
0x2300   :  { %v2662_v26 = vpop.xlane.xlu0 %2661  ;;  %2670 = vadd.xlane.f32.xlu0 %v2669_v32 }
0x2301   :  { %v2664_v35 = vmul.f32 %v2662_v26, %v3401_v16 }
0x2303   :  { %v2666_v24 = vsub.f32 %v2654_v20, %v2664_v35 }
0x2305   :  { %v2668_v36 = vmul.f32 %v2666_v24, %v2666_v24 }
0x2307   :  { %v2672_v38 = vsel %vm65_vm0, %v2668_v36, 0.0 }
0x2308   :  { %2673 = vadd.xlane.f32.xlu0 %v2672_v38 }
0x2373   :  { %v2671_v28 = vpop.xlane.xlu0 %2670 }
0x2374   :  { %v2675_v3 = vmul.f32 %v2671_v28, %v3401_v16 }
0x2376   :  { %v2677_v43 = vadd.f32 1e-05, %v2675_v3 }
0x2378   :  { %3180 = vrsqrt.f32 %v2677_v43  ;;  %vm2685_vm8 = vweird.f32 %v2677_v43 }
0x237b   :  { %v2674_v44 = vpop.xlane.xlu0 %2673 }
0x237c   :  { %v2676_v45 = vmul.f32 %v2674_v44, %v3401_v16 }
0x237e   :  { %v3181_v29 = vpop.eup %3180  ;;  %v2678_v14 = vadd.f32 1e-05, %v2676_v45 }
0x237f   :  { %v2680_v30 = vmul.f32 %v3181_v29, %v2677_v43  ;;  %vm2686_vm11 = vweird.f32 %v3181_v29 }
0x2380   :  { %3182 = vrsqrt.f32 %v2678_v14  ;;  %vm2687_vm9 = vmor %vm2685_vm8, %vm2686_vm11  ;;  %vm2695_vm12 = vweird.f32 %v2678_v14 }
0x2381   :  { %v2681_v53 = vmul.f32 %v3181_v29, %v2680_v30 }
0x2383   :  { %v2682_v33 = vmul.f32 0.5, %v2681_v53 }
0x2385   :  { %v2683_v47 = vsub.f32 1.5, %v2682_v33 }
0x2386   :  { %v3183_v37 = vpop.eup %3182 }
0x2387   :  { %v2684_v48 = vmul.f32 %v3181_v29, %v2683_v47  ;;  %v2690_v52 = vmul.f32 %v3183_v37, %v2678_v14  ;;  %vm2696_vm10 = vweird.f32 %v3183_v37 }
0x2388   :  { %vm2697_vm13 = vmor %vm2695_vm12, %vm2696_vm10 }
0x2389   :  { %v2688_v23 = vsel %vm2687_vm9, %v3181_v29, %v2684_v48  ;;  %v2691_v49 = vmul.f32 %v3183_v37, %v2690_v52 }
0x238a   :  { %v2699_v16 = vmul.f32 %v2688_v23, %v2665_v31 }
0x238b   :  { %v2692_v54 = vmul.f32 0.5, %v2691_v49 }
0x238c   :  { %v2702_v41 = vmul.f32 %v3043_v39, %v2699_v16 }
0x238d   :  { %v2693_v55 = vsub.f32 1.5, %v2692_v54 }
0x238e   :  { %v2705_v56 = vadd.f32 %v3044_v50, %v2702_v41 }
0x238f   :  { %v2694_v57 = vmul.f32 %v3183_v37, %v2693_v55 }
0x2390   :  { %2932 = vmatmul.msk.f32.vlgmr.msrb.gmra.mxu3 %vm65_vm0, %v2705_v56 }
0x2391   :  { %v2698_v51 = vsel %vm2697_vm13, %v3183_v37, %v2694_v57 }
0x2392   :  { %v2700_v46 = vmul.f32 %v2698_v51, %v2666_v24 }
0x2394   :  { %v2703_v58 = vmul.f32 %v3043_v39, %v2700_v46 }
0x2396   :  { %v2706_v60 = vadd.f32 %v3044_v50, %v2703_v58 }
0x2398   :  { %2933 = vmatmul.msk.f32.gmra.mxu3 %vm65_vm0, %v2706_v60 }
0x2413   :  { %v2736_v63 = vpop.f32.mrf.mxu3 }
0x2414   :  { %v2737_v0 = vadd.f32 %v3045_v61, %v2736_v63 }
0x2416   :  { %2742 = vst [vmem:[#allocation5] sm:$0xff] %v2737_v0 }
0x241b   :  { %v2739_v59 = vpop.f32.mrf.mxu3 }
0x241c   :  { %v2740_v1 = vadd.f32 %v3045_v61, %v2739_v59 }
0x241e   :  { %2743 = vst [vmem:[#allocation5 + $0x8] sm:$0xff] %v2740_v1 }
0x241f   :  { %2756 = dma.vmem_to_hbm [thread:$0]  %s2749_s24, 256, %s2751_s10, [#allocation4], %s3249_s14, %s3249_s14, %s3250_s15  }
0x2420   :  { %3246 = dma.done.wait [#allocation4], 256  }
0x2421   :  { %3247 = vsyncadd [#allocation4], 4294967040 }
0x2422   :  { %2761 = vsyncpa [#allocation3], 1 }
0x2423   :  { %2762 = vsyncpa [#allocation4], 1 }

</bundles_post_ra>
